<compile_context>
chip_gen: v7x
topology: tpu7x:2x2x1
jax: 0.10.0
libtpu: 0.0.40
codegen_flags: <defaults>
</compile_context>

<pallas_src>
import math

import jax
import jax.numpy as jnp
import numpy as np
from jax import lax
from jax.experimental import pallas as pl
from jax.experimental.pallas import tpu as pltpu


# ----------------------------- fused SQIL kernel -----------------------------
def _make_kernel(Ba, Bb, La, Lb, inner):
    scale = 1.0 / math.sqrt(inner)
    # x is (C, L), w is (C, 3*inner): contract the channel dim of BOTH operands
    # (transposed-lhs matmul) -> result (L, 3*inner).  No layout shuffles anywhere.
    CC_DIMS = (((0,), (0,)), ((), ()))   # x^T @ w  -> (L, 3*inner)
    NT_DIMS = (((1,), (1,)), ((), ()))   # q  @ k^T -> (Lq, Lk)

    def _softmax_last(s):
        s = s - jnp.max(s, axis=-1, keepdims=True)
        e = jnp.exp(s)
        return e / jnp.sum(e, axis=-1, keepdims=True)       # exact divide (see review)

    def _qkv(x, w):
        # One fused projection dot per item, then static lane slices for Q/K/V.
        qkv = lax.dot_general(x, w, CC_DIMS, preferred_element_type=jnp.float32)
        return (qkv[:, 0:inner],
                qkv[:, inner:2 * inner],
                qkv[:, 2 * inner:3 * inner])

    def kernel(xa_ref, xb_ref, w_ref, out_ref):
        w = w_ref[...]                                        # (C, 3*inner), resident

        # Project the whole support set ONCE (fused QKV, one dot per way).
        support = [_qkv(xa_ref[j], w) for j in range(Ba)]     # each: 3 x (La, inner)

        sq_rows, qs_rows = [], []
        for i in range(Bb):
            qb, kb, vb = _qkv(xb_ref[i], w)                   # (Lb, inner) each

            sq_cols, qs_cols = [], []
            for j in range(Ba):
                qa, ka, va = support[j]                       # (La, inner) each

                # TODO(synk): dropout on att_probs skipped (drop_prob=0.0 -> identity).

                # query-B attends over key-A ; reconstruct B from value-A  -> qs
                p_ba = _softmax_last(
                    lax.dot_general(qb, ka, NT_DIMS,
                                    preferred_element_type=jnp.float32) * scale)
                rec_b = jnp.dot(p_ba, va, preferred_element_type=jnp.float32)
                d_b = vb - rec_b
                qs_cols.append(-jnp.sum(d_b * d_b, keepdims=True))       # (1, 1)

                # query-A attends over key-B ; reconstruct A from value-B  -> sq
                p_ab = _softmax_last(
                    lax.dot_general(qa, kb, NT_DIMS,
                                    preferred_element_type=jnp.float32) * scale)
                rec_a = jnp.dot(p_ab, vb, preferred_element_type=jnp.float32)
                d_a = va - rec_a
                sq_cols.append(-jnp.sum(d_a * d_a, keepdims=True))       # (1, 1)

            sq_rows.append(jnp.concatenate(sq_cols, axis=1))             # (1, Ba)
            qs_rows.append(jnp.concatenate(qs_cols, axis=1))             # (1, Ba)

        # Two plane stores of the single merged output (no per-scalar masked stores).
        out_ref[0] = jnp.concatenate(sq_rows, axis=0)                    # (Bb, Ba)
        out_ref[1] = jnp.concatenate(qs_rows, axis=0)                    # (Bb, Ba)

    return kernel


def sqil_forward(features_a, features_b, w_qkv, inner_size):
    """Fused Pallas implementation of SQIL.forward.

    features_* are NCHW conv features; w_qkv is the packed to_qkv weight stored as
    (hidden, 3*inner) (nn.Linear's (3*inner, hidden) weight transposed once at the
    parameter level -- a free, one-time layout choice).
    Returns (sq_similarity, qs_similarity), each (n_query, n_way) float32.
    """
    Ba, C, Ha, Wa = features_a.shape
    Bb, _, Hb, Wb = features_b.shape
    La, Lb = Ha * Wa, Hb * Wb

    # Pure reshapes only (channel-major (B, C, L)): no transpose HLOs in the wrapper.
    xa = features_a.reshape(Ba, C, La)
    xb = features_b.reshape(Bb, C, Lb)

    kernel = _make_kernel(Ba, Bb, La, Lb, inner_size)

    out = pl.pallas_call(
        kernel,
        grid=(1,),                                    # single step: everything resident
        in_specs=[
            pl.BlockSpec((Ba, C, La), lambda i: (0, 0, 0)),            # whole support set
            pl.BlockSpec((Bb, C, Lb), lambda i: (0, 0, 0)),            # whole query set
            pl.BlockSpec((C, 3 * inner_size), lambda i: (0, 0)),       # packed qkv weight
        ],
        out_specs=pl.BlockSpec((2, Bb, Ba), lambda i: (0, 0, 0)),
        out_shape=jax.ShapeDtypeStruct((2, Bb, Ba), jnp.float32),      # [sq ; qs]
        compiler_params=pltpu.CompilerParams(
            dimension_semantics=("arbitrary",)),
    )(xa, xb, w_qkv)

    return out[0], out[1]        # (sq_similarity, qs_similarity), each (Bb, Ba)


_sqil_forward_jit = jax.jit(sqil_forward, static_argnums=(3,))


# ----------------------------- pure-JAX reference -----------------------------
def sqil_reference(features_a, features_b, w_qkv, inner_size):
    hp = lax.Precision.HIGHEST
    Ba, C, Ha, Wa = features_a.shape
    Bb, _, Hb, Wb = features_b.shape
    xa = features_a.reshape(Ba, C, Ha * Wa).transpose(0, 2, 1)
    xb = features_b.reshape(Bb, C, Hb * Wb).transpose(0, 2, 1)
    qa, ka, va = jnp.split(jnp.einsum('blc,cd->bld', xa, w_qkv, precision=hp), 3, axis=-1)
    qb, kb, vb = jnp.split(jnp.einsum('blc,cd->bld', xb, w_qkv, precision=hp), 3, axis=-1)
    scale = 1.0 / math.sqrt(inner_size)

    s_ba = jnp.einsum('iqd,jkd->ijqk', qb, ka, precision=hp) * scale   # (Bb, Ba, Lb, La)
    p_ba = jax.nn.softmax(s_ba, axis=-1)
    rec_b = jnp.einsum('ijqk,jkd->ijqd', p_ba, va, precision=hp)       # (Bb, Ba, Lb, inner)
    qs = -jnp.sum((vb[:, None] - rec_b) ** 2, axis=(-1, -2))           # (Bb, Ba)

    s_ab = jnp.einsum('jqd,ikd->ijqk', qa, kb, precision=hp) * scale   # (Bb, Ba, La, Lb)
    p_ab = jax.nn.softmax(s_ab, axis=-1)
    rec_a = jnp.einsum('ijqk,ikd->ijqd', p_ab, vb, precision=hp)       # (Bb, Ba, La, inner)
    sq = -jnp.sum((va[None] - rec_a) ** 2, axis=(-1, -2))              # (Bb, Ba)
    return sq, qs


if __name__ == "__main__":
    key = jax.random.PRNGKey(0)
    k1, k2, k3 = jax.random.split(key, 3)

    hidden_size = 32
    inner_size = hidden_size // 8          # SQIL default: hidden_size // 8 = 4
    n_way, n_query = 3, 2
    H = W = 5                              # H*W = 25 patches (SQIL default num_patch)

    features_a = jax.random.normal(k1, (n_way, hidden_size, H, W), dtype=jnp.float32)
    features_b = jax.random.normal(k2, (n_query, hidden_size, H, W), dtype=jnp.float32)
    # nn.Linear(hidden, 3*inner, bias=False) computes x @ W.T; we store W.T directly
    # (one-time parameter layout choice, no runtime transpose anywhere).
    w_qkv = (jax.random.normal(k3, (hidden_size, 3 * inner_size), dtype=jnp.float32)
             / math.sqrt(hidden_size))

    sq, qs = _sqil_forward_jit(features_a, features_b, w_qkv, inner_size)
    jax.block_until_ready((sq, qs))

    sq_ref, qs_ref = sqil_reference(features_a, features_b, w_qkv, inner_size)
    assert sq.shape == (n_query, n_way) and qs.shape == (n_query, n_way)
    # Exact-divide softmax in the kernel; remaining slack only covers MXU
    # pass-precision of in-kernel f32 matmuls vs the HIGHEST-precision XLA reference.
    np.testing.assert_allclose(np.asarray(sq), np.asarray(sq_ref), rtol=3e-3, atol=5e-2)
    np.testing.assert_allclose(np.asarray(qs), np.asarray(qs_ref), rtol=3e-3, atol=5e-2)

    print("KERNEL_OK")
</pallas_src>

<mosaic_0001>
module attributes {stable_mosaic.version = 11 : i64} {
  func.func @kernel(%arg0: i32, %arg1: memref<3x32x25xf32, #tpu.memory_space<vmem>>, %arg2: memref<2x32x25xf32, #tpu.memory_space<vmem>>, %arg3: memref<32x12xf32, #tpu.memory_space<vmem>>, %arg4: memref<2x2x3xf32, #tpu.memory_space<vmem>>) attributes {dimension_semantics = [#tpu.dimension_semantics<arbitrary>], iteration_bounds = array<i64: 1>, scalar_prefetch = 0 : i64, scratch_operands = 0 : i64, tpu.core_type = #tpu.core_type<tc>, window_params = [{pipeline_mode = #tpu.pipeline_mode<synchronous>, transform_indices = @transform_0, window_bounds = array<i64: 3, 32, 25>}, {pipeline_mode = #tpu.pipeline_mode<synchronous>, transform_indices = @transform_1, window_bounds = array<i64: 2, 32, 25>}, {pipeline_mode = #tpu.pipeline_mode<synchronous>, transform_indices = @transform_2, window_bounds = array<i64: 32, 12>}, {pipeline_mode = #tpu.pipeline_mode<synchronous>, transform_indices = @transform_3, window_bounds = array<i64: 2, 2, 3>}]} {
    %c0 = arith.constant 0 : index
    %c0_0 = arith.constant 0 : index
    %0 = vector.load %arg3[%c0, %c0_0] : memref<32x12xf32, #tpu.memory_space<vmem>>, vector<32x12xf32>
    %c0_1 = arith.constant 0 : index
    %c0_2 = arith.constant 0 : index
    %c0_3 = arith.constant 0 : index
    %1 = vector.load %arg1[%c0_1, %c0_2, %c0_3] : memref<3x32x25xf32, #tpu.memory_space<vmem>>, vector<1x32x25xf32>
    %2 = vector.shape_cast %1 : vector<1x32x25xf32> to vector<32x25xf32>
    %cst = arith.constant dense<0.000000e+00> : vector<25x12xf32>
    %3 = tpu.matmul %2, %0, %cst {dimension_numbers = #tpu.dot_dimension_numbers<[0], [0], [1], [1], [0, 1, 1, 1], [], []>} : vector<32x25xf32>, vector<32x12xf32>, vector<25x12xf32> -> vector<25x12xf32>
    %4 = vector.extract_strided_slice %3 {offsets = [0, 0], sizes = [25, 4], strides = [1, 1]} : vector<25x12xf32> to vector<25x4xf32>
    %5 = vector.extract_strided_slice %3 {offsets = [0, 4], sizes = [25, 4], strides = [1, 1]} : vector<25x12xf32> to vector<25x4xf32>
    %6 = vector.extract_strided_slice %3 {offsets = [0, 8], sizes = [25, 4], strides = [1, 1]} : vector<25x12xf32> to vector<25x4xf32>
    %c1 = arith.constant 1 : index
    %c0_4 = arith.constant 0 : index
    %c0_5 = arith.constant 0 : index
    %7 = vector.load %arg1[%c1, %c0_4, %c0_5] : memref<3x32x25xf32, #tpu.memory_space<vmem>>, vector<1x32x25xf32>
    %8 = vector.shape_cast %7 : vector<1x32x25xf32> to vector<32x25xf32>
    %cst_6 = arith.constant dense<0.000000e+00> : vector<25x12xf32>
    %9 = tpu.matmul %8, %0, %cst_6 {dimension_numbers = #tpu.dot_dimension_numbers<[0], [0], [1], [1], [0, 1, 1, 1], [], []>} : vector<32x25xf32>, vector<32x12xf32>, vector<25x12xf32> -> vector<25x12xf32>
    %10 = vector.extract_strided_slice %9 {offsets = [0, 0], sizes = [25, 4], strides = [1, 1]} : vector<25x12xf32> to vector<25x4xf32>
    %11 = vector.extract_strided_slice %9 {offsets = [0, 4], sizes = [25, 4], strides = [1, 1]} : vector<25x12xf32> to vector<25x4xf32>
    %12 = vector.extract_strided_slice %9 {offsets = [0, 8], sizes = [25, 4], strides = [1, 1]} : vector<25x12xf32> to vector<25x4xf32>
    %c2 = arith.constant 2 : index
    %c0_7 = arith.constant 0 : index
    %c0_8 = arith.constant 0 : index
    %13 = vector.load %arg1[%c2, %c0_7, %c0_8] : memref<3x32x25xf32, #tpu.memory_space<vmem>>, vector<1x32x25xf32>
    %14 = vector.shape_cast %13 : vector<1x32x25xf32> to vector<32x25xf32>
    %cst_9 = arith.constant dense<0.000000e+00> : vector<25x12xf32>
    %15 = tpu.matmul %14, %0, %cst_9 {dimension_numbers = #tpu.dot_dimension_numbers<[0], [0], [1], [1], [0, 1, 1, 1], [], []>} : vector<32x25xf32>, vector<32x12xf32>, vector<25x12xf32> -> vector<25x12xf32>
    %16 = vector.extract_strided_slice %15 {offsets = [0, 0], sizes = [25, 4], strides = [1, 1]} : vector<25x12xf32> to vector<25x4xf32>
    %17 = vector.extract_strided_slice %15 {offsets = [0, 4], sizes = [25, 4], strides = [1, 1]} : vector<25x12xf32> to vector<25x4xf32>
    %18 = vector.extract_strided_slice %15 {offsets = [0, 8], sizes = [25, 4], strides = [1, 1]} : vector<25x12xf32> to vector<25x4xf32>
    %c0_10 = arith.constant 0 : index
    %c0_11 = arith.constant 0 : index
    %c0_12 = arith.constant 0 : index
    %19 = vector.load %arg2[%c0_10, %c0_11, %c0_12] : memref<2x32x25xf32, #tpu.memory_space<vmem>>, vector<1x32x25xf32>
    %20 = vector.shape_cast %19 : vector<1x32x25xf32> to vector<32x25xf32>
    %cst_13 = arith.constant dense<0.000000e+00> : vector<25x12xf32>
    %21 = tpu.matmul %20, %0, %cst_13 {dimension_numbers = #tpu.dot_dimension_numbers<[0], [0], [1], [1], [0, 1, 1, 1], [], []>} : vector<32x25xf32>, vector<32x12xf32>, vector<25x12xf32> -> vector<25x12xf32>
    %22 = vector.extract_strided_slice %21 {offsets = [0, 0], sizes = [25, 4], strides = [1, 1]} : vector<25x12xf32> to vector<25x4xf32>
    %23 = vector.extract_strided_slice %21 {offsets = [0, 4], sizes = [25, 4], strides = [1, 1]} : vector<25x12xf32> to vector<25x4xf32>
    %24 = vector.extract_strided_slice %21 {offsets = [0, 8], sizes = [25, 4], strides = [1, 1]} : vector<25x12xf32> to vector<25x4xf32>
    %cst_14 = arith.constant dense<0.000000e+00> : vector<25x25xf32>
    %25 = tpu.matmul %22, %5, %cst_14 {dimension_numbers = #tpu.dot_dimension_numbers<[1], [1], [0], [0], [0, 0, 1, 0], [], []>} : vector<25x4xf32>, vector<25x4xf32>, vector<25x25xf32> -> vector<25x25xf32>
    %cst_15 = arith.constant 5.000000e-01 : f32
    %26 = vector.broadcast %cst_15 : f32 to vector<25x25xf32>
    %27 = arith.mulf %25, %26 : vector<25x25xf32>
    %cst_16 = arith.constant dense<0xFF800000> : vector<25xf32>
    %28 = vector.multi_reduction <maximumf>, %27, %cst_16 [1] : vector<25x25xf32> to vector<25xf32>
    %29 = vector.shape_cast %28 : vector<25xf32> to vector<25x1xf32>
    %30 = vector.broadcast %29 : vector<25x1xf32> to vector<25x25xf32>
    %31 = arith.subf %27, %30 : vector<25x25xf32>
    %32 = math.exp %31 : vector<25x25xf32>
    %cst_17 = arith.constant dense<0.000000e+00> : vector<25xf32>
    %33 = vector.multi_reduction <add>, %32, %cst_17 [1] : vector<25x25xf32> to vector<25xf32>
    %34 = vector.shape_cast %33 : vector<25xf32> to vector<25x1xf32>
    %35 = vector.broadcast %34 : vector<25x1xf32> to vector<25x25xf32>
    %36 = arith.divf %32, %35 : vector<25x25xf32>
    %cst_18 = arith.constant dense<0.000000e+00> : vector<25x4xf32>
    %37 = tpu.matmul %36, %6, %cst_18 {dimension_numbers = #tpu.dot_dimension_numbers<[1], [0], [0], [1], [0, 0, 1, 1], [], []>} : vector<25x25xf32>, vector<25x4xf32>, vector<25x4xf32> -> vector<25x4xf32>
    %38 = arith.subf %24, %37 : vector<25x4xf32>
    %39 = arith.mulf %38, %38 : vector<25x4xf32>
    %40 = vector.shape_cast %39 : vector<25x4xf32> to vector<1x25x4xf32>
    %cst_19 = arith.constant dense<0.000000e+00> : vector<1xf32>
    %41 = vector.multi_reduction <add>, %40, %cst_19 [1, 2] : vector<1x25x4xf32> to vector<1xf32>
    %42 = vector.shape_cast %41 : vector<1xf32> to vector<1x1x1xf32>
    %43 = vector.extract %42[0, 0, 0] : f32 from vector<1x1x1xf32>
    %44 = vector.broadcast %43 : f32 to vector<1x1xf32>
    %cst_20 = arith.constant 0.000000e+00 : f32
    %45 = vector.broadcast %cst_20 : f32 to vector<1x1xf32>
    %46 = arith.subf %45, %44 : vector<1x1xf32>
    %cst_21 = arith.constant dense<0.000000e+00> : vector<25x25xf32>
    %47 = tpu.matmul %4, %23, %cst_21 {dimension_numbers = #tpu.dot_dimension_numbers<[1], [1], [0], [0], [0, 0, 1, 0], [], []>} : vector<25x4xf32>, vector<25x4xf32>, vector<25x25xf32> -> vector<25x25xf32>
    %cst_22 = arith.constant 5.000000e-01 : f32
    %48 = vector.broadcast %cst_22 : f32 to vector<25x25xf32>
    %49 = arith.mulf %47, %48 : vector<25x25xf32>
    %cst_23 = arith.constant dense<0xFF800000> : vector<25xf32>
    %50 = vector.multi_reduction <maximumf>, %49, %cst_23 [1] : vector<25x25xf32> to vector<25xf32>
    %51 = vector.shape_cast %50 : vector<25xf32> to vector<25x1xf32>
    %52 = vector.broadcast %51 : vector<25x1xf32> to vector<25x25xf32>
    %53 = arith.subf %49, %52 : vector<25x25xf32>
    %54 = math.exp %53 : vector<25x25xf32>
    %cst_24 = arith.constant dense<0.000000e+00> : vector<25xf32>
    %55 = vector.multi_reduction <add>, %54, %cst_24 [1] : vector<25x25xf32> to vector<25xf32>
    %56 = vector.shape_cast %55 : vector<25xf32> to vector<25x1xf32>
    %57 = vector.broadcast %56 : vector<25x1xf32> to vector<25x25xf32>
    %58 = arith.divf %54, %57 : vector<25x25xf32>
    %cst_25 = arith.constant dense<0.000000e+00> : vector<25x4xf32>
    %59 = tpu.matmul %58, %24, %cst_25 {dimension_numbers = #tpu.dot_dimension_numbers<[1], [0], [0], [1], [0, 0, 1, 1], [], []>} : vector<25x25xf32>, vector<25x4xf32>, vector<25x4xf32> -> vector<25x4xf32>
    %60 = arith.subf %6, %59 : vector<25x4xf32>
    %61 = arith.mulf %60, %60 : vector<25x4xf32>
    %62 = vector.shape_cast %61 : vector<25x4xf32> to vector<1x25x4xf32>
    %cst_26 = arith.constant dense<0.000000e+00> : vector<1xf32>
    %63 = vector.multi_reduction <add>, %62, %cst_26 [1, 2] : vector<1x25x4xf32> to vector<1xf32>
    %64 = vector.shape_cast %63 : vector<1xf32> to vector<1x1x1xf32>
    %65 = vector.extract %64[0, 0, 0] : f32 from vector<1x1x1xf32>
    %66 = vector.broadcast %65 : f32 to vector<1x1xf32>
    %cst_27 = arith.constant 0.000000e+00 : f32
    %67 = vector.broadcast %cst_27 : f32 to vector<1x1xf32>
    %68 = arith.subf %67, %66 : vector<1x1xf32>
    %cst_28 = arith.constant dense<0.000000e+00> : vector<25x25xf32>
    %69 = tpu.matmul %22, %11, %cst_28 {dimension_numbers = #tpu.dot_dimension_numbers<[1], [1], [0], [0], [0, 0, 1, 0], [], []>} : vector<25x4xf32>, vector<25x4xf32>, vector<25x25xf32> -> vector<25x25xf32>
    %cst_29 = arith.constant 5.000000e-01 : f32
    %70 = vector.broadcast %cst_29 : f32 to vector<25x25xf32>
    %71 = arith.mulf %69, %70 : vector<25x25xf32>
    %cst_30 = arith.constant dense<0xFF800000> : vector<25xf32>
    %72 = vector.multi_reduction <maximumf>, %71, %cst_30 [1] : vector<25x25xf32> to vector<25xf32>
    %73 = vector.shape_cast %72 : vector<25xf32> to vector<25x1xf32>
    %74 = vector.broadcast %73 : vector<25x1xf32> to vector<25x25xf32>
    %75 = arith.subf %71, %74 : vector<25x25xf32>
    %76 = math.exp %75 : vector<25x25xf32>
    %cst_31 = arith.constant dense<0.000000e+00> : vector<25xf32>
    %77 = vector.multi_reduction <add>, %76, %cst_31 [1] : vector<25x25xf32> to vector<25xf32>
    %78 = vector.shape_cast %77 : vector<25xf32> to vector<25x1xf32>
    %79 = vector.broadcast %78 : vector<25x1xf32> to vector<25x25xf32>
    %80 = arith.divf %76, %79 : vector<25x25xf32>
    %cst_32 = arith.constant dense<0.000000e+00> : vector<25x4xf32>
    %81 = tpu.matmul %80, %12, %cst_32 {dimension_numbers = #tpu.dot_dimension_numbers<[1], [0], [0], [1], [0, 0, 1, 1], [], []>} : vector<25x25xf32>, vector<25x4xf32>, vector<25x4xf32> -> vector<25x4xf32>
    %82 = arith.subf %24, %81 : vector<25x4xf32>
    %83 = arith.mulf %82, %82 : vector<25x4xf32>
    %84 = vector.shape_cast %83 : vector<25x4xf32> to vector<1x25x4xf32>
    %cst_33 = arith.constant dense<0.000000e+00> : vector<1xf32>
    %85 = vector.multi_reduction <add>, %84, %cst_33 [1, 2] : vector<1x25x4xf32> to vector<1xf32>
    %86 = vector.shape_cast %85 : vector<1xf32> to vector<1x1x1xf32>
    %87 = vector.extract %86[0, 0, 0] : f32 from vector<1x1x1xf32>
    %88 = vector.broadcast %87 : f32 to vector<1x1xf32>
    %cst_34 = arith.constant 0.000000e+00 : f32
    %89 = vector.broadcast %cst_34 : f32 to vector<1x1xf32>
    %90 = arith.subf %89, %88 : vector<1x1xf32>
    %cst_35 = arith.constant dense<0.000000e+00> : vector<25x25xf32>
    %91 = tpu.matmul %10, %23, %cst_35 {dimension_numbers = #tpu.dot_dimension_numbers<[1], [1], [0], [0], [0, 0, 1, 0], [], []>} : vector<25x4xf32>, vector<25x4xf32>, vector<25x25xf32> -> vector<25x25xf32>
    %cst_36 = arith.constant 5.000000e-01 : f32
    %92 = vector.broadcast %cst_36 : f32 to vector<25x25xf32>
    %93 = arith.mulf %91, %92 : vector<25x25xf32>
    %cst_37 = arith.constant dense<0xFF800000> : vector<25xf32>
    %94 = vector.multi_reduction <maximumf>, %93, %cst_37 [1] : vector<25x25xf32> to vector<25xf32>
    %95 = vector.shape_cast %94 : vector<25xf32> to vector<25x1xf32>
    %96 = vector.broadcast %95 : vector<25x1xf32> to vector<25x25xf32>
    %97 = arith.subf %93, %96 : vector<25x25xf32>
    %98 = math.exp %97 : vector<25x25xf32>
    %cst_38 = arith.constant dense<0.000000e+00> : vector<25xf32>
    %99 = vector.multi_reduction <add>, %98, %cst_38 [1] : vector<25x25xf32> to vector<25xf32>
    %100 = vector.shape_cast %99 : vector<25xf32> to vector<25x1xf32>
    %101 = vector.broadcast %100 : vector<25x1xf32> to vector<25x25xf32>
    %102 = arith.divf %98, %101 : vector<25x25xf32>
    %cst_39 = arith.constant dense<0.000000e+00> : vector<25x4xf32>
    %103 = tpu.matmul %102, %24, %cst_39 {dimension_numbers = #tpu.dot_dimension_numbers<[1], [0], [0], [1], [0, 0, 1, 1], [], []>} : vector<25x25xf32>, vector<25x4xf32>, vector<25x4xf32> -> vector<25x4xf32>
    %104 = arith.subf %12, %103 : vector<25x4xf32>
    %105 = arith.mulf %104, %104 : vector<25x4xf32>
    %106 = vector.shape_cast %105 : vector<25x4xf32> to vector<1x25x4xf32>
    %cst_40 = arith.constant dense<0.000000e+00> : vector<1xf32>
    %107 = vector.multi_reduction <add>, %106, %cst_40 [1, 2] : vector<1x25x4xf32> to vector<1xf32>
    %108 = vector.shape_cast %107 : vector<1xf32> to vector<1x1x1xf32>
    %109 = vector.extract %108[0, 0, 0] : f32 from vector<1x1x1xf32>
    %110 = vector.broadcast %109 : f32 to vector<1x1xf32>
    %cst_41 = arith.constant 0.000000e+00 : f32
    %111 = vector.broadcast %cst_41 : f32 to vector<1x1xf32>
    %112 = arith.subf %111, %110 : vector<1x1xf32>
    %cst_42 = arith.constant dense<0.000000e+00> : vector<25x25xf32>
    %113 = tpu.matmul %22, %17, %cst_42 {dimension_numbers = #tpu.dot_dimension_numbers<[1], [1], [0], [0], [0, 0, 1, 0], [], []>} : vector<25x4xf32>, vector<25x4xf32>, vector<25x25xf32> -> vector<25x25xf32>
    %cst_43 = arith.constant 5.000000e-01 : f32
    %114 = vector.broadcast %cst_43 : f32 to vector<25x25xf32>
    %115 = arith.mulf %113, %114 : vector<25x25xf32>
    %cst_44 = arith.constant dense<0xFF800000> : vector<25xf32>
    %116 = vector.multi_reduction <maximumf>, %115, %cst_44 [1] : vector<25x25xf32> to vector<25xf32>
    %117 = vector.shape_cast %116 : vector<25xf32> to vector<25x1xf32>
    %118 = vector.broadcast %117 : vector<25x1xf32> to vector<25x25xf32>
    %119 = arith.subf %115, %118 : vector<25x25xf32>
    %120 = math.exp %119 : vector<25x25xf32>
    %cst_45 = arith.constant dense<0.000000e+00> : vector<25xf32>
    %121 = vector.multi_reduction <add>, %120, %cst_45 [1] : vector<25x25xf32> to vector<25xf32>
    %122 = vector.shape_cast %121 : vector<25xf32> to vector<25x1xf32>
    %123 = vector.broadcast %122 : vector<25x1xf32> to vector<25x25xf32>
    %124 = arith.divf %120, %123 : vector<25x25xf32>
    %cst_46 = arith.constant dense<0.000000e+00> : vector<25x4xf32>
    %125 = tpu.matmul %124, %18, %cst_46 {dimension_numbers = #tpu.dot_dimension_numbers<[1], [0], [0], [1], [0, 0, 1, 1], [], []>} : vector<25x25xf32>, vector<25x4xf32>, vector<25x4xf32> -> vector<25x4xf32>
    %126 = arith.subf %24, %125 : vector<25x4xf32>
    %127 = arith.mulf %126, %126 : vector<25x4xf32>
    %128 = vector.shape_cast %127 : vector<25x4xf32> to vector<1x25x4xf32>
    %cst_47 = arith.constant dense<0.000000e+00> : vector<1xf32>
    %129 = vector.multi_reduction <add>, %128, %cst_47 [1, 2] : vector<1x25x4xf32> to vector<1xf32>
    %130 = vector.shape_cast %129 : vector<1xf32> to vector<1x1x1xf32>
    %131 = vector.extract %130[0, 0, 0] : f32 from vector<1x1x1xf32>
    %132 = vector.broadcast %131 : f32 to vector<1x1xf32>
    %cst_48 = arith.constant 0.000000e+00 : f32
    %133 = vector.broadcast %cst_48 : f32 to vector<1x1xf32>
    %134 = arith.subf %133, %132 : vector<1x1xf32>
    %cst_49 = arith.constant dense<0.000000e+00> : vector<25x25xf32>
    %135 = tpu.matmul %16, %23, %cst_49 {dimension_numbers = #tpu.dot_dimension_numbers<[1], [1], [0], [0], [0, 0, 1, 0], [], []>} : vector<25x4xf32>, vector<25x4xf32>, vector<25x25xf32> -> vector<25x25xf32>
    %cst_50 = arith.constant 5.000000e-01 : f32
    %136 = vector.broadcast %cst_50 : f32 to vector<25x25xf32>
    %137 = arith.mulf %135, %136 : vector<25x25xf32>
    %cst_51 = arith.constant dense<0xFF800000> : vector<25xf32>
    %138 = vector.multi_reduction <maximumf>, %137, %cst_51 [1] : vector<25x25xf32> to vector<25xf32>
    %139 = vector.shape_cast %138 : vector<25xf32> to vector<25x1xf32>
    %140 = vector.broadcast %139 : vector<25x1xf32> to vector<25x25xf32>
    %141 = arith.subf %137, %140 : vector<25x25xf32>
    %142 = math.exp %141 : vector<25x25xf32>
    %cst_52 = arith.constant dense<0.000000e+00> : vector<25xf32>
    %143 = vector.multi_reduction <add>, %142, %cst_52 [1] : vector<25x25xf32> to vector<25xf32>
    %144 = vector.shape_cast %143 : vector<25xf32> to vector<25x1xf32>
    %145 = vector.broadcast %144 : vector<25x1xf32> to vector<25x25xf32>
    %146 = arith.divf %142, %145 : vector<25x25xf32>
    %cst_53 = arith.constant dense<0.000000e+00> : vector<25x4xf32>
    %147 = tpu.matmul %146, %24, %cst_53 {dimension_numbers = #tpu.dot_dimension_numbers<[1], [0], [0], [1], [0, 0, 1, 1], [], []>} : vector<25x25xf32>, vector<25x4xf32>, vector<25x4xf32> -> vector<25x4xf32>
    %148 = arith.subf %18, %147 : vector<25x4xf32>
    %149 = arith.mulf %148, %148 : vector<25x4xf32>
    %150 = vector.shape_cast %149 : vector<25x4xf32> to vector<1x25x4xf32>
    %cst_54 = arith.constant dense<0.000000e+00> : vector<1xf32>
    %151 = vector.multi_reduction <add>, %150, %cst_54 [1, 2] : vector<1x25x4xf32> to vector<1xf32>
    %152 = vector.shape_cast %151 : vector<1xf32> to vector<1x1x1xf32>
    %153 = vector.extract %152[0, 0, 0] : f32 from vector<1x1x1xf32>
    %154 = vector.broadcast %153 : f32 to vector<1x1xf32>
    %cst_55 = arith.constant 0.000000e+00 : f32
    %155 = vector.broadcast %cst_55 : f32 to vector<1x1xf32>
    %156 = arith.subf %155, %154 : vector<1x1xf32>
    %157 = tpu.concatenate %68, %112, %156 in 1 : vector<1x1xf32>, vector<1x1xf32>, vector<1x1xf32> -> vector<1x3xf32>
    %158 = tpu.concatenate %46, %90, %134 in 1 : vector<1x1xf32>, vector<1x1xf32>, vector<1x1xf32> -> vector<1x3xf32>
    %c1_56 = arith.constant 1 : index
    %c0_57 = arith.constant 0 : index
    %c0_58 = arith.constant 0 : index
    %159 = vector.load %arg2[%c1_56, %c0_57, %c0_58] : memref<2x32x25xf32, #tpu.memory_space<vmem>>, vector<1x32x25xf32>
    %160 = vector.shape_cast %159 : vector<1x32x25xf32> to vector<32x25xf32>
    %cst_59 = arith.constant dense<0.000000e+00> : vector<25x12xf32>
    %161 = tpu.matmul %160, %0, %cst_59 {dimension_numbers = #tpu.dot_dimension_numbers<[0], [0], [1], [1], [0, 1, 1, 1], [], []>} : vector<32x25xf32>, vector<32x12xf32>, vector<25x12xf32> -> vector<25x12xf32>
    %162 = vector.extract_strided_slice %161 {offsets = [0, 0], sizes = [25, 4], strides = [1, 1]} : vector<25x12xf32> to vector<25x4xf32>
    %163 = vector.extract_strided_slice %161 {offsets = [0, 4], sizes = [25, 4], strides = [1, 1]} : vector<25x12xf32> to vector<25x4xf32>
    %164 = vector.extract_strided_slice %161 {offsets = [0, 8], sizes = [25, 4], strides = [1, 1]} : vector<25x12xf32> to vector<25x4xf32>
    %cst_60 = arith.constant dense<0.000000e+00> : vector<25x25xf32>
    %165 = tpu.matmul %162, %5, %cst_60 {dimension_numbers = #tpu.dot_dimension_numbers<[1], [1], [0], [0], [0, 0, 1, 0], [], []>} : vector<25x4xf32>, vector<25x4xf32>, vector<25x25xf32> -> vector<25x25xf32>
    %cst_61 = arith.constant 5.000000e-01 : f32
    %166 = vector.broadcast %cst_61 : f32 to vector<25x25xf32>
    %167 = arith.mulf %165, %166 : vector<25x25xf32>
    %cst_62 = arith.constant dense<0xFF800000> : vector<25xf32>
    %168 = vector.multi_reduction <maximumf>, %167, %cst_62 [1] : vector<25x25xf32> to vector<25xf32>
    %169 = vector.shape_cast %168 : vector<25xf32> to vector<25x1xf32>
    %170 = vector.broadcast %169 : vector<25x1xf32> to vector<25x25xf32>
    %171 = arith.subf %167, %170 : vector<25x25xf32>
    %172 = math.exp %171 : vector<25x25xf32>
    %cst_63 = arith.constant dense<0.000000e+00> : vector<25xf32>
    %173 = vector.multi_reduction <add>, %172, %cst_63 [1] : vector<25x25xf32> to vector<25xf32>
    %174 = vector.shape_cast %173 : vector<25xf32> to vector<25x1xf32>
    %175 = vector.broadcast %174 : vector<25x1xf32> to vector<25x25xf32>
    %176 = arith.divf %172, %175 : vector<25x25xf32>
    %cst_64 = arith.constant dense<0.000000e+00> : vector<25x4xf32>
    %177 = tpu.matmul %176, %6, %cst_64 {dimension_numbers = #tpu.dot_dimension_numbers<[1], [0], [0], [1], [0, 0, 1, 1], [], []>} : vector<25x25xf32>, vector<25x4xf32>, vector<25x4xf32> -> vector<25x4xf32>
    %178 = arith.subf %164, %177 : vector<25x4xf32>
    %179 = arith.mulf %178, %178 : vector<25x4xf32>
    %180 = vector.shape_cast %179 : vector<25x4xf32> to vector<1x25x4xf32>
    %cst_65 = arith.constant dense<0.000000e+00> : vector<1xf32>
    %181 = vector.multi_reduction <add>, %180, %cst_65 [1, 2] : vector<1x25x4xf32> to vector<1xf32>
    %182 = vector.shape_cast %181 : vector<1xf32> to vector<1x1x1xf32>
    %183 = vector.extract %182[0, 0, 0] : f32 from vector<1x1x1xf32>
    %184 = vector.broadcast %183 : f32 to vector<1x1xf32>
    %cst_66 = arith.constant 0.000000e+00 : f32
    %185 = vector.broadcast %cst_66 : f32 to vector<1x1xf32>
    %186 = arith.subf %185, %184 : vector<1x1xf32>
    %cst_67 = arith.constant dense<0.000000e+00> : vector<25x25xf32>
    %187 = tpu.matmul %4, %163, %cst_67 {dimension_numbers = #tpu.dot_dimension_numbers<[1], [1], [0], [0], [0, 0, 1, 0], [], []>} : vector<25x4xf32>, vector<25x4xf32>, vector<25x25xf32> -> vector<25x25xf32>
    %cst_68 = arith.constant 5.000000e-01 : f32
    %188 = vector.broadcast %cst_68 : f32 to vector<25x25xf32>
    %189 = arith.mulf %187, %188 : vector<25x25xf32>
    %cst_69 = arith.constant dense<0xFF800000> : vector<25xf32>
    %190 = vector.multi_reduction <maximumf>, %189, %cst_69 [1] : vector<25x25xf32> to vector<25xf32>
    %191 = vector.shape_cast %190 : vector<25xf32> to vector<25x1xf32>
    %192 = vector.broadcast %191 : vector<25x1xf32> to vector<25x25xf32>
    %193 = arith.subf %189, %192 : vector<25x25xf32>
    %194 = math.exp %193 : vector<25x25xf32>
    %cst_70 = arith.constant dense<0.000000e+00> : vector<25xf32>
    %195 = vector.multi_reduction <add>, %194, %cst_70 [1] : vector<25x25xf32> to vector<25xf32>
    %196 = vector.shape_cast %195 : vector<25xf32> to vector<25x1xf32>
    %197 = vector.broadcast %196 : vector<25x1xf32> to vector<25x25xf32>
    %198 = arith.divf %194, %197 : vector<25x25xf32>
    %cst_71 = arith.constant dense<0.000000e+00> : vector<25x4xf32>
    %199 = tpu.matmul %198, %164, %cst_71 {dimension_numbers = #tpu.dot_dimension_numbers<[1], [0], [0], [1], [0, 0, 1, 1], [], []>} : vector<25x25xf32>, vector<25x4xf32>, vector<25x4xf32> -> vector<25x4xf32>
    %200 = arith.subf %6, %199 : vector<25x4xf32>
    %201 = arith.mulf %200, %200 : vector<25x4xf32>
    %202 = vector.shape_cast %201 : vector<25x4xf32> to vector<1x25x4xf32>
    %cst_72 = arith.constant dense<0.000000e+00> : vector<1xf32>
    %203 = vector.multi_reduction <add>, %202, %cst_72 [1, 2] : vector<1x25x4xf32> to vector<1xf32>
    %204 = vector.shape_cast %203 : vector<1xf32> to vector<1x1x1xf32>
    %205 = vector.extract %204[0, 0, 0] : f32 from vector<1x1x1xf32>
    %206 = vector.broadcast %205 : f32 to vector<1x1xf32>
    %cst_73 = arith.constant 0.000000e+00 : f32
    %207 = vector.broadcast %cst_73 : f32 to vector<1x1xf32>
    %208 = arith.subf %207, %206 : vector<1x1xf32>
    %cst_74 = arith.constant dense<0.000000e+00> : vector<25x25xf32>
    %209 = tpu.matmul %162, %11, %cst_74 {dimension_numbers = #tpu.dot_dimension_numbers<[1], [1], [0], [0], [0, 0, 1, 0], [], []>} : vector<25x4xf32>, vector<25x4xf32>, vector<25x25xf32> -> vector<25x25xf32>
    %cst_75 = arith.constant 5.000000e-01 : f32
    %210 = vector.broadcast %cst_75 : f32 to vector<25x25xf32>
    %211 = arith.mulf %209, %210 : vector<25x25xf32>
    %cst_76 = arith.constant dense<0xFF800000> : vector<25xf32>
    %212 = vector.multi_reduction <maximumf>, %211, %cst_76 [1] : vector<25x25xf32> to vector<25xf32>
    %213 = vector.shape_cast %212 : vector<25xf32> to vector<25x1xf32>
    %214 = vector.broadcast %213 : vector<25x1xf32> to vector<25x25xf32>
    %215 = arith.subf %211, %214 : vector<25x25xf32>
    %216 = math.exp %215 : vector<25x25xf32>
    %cst_77 = arith.constant dense<0.000000e+00> : vector<25xf32>
    %217 = vector.multi_reduction <add>, %216, %cst_77 [1] : vector<25x25xf32> to vector<25xf32>
    %218 = vector.shape_cast %217 : vector<25xf32> to vector<25x1xf32>
    %219 = vector.broadcast %218 : vector<25x1xf32> to vector<25x25xf32>
    %220 = arith.divf %216, %219 : vector<25x25xf32>
    %cst_78 = arith.constant dense<0.000000e+00> : vector<25x4xf32>
    %221 = tpu.matmul %220, %12, %cst_78 {dimension_numbers = #tpu.dot_dimension_numbers<[1], [0], [0], [1], [0, 0, 1, 1], [], []>} : vector<25x25xf32>, vector<25x4xf32>, vector<25x4xf32> -> vector<25x4xf32>
    %222 = arith.subf %164, %221 : vector<25x4xf32>
    %223 = arith.mulf %222, %222 : vector<25x4xf32>
    %224 = vector.shape_cast %223 : vector<25x4xf32> to vector<1x25x4xf32>
    %cst_79 = arith.constant dense<0.000000e+00> : vector<1xf32>
    %225 = vector.multi_reduction <add>, %224, %cst_79 [1, 2] : vector<1x25x4xf32> to vector<1xf32>
    %226 = vector.shape_cast %225 : vector<1xf32> to vector<1x1x1xf32>
    %227 = vector.extract %226[0, 0, 0] : f32 from vector<1x1x1xf32>
    %228 = vector.broadcast %227 : f32 to vector<1x1xf32>
    %cst_80 = arith.constant 0.000000e+00 : f32
    %229 = vector.broadcast %cst_80 : f32 to vector<1x1xf32>
    %230 = arith.subf %229, %228 : vector<1x1xf32>
    %cst_81 = arith.constant dense<0.000000e+00> : vector<25x25xf32>
    %231 = tpu.matmul %10, %163, %cst_81 {dimension_numbers = #tpu.dot_dimension_numbers<[1], [1], [0], [0], [0, 0, 1, 0], [], []>} : vector<25x4xf32>, vector<25x4xf32>, vector<25x25xf32> -> vector<25x25xf32>
    %cst_82 = arith.constant 5.000000e-01 : f32
    %232 = vector.broadcast %cst_82 : f32 to vector<25x25xf32>
    %233 = arith.mulf %231, %232 : vector<25x25xf32>
    %cst_83 = arith.constant dense<0xFF800000> : vector<25xf32>
    %234 = vector.multi_reduction <maximumf>, %233, %cst_83 [1] : vector<25x25xf32> to vector<25xf32>
    %235 = vector.shape_cast %234 : vector<25xf32> to vector<25x1xf32>
    %236 = vector.broadcast %235 : vector<25x1xf32> to vector<25x25xf32>
    %237 = arith.subf %233, %236 : vector<25x25xf32>
    %238 = math.exp %237 : vector<25x25xf32>
    %cst_84 = arith.constant dense<0.000000e+00> : vector<25xf32>
    %239 = vector.multi_reduction <add>, %238, %cst_84 [1] : vector<25x25xf32> to vector<25xf32>
    %240 = vector.shape_cast %239 : vector<25xf32> to vector<25x1xf32>
    %241 = vector.broadcast %240 : vector<25x1xf32> to vector<25x25xf32>
    %242 = arith.divf %238, %241 : vector<25x25xf32>
    %cst_85 = arith.constant dense<0.000000e+00> : vector<25x4xf32>
    %243 = tpu.matmul %242, %164, %cst_85 {dimension_numbers = #tpu.dot_dimension_numbers<[1], [0], [0], [1], [0, 0, 1, 1], [], []>} : vector<25x25xf32>, vector<25x4xf32>, vector<25x4xf32> -> vector<25x4xf32>
    %244 = arith.subf %12, %243 : vector<25x4xf32>
    %245 = arith.mulf %244, %244 : vector<25x4xf32>
    %246 = vector.shape_cast %245 : vector<25x4xf32> to vector<1x25x4xf32>
    %cst_86 = arith.constant dense<0.000000e+00> : vector<1xf32>
    %247 = vector.multi_reduction <add>, %246, %cst_86 [1, 2] : vector<1x25x4xf32> to vector<1xf32>
    %248 = vector.shape_cast %247 : vector<1xf32> to vector<1x1x1xf32>
    %249 = vector.extract %248[0, 0, 0] : f32 from vector<1x1x1xf32>
    %250 = vector.broadcast %249 : f32 to vector<1x1xf32>
    %cst_87 = arith.constant 0.000000e+00 : f32
    %251 = vector.broadcast %cst_87 : f32 to vector<1x1xf32>
    %252 = arith.subf %251, %250 : vector<1x1xf32>
    %cst_88 = arith.constant dense<0.000000e+00> : vector<25x25xf32>
    %253 = tpu.matmul %162, %17, %cst_88 {dimension_numbers = #tpu.dot_dimension_numbers<[1], [1], [0], [0], [0, 0, 1, 0], [], []>} : vector<25x4xf32>, vector<25x4xf32>, vector<25x25xf32> -> vector<25x25xf32>
    %cst_89 = arith.constant 5.000000e-01 : f32
    %254 = vector.broadcast %cst_89 : f32 to vector<25x25xf32>
    %255 = arith.mulf %253, %254 : vector<25x25xf32>
    %cst_90 = arith.constant dense<0xFF800000> : vector<25xf32>
    %256 = vector.multi_reduction <maximumf>, %255, %cst_90 [1] : vector<25x25xf32> to vector<25xf32>
    %257 = vector.shape_cast %256 : vector<25xf32> to vector<25x1xf32>
    %258 = vector.broadcast %257 : vector<25x1xf32> to vector<25x25xf32>
    %259 = arith.subf %255, %258 : vector<25x25xf32>
    %260 = math.exp %259 : vector<25x25xf32>
    %cst_91 = arith.constant dense<0.000000e+00> : vector<25xf32>
    %261 = vector.multi_reduction <add>, %260, %cst_91 [1] : vector<25x25xf32> to vector<25xf32>
    %262 = vector.shape_cast %261 : vector<25xf32> to vector<25x1xf32>
    %263 = vector.broadcast %262 : vector<25x1xf32> to vector<25x25xf32>
    %264 = arith.divf %260, %263 : vector<25x25xf32>
    %cst_92 = arith.constant dense<0.000000e+00> : vector<25x4xf32>
    %265 = tpu.matmul %264, %18, %cst_92 {dimension_numbers = #tpu.dot_dimension_numbers<[1], [0], [0], [1], [0, 0, 1, 1], [], []>} : vector<25x25xf32>, vector<25x4xf32>, vector<25x4xf32> -> vector<25x4xf32>
    %266 = arith.subf %164, %265 : vector<25x4xf32>
    %267 = arith.mulf %266, %266 : vector<25x4xf32>
    %268 = vector.shape_cast %267 : vector<25x4xf32> to vector<1x25x4xf32>
    %cst_93 = arith.constant dense<0.000000e+00> : vector<1xf32>
    %269 = vector.multi_reduction <add>, %268, %cst_93 [1, 2] : vector<1x25x4xf32> to vector<1xf32>
    %270 = vector.shape_cast %269 : vector<1xf32> to vector<1x1x1xf32>
    %271 = vector.extract %270[0, 0, 0] : f32 from vector<1x1x1xf32>
    %272 = vector.broadcast %271 : f32 to vector<1x1xf32>
    %cst_94 = arith.constant 0.000000e+00 : f32
    %273 = vector.broadcast %cst_94 : f32 to vector<1x1xf32>
    %274 = arith.subf %273, %272 : vector<1x1xf32>
    %cst_95 = arith.constant dense<0.000000e+00> : vector<25x25xf32>
    %275 = tpu.matmul %16, %163, %cst_95 {dimension_numbers = #tpu.dot_dimension_numbers<[1], [1], [0], [0], [0, 0, 1, 0], [], []>} : vector<25x4xf32>, vector<25x4xf32>, vector<25x25xf32> -> vector<25x25xf32>
    %cst_96 = arith.constant 5.000000e-01 : f32
    %276 = vector.broadcast %cst_96 : f32 to vector<25x25xf32>
    %277 = arith.mulf %275, %276 : vector<25x25xf32>
    %cst_97 = arith.constant dense<0xFF800000> : vector<25xf32>
    %278 = vector.multi_reduction <maximumf>, %277, %cst_97 [1] : vector<25x25xf32> to vector<25xf32>
    %279 = vector.shape_cast %278 : vector<25xf32> to vector<25x1xf32>
    %280 = vector.broadcast %279 : vector<25x1xf32> to vector<25x25xf32>
    %281 = arith.subf %277, %280 : vector<25x25xf32>
    %282 = math.exp %281 : vector<25x25xf32>
    %cst_98 = arith.constant dense<0.000000e+00> : vector<25xf32>
    %283 = vector.multi_reduction <add>, %282, %cst_98 [1] : vector<25x25xf32> to vector<25xf32>
    %284 = vector.shape_cast %283 : vector<25xf32> to vector<25x1xf32>
    %285 = vector.broadcast %284 : vector<25x1xf32> to vector<25x25xf32>
    %286 = arith.divf %282, %285 : vector<25x25xf32>
    %cst_99 = arith.constant dense<0.000000e+00> : vector<25x4xf32>
    %287 = tpu.matmul %286, %164, %cst_99 {dimension_numbers = #tpu.dot_dimension_numbers<[1], [0], [0], [1], [0, 0, 1, 1], [], []>} : vector<25x25xf32>, vector<25x4xf32>, vector<25x4xf32> -> vector<25x4xf32>
    %288 = arith.subf %18, %287 : vector<25x4xf32>
    %289 = arith.mulf %288, %288 : vector<25x4xf32>
    %290 = vector.shape_cast %289 : vector<25x4xf32> to vector<1x25x4xf32>
    %cst_100 = arith.constant dense<0.000000e+00> : vector<1xf32>
    %291 = vector.multi_reduction <add>, %290, %cst_100 [1, 2] : vector<1x25x4xf32> to vector<1xf32>
    %292 = vector.shape_cast %291 : vector<1xf32> to vector<1x1x1xf32>
    %293 = vector.extract %292[0, 0, 0] : f32 from vector<1x1x1xf32>
    %294 = vector.broadcast %293 : f32 to vector<1x1xf32>
    %cst_101 = arith.constant 0.000000e+00 : f32
    %295 = vector.broadcast %cst_101 : f32 to vector<1x1xf32>
    %296 = arith.subf %295, %294 : vector<1x1xf32>
    %297 = tpu.concatenate %208, %252, %296 in 1 : vector<1x1xf32>, vector<1x1xf32>, vector<1x1xf32> -> vector<1x3xf32>
    %298 = tpu.concatenate %186, %230, %274 in 1 : vector<1x1xf32>, vector<1x1xf32>, vector<1x1xf32> -> vector<1x3xf32>
    %299 = tpu.concatenate %157, %297 in 0 : vector<1x3xf32>, vector<1x3xf32> -> vector<2x3xf32>
    %c0_102 = arith.constant 0 : index
    %c0_103 = arith.constant 0 : index
    %c0_104 = arith.constant 0 : index
    %300 = vector.load %arg4[%c0_102, %c0_103, %c0_104] : memref<2x2x3xf32, #tpu.memory_space<vmem>>, vector<1x2x3xf32>
    %301 = vector.shape_cast %300 : vector<1x2x3xf32> to vector<2x3xf32>
    %302 = vector.shape_cast %299 : vector<2x3xf32> to vector<1x2x3xf32>
    tpu.vector_store %arg4[%c0_102, %c0_103, %c0_104], %302 {strides = array<i32>} : memref<2x2x3xf32, #tpu.memory_space<vmem>>, vector<1x2x3xf32>,
    %303 = tpu.concatenate %158, %298 in 0 : vector<1x3xf32>, vector<1x3xf32> -> vector<2x3xf32>
    %c1_105 = arith.constant 1 : index
    %c0_106 = arith.constant 0 : index
    %c0_107 = arith.constant 0 : index
    %304 = vector.load %arg4[%c1_105, %c0_106, %c0_107] : memref<2x2x3xf32, #tpu.memory_space<vmem>>, vector<1x2x3xf32>
    %305 = vector.shape_cast %304 : vector<1x2x3xf32> to vector<2x3xf32>
    %306 = vector.shape_cast %303 : vector<2x3xf32> to vector<1x2x3xf32>
    tpu.vector_store %arg4[%c1_105, %c0_106, %c0_107], %306 {strides = array<i32>} : memref<2x2x3xf32, #tpu.memory_space<vmem>>, vector<1x2x3xf32>,
    return
  }
  func.func @transform_0(%arg0: i32) -> (i32, i32, i32) {
    %c0_i32 = arith.constant 0 : i32
    %c0_i32_0 = arith.constant 0 : i32
    %c0_i32_1 = arith.constant 0 : i32
    %c0_i32_2 = arith.constant 0 : i32
    return %c0_i32, %c0_i32_0, %c0_i32_1 : i32, i32, i32
  }
  func.func @transform_1(%arg0: i32) -> (i32, i32, i32) {
    %c0_i32 = arith.constant 0 : i32
    %c0_i32_0 = arith.constant 0 : i32
    %c0_i32_1 = arith.constant 0 : i32
    %c0_i32_2 = arith.constant 0 : i32
    return %c0_i32, %c0_i32_0, %c0_i32_1 : i32, i32, i32
  }
  func.func @transform_2(%arg0: i32) -> (i32, i32) {
    %c0_i32 = arith.constant 0 : i32
    %c0_i32_0 = arith.constant 0 : i32
    %c0_i32_1 = arith.constant 0 : i32
    return %c0_i32, %c0_i32_0 : i32, i32
  }
  func.func @transform_3(%arg0: i32) -> (i32, i32, i32) {
    %c0_i32 = arith.constant 0 : i32
    %c0_i32_0 = arith.constant 0 : i32
    %c0_i32_1 = arith.constant 0 : i32
    %c0_i32_2 = arith.constant 0 : i32
    return %c0_i32, %c0_i32_0, %c0_i32_1 : i32, i32, i32
  }
}

</mosaic_0001>

<bundles_post_ra>
// kernel: sqil_forward.1
= control target key start
LH: loop header
LB: loop body
LE: loop exit
PB: predicated region body
PF: predicated region fallthrough
CT: control target
= control target key end

     0   :  { %vm54_vm0 = vcmask 261120   ;;  %s5831_s16 = smov 124   ;;  %vm565_vm1 = vcmask 31744   ;;  %vm675_vm3 = vcmask 203776   ;;  %vm685_vm4 = vcmask 196608   ;;  %s6976_s0 = inlined_call_operand.vmem [shape: f32[3,32,25], index: 0, kind: input, shape index: {}]   ;;  %s6977_s2 = inlined_call_operand.vmem [shape: f32[32,12], index: 2, kind: input, shape index: {}]   ;;  %s6978_s1 = inlined_call_operand.vmem [shape: f32[2,32,25], index: 1, kind: input, shape index: {}]   ;;  %s6979_s3 = inlined_call_operand.vmem [shape: f32[2,2,3], index: 3, kind: output, shape index: {}]  }
   0x1   :  { %v18_v0 = vld [vmem:[%s6976_s0] sm:$0xff]  ;;  %v15_v2 = vld [vmem:[%s6977_s2 + $0x8] sm:$0xff]  ;;  %v16_v5 = vld [vmem:[%s6977_s2 + $0x10] sm:$0xff]  ;;  %vm744_vm5 = vcmask 1040384   ;;  %vm5833_vm6 = vmmov 1   ;;  %vm877_vm8 = vcmask 24576  }
   0x2   :  { %22 = vxpose.xlu0.b32.start [1/4] (short) (narrow) %v18_v0, 32  ;;  %v14_v1 = vld [vmem:[%s6977_s2] sm:$0xff]  ;;  %v19_v3 = vld [vmem:[%s6976_s0 + $0x8] sm:$0xff]  ;;  %v17_v6 = vld [vmem:[%s6977_s2 + $0x18] sm:$0xff]  ;;  %vm2450_vm9 = vcmask 7168   ;;  %vm2452_vm10 = vcmask 15360  }
   0x3   :  { %v5867_v4 = vpack.c.bf16 %v15_v2, %v14_v1  ;;  %v5875_v7 = vpack.c.bf16 %v17_v6, %v16_v5  ;;  %v20_v8 = vld [vmem:[%s6976_s0 + $0x10] sm:$0xff]  ;;  %v4383_v9 = vld [vmem:[%s6976_s0 + $0x20] sm:$0xff]  ;;  %v4384_v10 = vld [vmem:[%s6976_s0 + $0x28] sm:$0xff]  ;;  %vm4367_vm11 = vcmask 17408  }
   0x4   :  { %157 = vxpose.xlu1.b32.start [1/4] (short) (narrow) %v4383_v9, 32  ;;  %v21_v11 = vld [vmem:[%s6976_s0 + $0x18] sm:$0xff]  ;;  %v4385_v12 = vld [vmem:[%s6976_s0 + $0x30] sm:$0xff]  ;;  %v420_v13 = vld [vmem:[%s6978_s1] sm:$0xff] }
   0x5   :  { %5207 = vmatprep.subr.bf16.mxu0 %v5867_v4  ;;  %5215 = vmatprep.subr.bf16.mxu1 %v5867_v4  ;;  %v4386_v14 = vld [vmem:[%s6976_s0 + $0x38] sm:$0xff]  ;;  %v421_v15 = vld [vmem:[%s6978_s1 + $0x8] sm:$0xff]  ;;  %v422_v16 = vld [vmem:[%s6978_s1 + $0x10] sm:$0xff] }
   0x6   :  { %23 = vxpose.xlu0.b32.cont [2/4] (short) (narrow) %v19_v3, 32  ;;  %5209 = vmatpush3.bf16.msra.mxu0 %v5867_v4  ;;  %v423_v17 = vld [vmem:[%s6978_s1 + $0x18] sm:$0xff]  ;;  %v4391_v36 = vld [vmem:[%s6976_s0 + $0x40] sm:$0xff]  ;;  %v4392_v37 = vld [vmem:[%s6976_s0 + $0x48] sm:$0xff] }
   0x7   :  { %5211 = vmatprep.subr.bf16.mxu0 %v5875_v7  ;;  %5217 = vmatpush3.bf16.msra.mxu1 %v5867_v4  ;;  %v4393_v40 = vld [vmem:[%s6976_s0 + $0x50] sm:$0xff]  ;;  %v4394_v42 = vld [vmem:[%s6976_s0 + $0x58] sm:$0xff]  ;;  %vm6001_vm2 = vmpackc.low %vm565_vm1, %vm565_vm1  ;;  %s5832_s0 = smov 120  }
   0x8   :  { %5219 = vmatprep.subr.bf16.mxu1 %v5875_v7  ;;  %158 = vxpose.xlu1.b32.cont [2/4] (short) (narrow) %v4384_v10, 32  ;;  %vm6063_vm7 = vmpackc.low %vm744_vm5, %vm5833_vm6 }
   0xa   :  { %24 = vxpose.xlu0.b32.cont [3/4] (short) (narrow) %v20_v8, 32  ;;  %5213 = vmatpush3.bf16.msra.mxu0 %v5875_v7 }
   0xb   :  { %5221 = vmatpush3.bf16.msra.mxu1 %v5875_v7  ;;  %5223 = vmatprep.subr.bf16.mxu0 %v5867_v4 }
   0xc   :  { %5231 = vmatprep.subr.bf16.mxu1 %v5867_v4  ;;  %159 = vxpose.xlu1.b32.cont [3/4] (short) (narrow) %v4385_v12, 32 }
   0xe   :  { %25 = vxpose.xlu0.b32.end [4/4] (short) (narrow) %v21_v11, 32 }
  0x10   :  { %160 = vxpose.xlu1.b32.end [4/4] (short) (narrow) %v4386_v14, 32 }
  0x12   :  { %424 = vxpose.xlu0.b32.start [1/4] (short) (narrow) %v420_v13, 32 }
  0x16   :  { %425 = vxpose.xlu0.b32.cont [2/4] (short) (narrow) %v421_v15, 32 }
  0x1a   :  { %426 = vxpose.xlu0.b32.cont [3/4] (short) (narrow) %v422_v16, 32 }
  0x1e   :  { %427 = vxpose.xlu0.b32.end [4/4] (short) (narrow) %v423_v17, 32 }
  0x82   :  { %v38_v18 = vpop.trf.xlu0 }
  0x83   :  { %4808 = vmatprep.mubr.msk.f32.mxu0 %vm54_vm0, %v38_v18 }
  0x84   :  { %v173_v20 = vpop.trf.xlu1 }
  0x85   :  { %4822 = vmatprep.mubr.msk.f32.mxu1 %vm54_vm0, %v173_v20 }
  0x86   :  { %v39_v19 = vpop.trf.xlu0 }
  0x87   :  { %4809 = vmatmul.mubr.msk.f32.vlgmr.msra.gmra.mrb[0].mxu0 %vm54_vm0, %v39_v19 }
  0x88   :  { %5225 = vmatpush3.bf16.msra.mxu0 %v5867_v4  ;;  %v174_v22 = vpop.trf.xlu1 }
  0x89   :  { %5227 = vmatprep.subr.bf16.mxu0 %v5875_v7  ;;  %4823 = vmatmul.mubr.msk.f32.vlgmr.msra.gmra.mrb[0].mxu1 %vm54_vm0, %v174_v22 }
  0x8a   :  { %v40_v21 = vpop.trf.xlu0  ;;  %5233 = vmatpush3.bf16.msra.mxu1 %v5867_v4 }
  0x8b   :  { %4811 = vmatprep.mubr.msk.f32.mxu0 %vm54_vm0, %v40_v21  ;;  %5235 = vmatprep.subr.bf16.mxu1 %v5875_v7 }
  0x8c   :  { %5229 = vmatpush3.bf16.msra.mxu0 %v5875_v7  ;;  %v175_v24 = vpop.trf.xlu1 }
  0x8d   :  { %4825 = vmatprep.mubr.msk.f32.mxu1 %vm54_vm0, %v175_v24 }
  0x8e   :  { %v41_v23 = vpop.trf.xlu0  ;;  %5237 = vmatpush3.bf16.msra.mxu1 %v5875_v7 }
  0x8f   :  { %4812 = vmatmul.mubr.msk.f32.gmra.mrb[2].mxu0 %vm54_vm0, %v41_v23 }
  0x90   :  { %v176_v26 = vpop.trf.xlu1 }
  0x91   :  { %4826 = vmatmul.mubr.msk.f32.gmra.mrb[2].mxu1 %vm54_vm0, %v176_v26 }
  0x92   :  { %v440_v25 = vpop.trf.xlu0 }
  0x93   :  { %4850 = vmatprep.mubr.msk.f32.mxu1 %vm54_vm0, %v440_v25 }
  0x96   :  { %v441_v27 = vpop.trf.xlu0 }
  0x97   :  { %4851 = vmatmul.mubr.msk.f32.vlgmr.msra.gmra.mrb[4].mxu1 %vm54_vm0, %v441_v27 }
  0x9a   :  { %v442_v28 = vpop.trf.xlu0 }
  0x9b   :  { %4853 = vmatprep.mubr.msk.f32.mxu1 %vm54_vm0, %v442_v28 }
  0x9e   :  { %v443_v29 = vpop.trf.xlu0 }
  0x9f   :  { %4854 = vmatmul.mubr.msk.f32.gmra.mrb[6].mxu1 %vm54_vm0, %v443_v29 }
 0x15a   :  { %v5935_v30 = vpop.f32.mrb[0].mxu0 }
 0x15b   :  { %v5937_v31 = vpop.f32.mrb[1].mxu0 }
 0x15c   :  { %v5941_v32 = vpack.i.bf16 %v5935_v30, %v5937_v31  ;;  %v5961_v38 = vpop.f32.mrb[0].mxu1 }
 0x15d   :  { %v5963_v39 = vpop.f32.mrb[1].mxu1 }
 0x15e   :  { %5540 = vrot.lane.b32.xlu1 %v5941_v32, %s5831_s16  ;;  %v5977_v44 = vpack.i.bf16 %v5961_v38, %v5963_v39 }
 0x162   :  { %v5945_v33 = vpop.f32.mrb[2].mxu0 }
 0x163   :  { %v5947_v34 = vpop.f32.mrb[3].mxu0 }
 0x164   :  { %v5951_v35 = vpack.i.bf16 %v5945_v33, %v5947_v34  ;;  %v5968_v41 = vpop.f32.mrb[2].mxu1 }
 0x165   :  { %6984 = vst [vmem:[#allocation2_spill] sm:$0xff] %v5968_v41  ;;  %v5973_v43 = vpop.f32.mrb[3].mxu1 }
 0x166   :  { %5545 = vrot.lane.b32.xlu0 %v5951_v35, %s5831_s16  ;;  %6985 = vst [vmem:[#allocation3_spill] sm:$0xff] %v5973_v43  ;;  %v5989_v48 = vpack.i.bf16 %v5968_v41, %v5973_v43 }
 0x16a   :  { %v5979_v45 = vpop.f32.mrb[4].mxu1 }
 0x16b   :  { %v5981_v46 = vpop.f32.mrb[5].mxu1 }
 0x16c   :  { %v5985_v47 = vpack.i.bf16 %v5979_v45, %v5981_v46 }
 0x172   :  { %v5991_v49 = vpop.f32.mrb[6].mxu1 }
 0x173   :  { %v5993_v50 = vpop.f32.mrb[7].mxu1 }
 0x174   :  { %v5997_v51 = vpack.i.bf16 %v5991_v49, %v5993_v50 }
 0x187   :  { %291 = vxpose.xlu1.b32.start [1/4] (short) (narrow) %v4391_v36, 32 }
 0x18b   :  { %292 = vxpose.xlu1.b32.cont [2/4] (short) (narrow) %v4392_v37, 32 }
 0x18f   :  { %293 = vxpose.xlu1.b32.cont [3/4] (short) (narrow) %v4393_v40, 32 }
 0x193   :  { %294 = vxpose.xlu1.b32.end [4/4] (short) (narrow) %v4394_v42, 32 }
 0x1d0   :  { %v5541_v52 = vpop.permute.xlu1 %5540 }
 0x1d1   :  { %v5543_v53 = vunpack.i.h.bf16 %v5541_v52  ;;  %v5542_v54 = vunpack.i.l.bf16 %v5541_v52 }
 0x1d3   :  { %v6005_v56 = vpack.c.bf16 %v5543_v53, %v5542_v54 }
 0x1d5   :  { %5240 = vmatprep.subr.msk.bf16.mxu0 %vm6001_vm2, %v6005_v56 }
 0x1d8   :  { %v5546_v57 = vpop.permute.xlu0 %5545 }
 0x1d9   :  { %v5548_v58 = vunpack.i.h.bf16 %v5546_v57  ;;  %v5547_v59 = vunpack.i.l.bf16 %v5546_v57 }
 0x1db   :  { %v6011_v61 = vpack.c.bf16 %v5548_v58, %v5547_v59 }
 0x207   :  { %v307_v60 = vpop.trf.xlu1 }
 0x208   :  { %4836 = vmatprep.mubr.msk.f32.mxu0 %vm54_vm0, %v307_v60 }
 0x20b   :  { %v308_v62 = vpop.trf.xlu1 }
 0x20c   :  { %4837 = vmatmul.mubr.msk.f32.vlgmr.msra.gmra.mrb[4].mxu0 %vm54_vm0, %v308_v62 }
 0x20d   :  { %5243 = vmatpush3.bf16.xpose.msk.msra.mxu0 %vm6001_vm2, %v6005_v56 }
 0x20e   :  { %5246 = vmatprep.subr.msk.bf16.mxu0 %vm6001_vm2, %v6011_v61 }
 0x20f   :  { %v309_v63 = vpop.trf.xlu1 }
 0x210   :  { %4839 = vmatprep.mubr.msk.f32.mxu0 %vm54_vm0, %v309_v63 }
 0x213   :  { %v310_v0 = vpop.trf.xlu1 }
 0x214   :  { %4840 = vmatmul.mubr.msk.f32.gmra.mrb[6].mxu0 %vm54_vm0, %v310_v0 }
 0x215   :  { %5249 = vmatpush3.bf16.xpose.msk.msra.mxu0 %vm6001_vm2, %v6011_v61  ;;  %4864 = vmatprep.mubr.msk.f32.mxu0 %vm565_vm1, %v5981_v46 }
 0x21c   :  { %4865 = vmatmul.mubr.msk.f32.vlgmr.msra.gmra.mrb[8].mxu0 %vm565_vm1, %v5979_v45 }
 0x21d   :  { %4867 = vmatprep.mubr.msk.f32.mxu0 %vm565_vm1, %v5993_v50 }
 0x220   :  { %4868 = vmatmul.mubr.msk.f32.gmra.mrb[10].mxu0 %vm565_vm1, %v5991_v49 }
 0x2df   :  { %v6033_v1 = vpop.f32.mrb[4].mxu0 }
 0x2e0   :  { %v6035_v2 = vpop.f32.mrb[5].mxu0 }
 0x2e1   :  { %v6039_v3 = vpack.i.bf16 %v6033_v1, %v6035_v2 }
 0x2e7   :  { %v6041_v5 = vpop.f32.mrb[6].mxu0 }
 0x2e8   :  { %v6043_v6 = vpop.f32.mrb[7].mxu0 }
 0x2e9   :  { %v6047_v8 = vpack.i.bf16 %v6041_v5, %v6043_v6 }
 0x2ef   :  { %v4866_v9 = vpop.f32.mrb[8].mxu0 }
 0x2f0   :  { %v672_v10 = vmul.f32 0.5, %v4866_v9  ;;  %v652_v11 = vpop.f32.mrb[9].mxu0 }
 0x2f1   :  { %v671_v12 = vmul.f32 0.5, %v652_v11 }
 0x2f2   :  { %v679_v13 = vsel %vm675_vm3, %v672_v10, -inf }
 0x2f3   :  { %680 = vmax.xlane.f32.xlu1 %v679_v13  ;;  %v4869_v14 = vpop.f32.mrb[10].mxu0  ;;  %v676_v15 = vsel %vm675_vm3, %v671_v12, -inf }
 0x2f4   :  { %677 = vmax.xlane.f32.xlu0 %v676_v15  ;;  %v662_v16 = vpop.f32.mrb[11].mxu0  ;;  %v674_v18 = vmul.f32 0.5, %v4869_v14 }
 0x2f5   :  { %v673_v17 = vmul.f32 0.5, %v662_v16 }
 0x2f6   :  { %v686_v20 = vsel %vm685_vm4, %v674_v18, -inf }
 0x2f7   :  { %v682_v19 = vsel %vm675_vm3, %v673_v17, -inf }
 0x2f8   :  { %683 = vmax.xlane.f32.xlu0 %v682_v19 }
 0x2fc   :  { %687 = vmax.xlane.f32.xlu0 %v686_v20 }
 0x304   :  { %5555 = vrot.lane.b32.xlu1 %v5951_v35, %s5832_s0 }
 0x312   :  { %5550 = vrot.lane.b32.xlu0 %v5941_v32, %s5832_s0 }
 0x316   :  { %5560 = vrot.lane.b32.xlu0 %v5985_v47, %s5831_s16 }
 0x380   :  { %v681_v21 = vpop.xlane.xlu1 %680 }
 0x381   :  { %v690_v22 = vsub.f32 %v672_v10, %v681_v21  ;;  %v678_v23 = vpop.xlane.xlu0 %677 }
 0x382   :  { %v689_v24 = vsub.f32 %v671_v12, %v678_v23 }
 0x383   :  { %v695_v25 = vmul.f32 1.442695, %v690_v22 }
 0x384   :  { %v693_v26 = vmul.f32 1.442695, %v689_v24  ;;  %v5556_v36 = vpop.permute.xlu1 %5555 }
 0x385   :  { %5639 = vpow2.f32 %v695_v25  ;;  %v684_v27 = vpop.xlane.xlu0 %683  ;;  %v5558_v42 = vunpack.i.h.bf16 %v5556_v36  ;;  %v5557_v52 = vunpack.i.l.bf16 %v5556_v36 }
 0x386   :  { %5641 = vpow2.f32 %v693_v26  ;;  %v691_v28 = vsub.f32 %v673_v17, %v684_v27 }
 0x387   :  { %v6067_v0 = vpack.c.bf16 %v5558_v42, %v5557_v52 }
 0x388   :  { %v697_v35 = vmul.f32 1.442695, %v691_v28 }
 0x389   :  { %v688_v29 = vpop.xlane.xlu0 %687 }
 0x38a   :  { %v692_v37 = vsub.f32 %v674_v18, %v688_v29 }
 0x38c   :  { %v699_v40 = vmul.f32 1.442695, %v692_v37 }
 0x38d   :  { %v5551_v32 = vpop.permute.xlu0 %5550 }
 0x38e   :  { %5643 = vpow2.f32 %v699_v40  ;;  %v5553_v53 = vunpack.i.h.bf16 %v5551_v32  ;;  %v5552_v54 = vunpack.i.l.bf16 %v5551_v32 }
 0x38f   :  { %v5640_v57 = vpop.eup %5639  ;;  %5645 = vpow2.f32 %v697_v35 }
 0x390   :  { %v6059_v58 = vpack.c.bf16 %v5553_v53, %v5552_v54  ;;  %v704_v59 = vsel %vm675_vm3, %v5640_v57, 0.0  ;;  %v5642_v60 = vpop.eup %5641 }
 0x391   :  { %705 = vadd.xlane.f32.xlu0 %v704_v59  ;;  %v5561_v62 = vpop.permute.xlu0 %5560  ;;  %v701_v11 = vsel %vm675_vm3, %v5642_v60, 0.0 }
 0x392   :  { %v5563_v9 = vunpack.i.h.bf16 %v5561_v62  ;;  %v5562_v10 = vunpack.i.l.bf16 %v5561_v62  ;;  %5251 = vmatprep.subr.bf16.mxu1 %v6059_v58 }
 0x393   :  { %5253 = vmatpush3.bf16.msra.mxu1 %v6059_v58 }
 0x394   :  { %5256 = vmatprep.subr.msk.bf16.mxu1 %vm6063_vm7, %v6067_v0  ;;  %v6075_v12 = vpack.c.bf16 %v5563_v9, %v5562_v10 }
 0x395   :  { %702 = vadd.xlane.f32.xlu0 %v701_v11 }
 0x397   :  { %5259 = vmatpush3.bf16.msk.msra.mxu1 %vm6063_vm7, %v6067_v0 }
 0x398   :  { %v5644_v13 = vpop.eup %5643  ;;  %5262 = vmatprep.subr.msk.bf16.mxu1 %vm6001_vm2, %v6075_v12 }
 0x399   :  { %v710_v14 = vsel %vm685_vm4, %v5644_v13, 0.0  ;;  %v5646_v15 = vpop.eup %5645 }
 0x39a   :  { %711 = vadd.xlane.f32.xlu0 %v710_v14  ;;  %v707_v16 = vsel %vm675_vm3, %v5646_v15, 0.0 }
 0x39e   :  { %708 = vadd.xlane.f32.xlu0 %v707_v16 }
 0x3b4   :  { %5565 = vrot.lane.b32.xlu0 %v5997_v51, %s5831_s16 }
 0x41e   :  { %v706_v17 = vpop.xlane.xlu0 %705 }
 0x41f   :  { %5647 = vrcp.f32 %v706_v17 }
 0x422   :  { %v703_v18 = vpop.xlane.xlu0 %702 }
 0x423   :  { %5649 = vrcp.f32 %v703_v18 }
 0x427   :  { %v712_v19 = vpop.xlane.xlu0 %711 }
 0x428   :  { %5651 = vrcp.f32 %v712_v19 }
 0x429   :  { %v5648_v21 = vpop.eup %5647 }
 0x42a   :  { %v716_v24 = vmul.f32 %v5648_v21, %v5640_v57 }
 0x42b   :  { %v709_v20 = vpop.xlane.xlu0 %708 }
 0x42c   :  { %5653 = vrcp.f32 %v709_v20 }
 0x42d   :  { %v5650_v22 = vpop.eup %5649 }
 0x42e   :  { %v714_v23 = vmul.f32 %v5650_v22, %v5642_v60 }
 0x42f   :  { %v5566_v25 = vpop.permute.xlu0 %5565 }
 0x430   :  { %v5568_v26 = vunpack.i.h.bf16 %v5566_v25  ;;  %v5567_v27 = vunpack.i.l.bf16 %v5566_v25  ;;  %4878 = vmatprep.mubr.msk.f32.mxu1 %vm675_vm3, %v714_v23 }
 0x431   :  { %4879 = vmatmul.mubr.msk.f32.vlgmr.msra.gmra.mrb[8].mxu1 %vm675_vm3, %v716_v24 }
 0x432   :  { %v6089_v28 = vpack.c.bf16 %v5568_v26, %v5567_v27  ;;  %5265 = vmatpush3.bf16.xpose.msk.msra.mxu1 %vm6001_vm2, %v6075_v12  ;;  %v5652_v29 = vpop.eup %5651 }
 0x433   :  { %v720_v35 = vmul.f32 %v5652_v29, %v5644_v13 }
 0x434   :  { %5268 = vmatprep.subr.msk.bf16.mxu1 %vm6001_vm2, %v6089_v28 }
 0x436   :  { %v5654_v36 = vpop.eup %5653 }
 0x437   :  { %v718_v37 = vmul.f32 %v5654_v36, %v5646_v15 }
 0x439   :  { %4881 = vmatprep.mubr.msk.f32.mxu1 %vm675_vm3, %v718_v37 }
 0x43a   :  { %5271 = vmatpush3.bf16.xpose.msk.msra.mxu1 %vm6001_vm2, %v6089_v28 }
 0x43b   :  { %4882 = vmatmul.mubr.msk.f32.gmra.mrb[10].mxu1 %vm675_vm3, %v720_v35 }
 0x43c   :  { %4892 = vmatprep.mubr.msk.f32.mxu1 %vm565_vm1, %v5937_v31 }
 0x441   :  { %4893 = vmatmul.mubr.msk.f32.vlgmr.msra.gmra.mrb[12].mxu1 %vm565_vm1, %v5935_v30 }
 0x442   :  { %4895 = vmatprep.mubr.msk.f32.mxu1 %vm565_vm1, %v5947_v34 }
 0x445   :  { %4896 = vmatmul.mubr.msk.f32.gmra.mrb[14].mxu1 %vm565_vm1, %v5945_v33 }
 0x504   :  { %v6110_v40 = vpop.f32.mrb[8].mxu1 }
 0x505   :  { %v6112_v42 = vpop.f32.mrb[9].mxu1 }
 0x50e   :  { %v6114_v32 = vpop.f32.mrb[10].mxu1 }
 0x50f   :  { %v6116_v52 = vpop.f32.mrb[11].mxu1 }
 0x514   :  { %v4894_v53 = vpop.f32.mrb[12].mxu1 }
 0x515   :  { %v1001_v54 = vmul.f32 0.5, %v4894_v53  ;;  %v981_v57 = vpop.f32.mrb[13].mxu1 }
 0x516   :  { %v1000_v59 = vmul.f32 0.5, %v981_v57 }
 0x517   :  { %v1007_v60 = vsel %vm675_vm3, %v1001_v54, -inf }
 0x518   :  { %1008 = vmax.xlane.f32.xlu0 %v1007_v60  ;;  %v4897_v62 = vpop.f32.mrb[14].mxu1  ;;  %v1004_v9 = vsel %vm675_vm3, %v1000_v59, -inf }
 0x519   :  { %v1003_v10 = vmul.f32 0.5, %v4897_v62  ;;  %1005 = vmax.xlane.f32.xlu1 %v1004_v9  ;;  %v991_v11 = vpop.f32.mrb[15].mxu1 }
 0x51a   :  { %v1002_v13 = vmul.f32 0.5, %v991_v11 }
 0x51b   :  { %v1013_v14 = vsel %vm685_vm4, %v1003_v10, -inf }
 0x51c   :  { %v1010_v15 = vsel %vm675_vm3, %v1002_v13, -inf }
 0x51d   :  { %1014 = vmax.xlane.f32.xlu1 %v1013_v14  ;;  %1011 = vmax.xlane.f32.xlu0 %v1010_v15 }
 0x52e   :  { %5575 = vrot.lane.b32.xlu1 %v5997_v51, %s5832_s0 }
 0x533   :  { %5570 = vrot.lane.b32.xlu0 %v5985_v47, %s5832_s0 }
 0x5a5   :  { %v1009_v16 = vpop.xlane.xlu0 %1008 }
 0x5a6   :  { %v1017_v17 = vsub.f32 %v1001_v54, %v1009_v16  ;;  %v1006_v18 = vpop.xlane.xlu1 %1005 }
 0x5a7   :  { %v1016_v19 = vsub.f32 %v1000_v59, %v1006_v18 }
 0x5a8   :  { %v1022_v20 = vmul.f32 1.442695, %v1017_v17 }
 0x5a9   :  { %v1020_v21 = vmul.f32 1.442695, %v1016_v19 }
 0x5aa   :  { %5655 = vpow2.f32 %v1022_v20  ;;  %v1015_v22 = vpop.xlane.xlu1 %1014  ;;  %v1012_v23 = vpop.xlane.xlu0 %1011 }
 0x5ab   :  { %5657 = vpow2.f32 %v1020_v21  ;;  %v1019_v24 = vsub.f32 %v1003_v10, %v1015_v22  ;;  %v1018_v25 = vsub.f32 %v1002_v13, %v1012_v23 }
 0x5ad   :  { %v1026_v26 = vmul.f32 1.442695, %v1019_v24  ;;  %v1024_v27 = vmul.f32 1.442695, %v1018_v25 }
 0x5ae   :  { %v5576_v29 = vpop.permute.xlu1 %5575  ;;  %v5571_v36 = vpop.permute.xlu0 %5570 }
 0x5af   :  { %5659 = vpow2.f32 %v1026_v26  ;;  %v5573_v51 = vunpack.i.h.bf16 %v5571_v36  ;;  %v5578_v47 = vunpack.i.h.bf16 %v5576_v29  ;;  %v5577_v37 = vunpack.i.l.bf16 %v5576_v29 }
 0x5b0   :  { %5661 = vpow2.f32 %v1024_v27  ;;  %v5572_v35 = vunpack.i.l.bf16 %v5571_v36 }
 0x5b1   :  { %v6128_v57 = vpack.c.bf16 %v5578_v47, %v5577_v37 }
 0x5b2   :  { %v6126_v53 = vpack.c.bf16 %v5573_v51, %v5572_v35 }
 0x5b4   :  { %v5656_v54 = vpop.eup %5655  ;;  %5273 = vmatprep.subr.bf16.mxu0 %v6126_v53 }
 0x5b5   :  { %v5658_v59 = vpop.eup %5657  ;;  %5275 = vmatpush3.bf16.msra.mxu0 %v6126_v53  ;;  %v1031_v60 = vsel %vm675_vm3, %v5656_v54, 0.0 }
 0x5b6   :  { %5278 = vmatprep.subr.msk.bf16.mxu0 %vm6063_vm7, %v6128_v57  ;;  %1032 = vadd.xlane.f32.xlu1 %v1031_v60  ;;  %v1028_v62 = vsel %vm675_vm3, %v5658_v59, 0.0 }
 0x5b7   :  { %1029 = vadd.xlane.f32.xlu0 %v1028_v62 }
 0x5b9   :  { %v5660_v9 = vpop.eup %5659  ;;  %5281 = vmatpush3.bf16.msk.msra.mxu0 %vm6063_vm7, %v6128_v57 }
 0x5ba   :  { %v5662_v10 = vpop.eup %5661  ;;  %v1037_v11 = vsel %vm685_vm4, %v5660_v9, 0.0 }
 0x5bb   :  { %1038 = vadd.xlane.f32.xlu1 %v1037_v11  ;;  %v1034_v13 = vsel %vm675_vm3, %v5662_v10, 0.0 }
 0x5bc   :  { %1035 = vadd.xlane.f32.xlu0 %v1034_v13 }
 0x5cc   :  { %5580 = vrot.lane.b32.xlu1 %v5977_v44, %s5831_s16 }
 0x5d2   :  { %5585 = vrot.lane.b32.xlu0 %v5989_v48, %s5831_s16 }
 0x643   :  { %v1033_v14 = vpop.xlane.xlu1 %1032 }
 0x644   :  { %5663 = vrcp.f32 %v1033_v14  ;;  %v1030_v15 = vpop.xlane.xlu0 %1029 }
 0x645   :  { %5665 = vrcp.f32 %v1030_v15 }
 0x648   :  { %v1039_v16 = vpop.xlane.xlu1 %1038 }
 0x649   :  { %5667 = vrcp.f32 %v1039_v16  ;;  %v1036_v17 = vpop.xlane.xlu0 %1035 }
 0x64a   :  { %5669 = vrcp.f32 %v1036_v17 }
 0x64c   :  { %v5581_v18 = vpop.permute.xlu1 %5580 }
 0x64d   :  { %v5583_v19 = vunpack.i.h.bf16 %v5581_v18  ;;  %v5582_v20 = vunpack.i.l.bf16 %v5581_v18  ;;  %v5586_v21 = vpop.permute.xlu0 %5585 }
 0x64e   :  { %v5664_v22 = vpop.eup %5663  ;;  %v5588_v25 = vunpack.i.h.bf16 %v5586_v21  ;;  %v5587_v26 = vunpack.i.l.bf16 %v5586_v21 }
 0x64f   :  { %v5666_v23 = vpop.eup %5665  ;;  %v6146_v24 = vpack.c.bf16 %v5583_v19, %v5582_v20  ;;  %v1043_v29 = vmul.f32 %v5664_v22, %v5656_v54 }
 0x650   :  { %v1041_v27 = vmul.f32 %v5666_v23, %v5658_v59  ;;  %v6152_v51 = vpack.c.bf16 %v5588_v25, %v5587_v26 }
 0x651   :  { %5284 = vmatprep.subr.msk.bf16.mxu0 %vm6001_vm2, %v6146_v24 }
 0x652   :  { %4906 = vmatprep.mubr.msk.f32.mxu0 %vm675_vm3, %v1041_v27 }
 0x653   :  { %v5668_v36 = vpop.eup %5667  ;;  %4907 = vmatmul.mubr.msk.f32.vlgmr.msra.gmra.mrb[12].mxu0 %vm675_vm3, %v1043_v29 }
 0x654   :  { %v5670_v47 = vpop.eup %5669  ;;  %5287 = vmatpush3.bf16.xpose.msk.msra.mxu0 %vm6001_vm2, %v6146_v24  ;;  %v1047_v37 = vmul.f32 %v5668_v36, %v5660_v9 }
 0x655   :  { %5290 = vmatprep.subr.msk.bf16.mxu0 %vm6001_vm2, %v6152_v51  ;;  %v1045_v35 = vmul.f32 %v5670_v47, %v5662_v10 }
 0x657   :  { %4909 = vmatprep.mubr.msk.f32.mxu0 %vm675_vm3, %v1045_v35 }
 0x658   :  { %4910 = vmatmul.mubr.msk.f32.gmra.mrb[14].mxu0 %vm675_vm3, %v1047_v37 }
 0x659   :  { %4920 = vmatprep.mubr.msk.f32.mxu0 %vm565_vm1, %v5981_v46 }
 0x65c   :  { %5293 = vmatpush3.bf16.xpose.msk.msra.mxu0 %vm6001_vm2, %v6152_v51 }
 0x65d   :  { %5317 = vmatprep.subr.bf16.mxu0 %v6126_v53 }
 0x663   :  { %4921 = vmatmul.mubr.msk.f32.vlgmr.msra.gmra.mrb[16].mxu0 %vm565_vm1, %v5979_v45 }
 0x664   :  { %4923 = vmatprep.mubr.msk.f32.mxu0 %vm565_vm1, %v5993_v50  ;;  %5319 = vmatpush3.bf16.msra.mxu0 %v6126_v53 }
 0x665   :  { %5322 = vmatprep.subr.msk.bf16.mxu0 %vm6063_vm7, %v6128_v57 }
 0x667   :  { %4924 = vmatmul.mubr.msk.f32.gmra.mrb[18].mxu0 %vm565_vm1, %v5991_v49 }
 0x668   :  { %5325 = vmatpush3.bf16.msk.msra.mxu0 %vm6063_vm7, %v6128_v57 }
 0x726   :  { %v6182_v54 = vpop.f32.mrb[12].mxu0 }
 0x727   :  { %v6184_v59 = vpop.f32.mrb[13].mxu0 }
 0x72b   :  { %v6186_v60 = vpop.f32.mrb[14].mxu0 }
 0x72c   :  { %v6188_v62 = vpop.f32.mrb[15].mxu0 }
 0x736   :  { %v4922_v9 = vpop.f32.mrb[16].mxu0 }
 0x737   :  { %v1322_v10 = vmul.f32 0.5, %v4922_v9  ;;  %v1302_v11 = vpop.f32.mrb[17].mxu0 }
 0x738   :  { %v1321_v13 = vmul.f32 0.5, %v1302_v11 }
 0x739   :  { %v1328_v14 = vsel %vm675_vm3, %v1322_v10, -inf }
 0x73a   :  { %1329 = vmax.xlane.f32.xlu0 %v1328_v14  ;;  %v4925_v15 = vpop.f32.mrb[18].mxu0  ;;  %v1325_v16 = vsel %vm675_vm3, %v1321_v13, -inf }
 0x73b   :  { %v1324_v17 = vmul.f32 0.5, %v4925_v15  ;;  %1326 = vmax.xlane.f32.xlu1 %v1325_v16  ;;  %v1312_v18 = vpop.f32.mrb[19].mxu0 }
 0x73c   :  { %v1323_v19 = vmul.f32 0.5, %v1312_v18 }
 0x73d   :  { %v1334_v20 = vsel %vm685_vm4, %v1324_v17, -inf }
 0x73e   :  { %v1331_v21 = vsel %vm675_vm3, %v1323_v19, -inf }
 0x73f   :  { %1335 = vmax.xlane.f32.xlu1 %v1334_v20  ;;  %1332 = vmax.xlane.f32.xlu0 %v1331_v21 }
 0x7c7   :  { %v1330_v22 = vpop.xlane.xlu0 %1329 }
 0x7c8   :  { %v1338_v23 = vsub.f32 %v1322_v10, %v1330_v22  ;;  %v1327_v25 = vpop.xlane.xlu1 %1326 }
 0x7c9   :  { %v1337_v26 = vsub.f32 %v1321_v13, %v1327_v25 }
 0x7ca   :  { %v1343_v27 = vmul.f32 1.442695, %v1338_v23 }
 0x7cb   :  { %v1341_v29 = vmul.f32 1.442695, %v1337_v26 }
 0x7cc   :  { %5671 = vpow2.f32 %v1343_v27  ;;  %v1336_v36 = vpop.xlane.xlu1 %1335  ;;  %v1333_v47 = vpop.xlane.xlu0 %1332 }
 0x7cd   :  { %5673 = vpow2.f32 %v1341_v29  ;;  %v1340_v37 = vsub.f32 %v1324_v17, %v1336_v36  ;;  %v1339_v35 = vsub.f32 %v1323_v19, %v1333_v47 }
 0x7cf   :  { %v1347_v9 = vmul.f32 1.442695, %v1340_v37  ;;  %v1345_v11 = vmul.f32 1.442695, %v1339_v35 }
 0x7d1   :  { %5675 = vpow2.f32 %v1347_v9 }
 0x7d2   :  { %5677 = vpow2.f32 %v1345_v11 }
 0x7d6   :  { %v5672_v14 = vpop.eup %5671 }
 0x7d7   :  { %v5674_v15 = vpop.eup %5673  ;;  %v1352_v16 = vsel %vm675_vm3, %v5672_v14, 0.0 }
 0x7d8   :  { %1353 = vadd.xlane.f32.xlu1 %v1352_v16  ;;  %v1349_v10 = vsel %vm675_vm3, %v5674_v15, 0.0 }
 0x7d9   :  { %1350 = vadd.xlane.f32.xlu0 %v1349_v10 }
 0x7db   :  { %v5676_v13 = vpop.eup %5675 }
 0x7dc   :  { %v5678_v18 = vpop.eup %5677  ;;  %v1358_v20 = vsel %vm685_vm4, %v5676_v13, 0.0 }
 0x7dd   :  { %1359 = vadd.xlane.f32.xlu1 %v1358_v20  ;;  %v1355_v17 = vsel %vm675_vm3, %v5678_v18, 0.0 }
 0x7de   :  { %1356 = vadd.xlane.f32.xlu0 %v1355_v17 }
 0x7ee   :  { %5595 = vrot.lane.b32.xlu1 %v5989_v48, %s5832_s0 }
 0x7f4   :  { %5590 = vrot.lane.b32.xlu0 %v5977_v44, %s5832_s0 }
 0x865   :  { %v1354_v19 = vpop.xlane.xlu1 %1353 }
 0x866   :  { %v1351_v21 = vpop.xlane.xlu0 %1350 }
 0x867   :  { %5679 = vrcp.f32 %v1351_v21 }
 0x868   :  { %5681 = vrcp.f32 %v1354_v19 }
 0x86a   :  { %v1360_v22 = vpop.xlane.xlu1 %1359 }
 0x86b   :  { %v1357_v23 = vpop.xlane.xlu0 %1356 }
 0x86c   :  { %5683 = vrcp.f32 %v1357_v23 }
 0x86d   :  { %5685 = vrcp.f32 %v1360_v22 }
 0x86e   :  { %v5596_v25 = vpop.permute.xlu1 %5595 }
 0x86f   :  { %v5591_v26 = vpop.permute.xlu0 %5590  ;;  %v5598_v27 = vunpack.i.h.bf16 %v5596_v25  ;;  %v5597_v29 = vunpack.i.l.bf16 %v5596_v25 }
 0x870   :  { %v5593_v36 = vunpack.i.h.bf16 %v5591_v26  ;;  %v5592_v47 = vunpack.i.l.bf16 %v5591_v26 }
 0x871   :  { %v5680_v37 = vpop.eup %5679  ;;  %v6204_v9 = vpack.c.bf16 %v5598_v27, %v5597_v29 }
 0x872   :  { %v6202_v35 = vpack.c.bf16 %v5593_v36, %v5592_v47  ;;  %v1362_v48 = vmul.f32 %v5680_v37, %v5674_v15  ;;  %v5682_v44 = vpop.eup %5681 }
 0x873   :  { %v1364_v16 = vmul.f32 %v5682_v44, %v5672_v14 }
 0x874   :  { %5295 = vmatprep.subr.bf16.mxu1 %v6202_v35  ;;  %4934 = vmatprep.mubr.msk.f32.mxu1 %vm675_vm3, %v1362_v48 }
 0x875   :  { %5297 = vmatpush3.bf16.msra.mxu1 %v6202_v35 }
 0x876   :  { %5300 = vmatprep.subr.msk.bf16.mxu1 %vm6063_vm7, %v6204_v9  ;;  %v5684_v11 = vpop.eup %5683 }
 0x877   :  { %v5686_v15 = vpop.eup %5685  ;;  %v1366_v10 = vmul.f32 %v5684_v11, %v5678_v18 }
 0x878   :  { %v1368_v20 = vmul.f32 %v5686_v15, %v5676_v13 }
 0x879   :  { %5303 = vmatpush3.bf16.msk.msra.mxu1 %vm6063_vm7, %v6204_v9 }
 0x87a   :  { %5306 = vmatprep.subr.msk.bf16.mxu1 %vm6001_vm2, %v6075_v12 }
 0x87c   :  { %4935 = vmatmul.mubr.msk.f32.vlgmr.msra.gmra.mrb[16].mxu1 %vm675_vm3, %v1364_v16 }
 0x87d   :  { %4937 = vmatprep.mubr.msk.f32.mxu1 %vm675_vm3, %v1366_v10 }
 0x880   :  { %4938 = vmatmul.mubr.msk.f32.gmra.mrb[18].mxu1 %vm675_vm3, %v1368_v20 }
 0x881   :  { %4948 = vmatprep.mubr.msk.f32.mxu1 %vm565_vm1, %v5963_v39 }
 0x882   :  { %5309 = vmatpush3.bf16.xpose.msk.msra.mxu1 %vm6001_vm2, %v6075_v12 }
 0x883   :  { %5312 = vmatprep.subr.msk.bf16.mxu1 %vm6001_vm2, %v6089_v28 }
 0x88a   :  { %5315 = vmatpush3.bf16.xpose.msk.msra.mxu1 %vm6001_vm2, %v6089_v28 }
 0x891   :  { %4949 = vmatmul.mubr.msk.f32.vlgmr.msra.gmra.mrb[20].mxu1 %vm565_vm1, %v5961_v38 }
 0x892   :  { %4951 = vmatprep.mubr.msk.f32.mxu1 %vm565_vm1, %v5973_v43 }
 0x895   :  { %4952 = vmatmul.mubr.msk.f32.gmra.mrb[22].mxu1 %vm565_vm1, %v5968_v41 }
 0x94f   :  { %v6238_v14 = vpop.f32.mrb[16].mxu1 }
 0x950   :  { %6990 = vst [vmem:[#allocation4_spill] sm:$0xff] %v6238_v14  ;;  %v6240_v13 = vpop.f32.mrb[17].mxu1 }
 0x953   :  { %v6242_v18 = vpop.f32.mrb[18].mxu1 }
 0x954   :  { %6991 = vst [vmem:[#allocation5_spill] sm:$0xff] %v6242_v18  ;;  %v6244_v17 = vpop.f32.mrb[19].mxu1 }
 0x964   :  { %v4950_v19 = vpop.f32.mrb[20].mxu1 }
 0x965   :  { %v1631_v21 = vmul.f32 0.5, %v4950_v19  ;;  %v1611_v22 = vpop.f32.mrb[21].mxu1 }
 0x966   :  { %v1630_v23 = vmul.f32 0.5, %v1611_v22 }
 0x967   :  { %v1637_v25 = vsel %vm675_vm3, %v1631_v21, -inf }
 0x968   :  { %1638 = vmax.xlane.f32.xlu0 %v1637_v25  ;;  %v4953_v26 = vpop.f32.mrb[22].mxu1  ;;  %v1634_v27 = vsel %vm675_vm3, %v1630_v23, -inf }
 0x969   :  { %v1633_v29 = vmul.f32 0.5, %v4953_v26  ;;  %1635 = vmax.xlane.f32.xlu1 %v1634_v27  ;;  %v1621_v36 = vpop.f32.mrb[23].mxu1 }
 0x96a   :  { %v1632_v47 = vmul.f32 0.5, %v1621_v36 }
 0x96b   :  { %v1643_v37 = vsel %vm685_vm4, %v1633_v29, -inf }
 0x96c   :  { %v1640_v48 = vsel %vm675_vm3, %v1632_v47, -inf }
 0x96d   :  { %1644 = vmax.xlane.f32.xlu1 %v1643_v37  ;;  %1641 = vmax.xlane.f32.xlu0 %v1640_v48 }
 0x9f5   :  { %v1639_v44 = vpop.xlane.xlu0 %1638 }
 0x9f6   :  { %v1647_v11 = vsub.f32 %v1631_v21, %v1639_v44  ;;  %v1636_v16 = vpop.xlane.xlu1 %1635 }
 0x9f7   :  { %v1646_v15 = vsub.f32 %v1630_v23, %v1636_v16 }
 0x9f8   :  { %v1652_v10 = vmul.f32 1.442695, %v1647_v11 }
 0x9f9   :  { %v1650_v20 = vmul.f32 1.442695, %v1646_v15 }
 0x9fa   :  { %5687 = vpow2.f32 %v1652_v10  ;;  %v1645_v19 = vpop.xlane.xlu1 %1644  ;;  %v1642_v22 = vpop.xlane.xlu0 %1641 }
 0x9fb   :  { %5689 = vpow2.f32 %v1650_v20  ;;  %v1649_v25 = vsub.f32 %v1633_v29, %v1645_v19  ;;  %v1648_v26 = vsub.f32 %v1632_v47, %v1642_v22 }
 0x9fd   :  { %v1656_v27 = vmul.f32 1.442695, %v1649_v25  ;;  %v1654_v36 = vmul.f32 1.442695, %v1648_v26 }
 0x9ff   :  { %5691 = vpow2.f32 %v1656_v27 }
 0xa00   :  { %5693 = vpow2.f32 %v1654_v36 }
 0xa04   :  { %v5688_v14 = vpop.eup %5687 }
 0xa05   :  { %v5690_v18 = vpop.eup %5689  ;;  %v1661_v37 = vsel %vm675_vm3, %v5688_v14, 0.0 }
 0xa06   :  { %1662 = vadd.xlane.f32.xlu1 %v1661_v37  ;;  %v1658_v21 = vsel %vm675_vm3, %v5690_v18, 0.0 }
 0xa07   :  { %1659 = vadd.xlane.f32.xlu0 %v1658_v21 }
 0xa09   :  { %v5692_v23 = vpop.eup %5691 }
 0xa0a   :  { %v5694_v48 = vpop.eup %5693  ;;  %v1667_v44 = vsel %vm685_vm4, %v5692_v23, 0.0 }
 0xa0b   :  { %1668 = vadd.xlane.f32.xlu1 %v1667_v44  ;;  %v1664_v29 = vsel %vm675_vm3, %v5694_v48, 0.0 }
 0xa0c   :  { %1665 = vadd.xlane.f32.xlu0 %v1664_v29 }
 0xa1c   :  { %5605 = vrot.lane.b32.xlu1 %v6047_v8, %s5831_s16 }
 0xa22   :  { %5600 = vrot.lane.b32.xlu0 %v6039_v3, %s5831_s16 }
 0xa93   :  { %v1663_v47 = vpop.xlane.xlu1 %1662 }
 0xa94   :  { %5695 = vrcp.f32 %v1663_v47  ;;  %v1660_v11 = vpop.xlane.xlu0 %1659 }
 0xa95   :  { %5697 = vrcp.f32 %v1660_v11 }
 0xa98   :  { %v1669_v16 = vpop.xlane.xlu1 %1668 }
 0xa99   :  { %5699 = vrcp.f32 %v1669_v16  ;;  %v1666_v15 = vpop.xlane.xlu0 %1665 }
 0xa9a   :  { %5701 = vrcp.f32 %v1666_v15 }
 0xa9c   :  { %v5606_v10 = vpop.permute.xlu1 %5605 }
 0xa9d   :  { %v5601_v20 = vpop.permute.xlu0 %5600  ;;  %v5608_v27 = vunpack.i.h.bf16 %v5606_v10  ;;  %v5607_v36 = vunpack.i.l.bf16 %v5606_v10 }
 0xa9e   :  { %v5696_v19 = vpop.eup %5695  ;;  %v5603_v22 = vunpack.i.h.bf16 %v5601_v20  ;;  %v5602_v25 = vunpack.i.l.bf16 %v5601_v20 }
 0xa9f   :  { %v5698_v26 = vpop.eup %5697  ;;  %v1673_v44 = vmul.f32 %v5696_v19, %v5688_v14  ;;  %v6264_v47 = vpack.c.bf16 %v5608_v27, %v5607_v36 }
 0xaa0   :  { %v6258_v37 = vpack.c.bf16 %v5603_v22, %v5602_v25  ;;  %v1671_v21 = vmul.f32 %v5698_v26, %v5690_v18 }
 0xaa2   :  { %5328 = vmatprep.subr.msk.bf16.mxu0 %vm6001_vm2, %v6258_v37  ;;  %4962 = vmatprep.mubr.msk.f32.mxu0 %vm675_vm3, %v1671_v21 }
 0xaa3   :  { %v5700_v29 = vpop.eup %5699  ;;  %4963 = vmatmul.mubr.msk.f32.vlgmr.msra.gmra.mrb[20].mxu0 %vm675_vm3, %v1673_v44 }
 0xaa4   :  { %v5702_v11 = vpop.eup %5701  ;;  %5331 = vmatpush3.bf16.xpose.msk.msra.mxu0 %vm6001_vm2, %v6258_v37  ;;  %v1677_v16 = vmul.f32 %v5700_v29, %v5692_v23 }
 0xaa5   :  { %5334 = vmatprep.subr.msk.bf16.mxu0 %vm6001_vm2, %v6264_v47  ;;  %v1675_v14 = vmul.f32 %v5702_v11, %v5694_v48 }
 0xaa7   :  { %4965 = vmatprep.mubr.msk.f32.mxu0 %vm675_vm3, %v1675_v14 }
 0xaa8   :  { %4966 = vmatmul.mubr.msk.f32.gmra.mrb[22].mxu0 %vm675_vm3, %v1677_v16 }
 0xaa9   :  { %4976 = vmatprep.mubr.msk.f32.mxu0 %vm565_vm1, %v5981_v46 }
 0xaac   :  { %5337 = vmatpush3.bf16.xpose.msk.msra.mxu0 %vm6001_vm2, %v6264_v47 }
 0xaad   :  { %5361 = vmatprep.subr.bf16.mxu0 %v6126_v53 }
 0xab3   :  { %4977 = vmatmul.mubr.msk.f32.vlgmr.msra.gmra.mrb[24].mxu0 %vm565_vm1, %v5979_v45 }
 0xab4   :  { %4979 = vmatprep.mubr.msk.f32.mxu0 %vm565_vm1, %v5993_v50  ;;  %5363 = vmatpush3.bf16.msra.mxu0 %v6126_v53 }
 0xab5   :  { %5366 = vmatprep.subr.msk.bf16.mxu0 %vm6063_vm7, %v6128_v57 }
 0xab7   :  { %4980 = vmatmul.mubr.msk.f32.gmra.mrb[26].mxu0 %vm565_vm1, %v5991_v49 }
 0xab8   :  { %5369 = vmatpush3.bf16.msk.msra.mxu0 %vm6063_vm7, %v6128_v57 }
 0xab9   :  { %5371 = vmatprep.subr.bf16.mxu0 %v5867_v4 }
 0xb76   :  { %v6295_v18 = vpop.f32.mrb[20].mxu0 }
 0xb77   :  { %6992 = vst [vmem:[#allocation6_spill] sm:$0xff] %v6295_v18  ;;  %v6297_v23 = vpop.f32.mrb[21].mxu0 }
 0xb78   :  { %6993 = vst [vmem:[#allocation7_spill] sm:$0xff] %v6297_v23 }
 0xb7b   :  { %v6299_v48 = vpop.f32.mrb[22].mxu0 }
 0xb7c   :  { %6994 = vst [vmem:[#allocation8_spill] sm:$0xff] %v6299_v48  ;;  %v6301_v53 = vpop.f32.mrb[23].mxu0 }
 0xb7d   :  { %6995 = vst [vmem:[#allocation9_spill] sm:$0xff] %v6301_v53 }
 0xb86   :  { %v4978_v15 = vpop.f32.mrb[24].mxu0 }
 0xb87   :  { %v1939_v10 = vmul.f32 0.5, %v4978_v15  ;;  %v1919_v20 = vpop.f32.mrb[25].mxu0 }
 0xb88   :  { %v1938_v19 = vmul.f32 0.5, %v1919_v20 }
 0xb89   :  { %v1945_v22 = vsel %vm675_vm3, %v1939_v10, -inf }
 0xb8a   :  { %1946 = vmax.xlane.f32.xlu0 %v1945_v22  ;;  %v4981_v25 = vpop.f32.mrb[26].mxu0  ;;  %v1942_v57 = vsel %vm675_vm3, %v1938_v19, -inf }
 0xb8b   :  { %v1941_v26 = vmul.f32 0.5, %v4981_v25  ;;  %1943 = vmax.xlane.f32.xlu1 %v1942_v57  ;;  %v1929_v27 = vpop.f32.mrb[27].mxu0 }
 0xb8c   :  { %v1940_v36 = vmul.f32 0.5, %v1929_v27 }
 0xb8d   :  { %v1951_v21 = vsel %vm685_vm4, %v1941_v26, -inf }
 0xb8e   :  { %v1948_v44 = vsel %vm675_vm3, %v1940_v36, -inf }
 0xb8f   :  { %1952 = vmax.xlane.f32.xlu1 %v1951_v21  ;;  %1949 = vmax.xlane.f32.xlu0 %v1948_v44 }
 0xc17   :  { %v1947_v29 = vpop.xlane.xlu0 %1946 }
 0xc18   :  { %v1955_v11 = vsub.f32 %v1939_v10, %v1947_v29  ;;  %v1944_v16 = vpop.xlane.xlu1 %1943 }
 0xc19   :  { %v1954_v14 = vsub.f32 %v1938_v19, %v1944_v16 }
 0xc1a   :  { %v1960_v15 = vmul.f32 1.442695, %v1955_v11 }
 0xc1b   :  { %v1958_v20 = vmul.f32 1.442695, %v1954_v14 }
 0xc1c   :  { %5703 = vpow2.f32 %v1960_v15  ;;  %v1953_v22 = vpop.xlane.xlu1 %1952  ;;  %v1950_v53 = vpop.xlane.xlu0 %1949 }
 0xc1d   :  { %5705 = vpow2.f32 %v1958_v20  ;;  %v1957_v25 = vsub.f32 %v1941_v26, %v1953_v22  ;;  %v1956_v57 = vsub.f32 %v1940_v36, %v1950_v53 }
 0xc1f   :  { %v1964_v48 = vmul.f32 1.442695, %v1957_v25  ;;  %v1962_v27 = vmul.f32 1.442695, %v1956_v57 }
 0xc21   :  { %5707 = vpow2.f32 %v1964_v48 }
 0xc22   :  { %5709 = vpow2.f32 %v1962_v27 }
 0xc26   :  { %v5704_v18 = vpop.eup %5703 }
 0xc27   :  { %v5706_v23 = vpop.eup %5705  ;;  %v1969_v21 = vsel %vm675_vm3, %v5704_v18, 0.0 }
 0xc28   :  { %1970 = vadd.xlane.f32.xlu1 %v1969_v21  ;;  %v1966_v10 = vsel %vm675_vm3, %v5706_v23, 0.0 }
 0xc29   :  { %1967 = vadd.xlane.f32.xlu0 %v1966_v10 }
 0xc2b   :  { %v5708_v19 = vpop.eup %5707 }
 0xc2c   :  { %v5710_v44 = vpop.eup %5709  ;;  %v1975_v29 = vsel %vm685_vm4, %v5708_v19, 0.0 }
 0xc2d   :  { %1976 = vadd.xlane.f32.xlu1 %v1975_v29  ;;  %v1972_v26 = vsel %vm675_vm3, %v5710_v44, 0.0 }
 0xc2e   :  { %1973 = vadd.xlane.f32.xlu0 %v1972_v26 }
 0xc3e   :  { %5615 = vrot.lane.b32.xlu1 %v6047_v8, %s5832_s0 }
 0xc44   :  { %5610 = vrot.lane.b32.xlu0 %v6039_v3, %s5832_s0 }
 0xcb5   :  { %v1971_v48 = vpop.xlane.xlu1 %1970 }
 0xcb6   :  { %v1968_v53 = vpop.xlane.xlu0 %1967 }
 0xcb7   :  { %5711 = vrcp.f32 %v1968_v53 }
 0xcb8   :  { %5713 = vrcp.f32 %v1971_v48 }
 0xcba   :  { %v1977_v36 = vpop.xlane.xlu1 %1976 }
 0xcbb   :  { %v1974_v11 = vpop.xlane.xlu0 %1973 }
 0xcbc   :  { %5715 = vrcp.f32 %v1974_v11 }
 0xcbd   :  { %5717 = vrcp.f32 %v1977_v36 }
 0xcbe   :  { %v5616_v16 = vpop.permute.xlu1 %5615 }
 0xcbf   :  { %v5611_v14 = vpop.permute.xlu0 %5610  ;;  %v5618_v15 = vunpack.i.h.bf16 %v5616_v16  ;;  %v5617_v20 = vunpack.i.l.bf16 %v5616_v16 }
 0xcc0   :  { %v5613_v22 = vunpack.i.h.bf16 %v5611_v14  ;;  %v5612_v25 = vunpack.i.l.bf16 %v5611_v14 }
 0xcc1   :  { %v5712_v57 = vpop.eup %5711  ;;  %v6317_v21 = vpack.c.bf16 %v5618_v15, %v5617_v20 }
 0xcc2   :  { %v6315_v27 = vpack.c.bf16 %v5613_v22, %v5612_v25  ;;  %v1979_v8 = vmul.f32 %v5712_v57, %v5706_v23  ;;  %v5714_v3 = vpop.eup %5713 }
 0xcc3   :  { %v1981_v29 = vmul.f32 %v5714_v3, %v5704_v18 }
 0xcc4   :  { %5339 = vmatprep.subr.bf16.mxu1 %v6315_v27  ;;  %4990 = vmatprep.mubr.msk.f32.mxu1 %vm675_vm3, %v1979_v8 }
 0xcc5   :  { %5341 = vmatpush3.bf16.msra.mxu1 %v6315_v27 }
 0xcc6   :  { %5344 = vmatprep.subr.msk.bf16.mxu1 %vm6063_vm7, %v6317_v21  ;;  %v5716_v10 = vpop.eup %5715 }
 0xcc7   :  { %v5718_v23 = vpop.eup %5717  ;;  %v1983_v26 = vmul.f32 %v5716_v10, %v5710_v44 }
 0xcc8   :  { %v1985_v48 = vmul.f32 %v5718_v23, %v5708_v19 }
 0xcc9   :  { %5347 = vmatpush3.bf16.msk.msra.mxu1 %vm6063_vm7, %v6317_v21 }
 0xcca   :  { %5350 = vmatprep.subr.msk.bf16.mxu1 %vm6001_vm2, %v6075_v12 }
 0xccc   :  { %4991 = vmatmul.mubr.msk.f32.vlgmr.msra.gmra.mrb[24].mxu1 %vm675_vm3, %v1981_v29 }
 0xccd   :  { %4993 = vmatprep.mubr.msk.f32.mxu1 %vm675_vm3, %v1983_v26 }
 0xcd0   :  { %4994 = vmatmul.mubr.msk.f32.gmra.mrb[26].mxu1 %vm675_vm3, %v1985_v48 }
 0xcd1   :  { %5004 = vmatprep.mubr.msk.f32.mxu1 %vm565_vm1, %v6035_v2 }
 0xcd2   :  { %5353 = vmatpush3.bf16.xpose.msk.msra.mxu1 %vm6001_vm2, %v6075_v12 }
 0xcd3   :  { %5356 = vmatprep.subr.msk.bf16.mxu1 %vm6001_vm2, %v6089_v28 }
 0xcda   :  { %5359 = vmatpush3.bf16.xpose.msk.msra.mxu1 %vm6001_vm2, %v6089_v28 }
 0xcdb   :  { %5380 = vmatprep.subr.msk.bf16.mxu1 %vm6001_vm2, %v6005_v56 }
 0xce1   :  { %5005 = vmatmul.mubr.msk.f32.vlgmr.msra.gmra.mrb[28].mxu1 %vm565_vm1, %v6033_v1 }
 0xce2   :  { %5007 = vmatprep.mubr.msk.f32.mxu1 %vm565_vm1, %v6043_v6  ;;  %5383 = vmatpush3.bf16.xpose.msk.msra.mxu1 %vm6001_vm2, %v6005_v56 }
 0xce3   :  { %5386 = vmatprep.subr.msk.bf16.mxu1 %vm6001_vm2, %v6011_v61 }
 0xce5   :  { %5008 = vmatmul.mubr.msk.f32.gmra.mrb[30].mxu1 %vm565_vm1, %v6041_v5 }
 0xcea   :  { %5389 = vmatpush3.bf16.xpose.msk.msra.mxu1 %vm6001_vm2, %v6011_v61 }
 0xd9f   :  { %v6363_v12 = vpop.f32.mrb[24].mxu1 }
 0xda0   :  { %6996 = vst [vmem:[#allocation10_spill] sm:$0xff] %v6363_v12  ;;  %v6365_v28 = vpop.f32.mrb[25].mxu1 }
 0xda3   :  { %v6367_v18 = vpop.f32.mrb[26].mxu1 }
 0xda4   :  { %6997 = vst [vmem:[#allocation11_spill] sm:$0xff] %v6367_v18  ;;  %v6369_v19 = vpop.f32.mrb[27].mxu1 }
 0xda5   :  { %6998 = vst [vmem:[#allocation12_spill] sm:$0xff] %v6369_v19 }
 0xdb4   :  { %v5006_v56 = vpop.f32.mrb[28].mxu1 }
 0xdb5   :  { %v2248_v44 = vmul.f32 0.5, %v5006_v56  ;;  %v2228_v53 = vpop.f32.mrb[29].mxu1 }
 0xdb6   :  { %v2247_v36 = vmul.f32 0.5, %v2228_v53 }
 0xdb7   :  { %v2254_v11 = vsel %vm675_vm3, %v2248_v44, -inf }
 0xdb8   :  { %2255 = vmax.xlane.f32.xlu0 %v2254_v11  ;;  %v5009_v16 = vpop.f32.mrb[30].mxu1  ;;  %v2251_v14 = vsel %vm675_vm3, %v2247_v36, -inf }
 0xdb9   :  { %v2250_v15 = vmul.f32 0.5, %v5009_v16  ;;  %2252 = vmax.xlane.f32.xlu1 %v2251_v14  ;;  %v2238_v61 = vpop.f32.mrb[31].mxu1 }
 0xdba   :  { %v2249_v20 = vmul.f32 0.5, %v2238_v61 }
 0xdbb   :  { %v2260_v22 = vsel %vm685_vm4, %v2250_v15, -inf }
 0xdbc   :  { %v2257_v25 = vsel %vm675_vm3, %v2249_v20, -inf }
 0xdbd   :  { %2261 = vmax.xlane.f32.xlu1 %v2260_v22  ;;  %2258 = vmax.xlane.f32.xlu0 %v2257_v25 }
 0xe45   :  { %v2256_v57 = vpop.xlane.xlu0 %2255 }
 0xe46   :  { %v2264_v8 = vsub.f32 %v2248_v44, %v2256_v57  ;;  %v2253_v3 = vpop.xlane.xlu1 %2252 }
 0xe47   :  { %v2263_v10 = vsub.f32 %v2247_v36, %v2253_v3  ;;  %v4483_v3 = vld [vmem:[%s6978_s1 + $0x30] sm:$0xff] }
 0xe48   :  { %v2269_v29 = vmul.f32 1.442695, %v2264_v8  ;;  %v4482_v8 = vld [vmem:[%s6978_s1 + $0x28] sm:$0xff] }
 0xe49   :  { %v2267_v23 = vmul.f32 1.442695, %v2263_v10  ;;  %v4484_v10 = vld [vmem:[%s6978_s1 + $0x38] sm:$0xff] }
 0xe4a   :  { %5719 = vpow2.f32 %v2269_v29  ;;  %v2262_v26 = vpop.xlane.xlu1 %2261  ;;  %v2259_v48 = vpop.xlane.xlu0 %2258 }
 0xe4b   :  { %5721 = vpow2.f32 %v2267_v23  ;;  %v2266_v56 = vsub.f32 %v2250_v15, %v2262_v26  ;;  %v2265_v53 = vsub.f32 %v2249_v20, %v2259_v48  ;;  %v4481_v20 = vld [vmem:[%s6978_s1 + $0x20] sm:$0xff]  ;;  %s5834_s1 = smov 8  }
 0xe4d   :  { %v2273_v11 = vmul.f32 1.442695, %v2266_v56  ;;  %v2271_v16 = vmul.f32 1.442695, %v2265_v53 }
 0xe4f   :  { %5723 = vpow2.f32 %v2273_v11 }
 0xe50   :  { %5725 = vpow2.f32 %v2271_v16 }
 0xe54   :  { %v5720_v14 = vpop.eup %5719 }
 0xe55   :  { %v5722_v61 = vpop.eup %5721  ;;  %v2278_v22 = vsel %vm675_vm3, %v5720_v14, 0.0 }
 0xe56   :  { %2279 = vadd.xlane.f32.xlu1 %v2278_v22  ;;  %v2275_v44 = vsel %vm675_vm3, %v5722_v61, 0.0 }
 0xe57   :  { %2276 = vadd.xlane.f32.xlu0 %v2275_v44 }
 0xe59   :  { %v5724_v36 = vpop.eup %5723 }
 0xe5a   :  { %v5726_v25 = vpop.eup %5725  ;;  %v2284_v57 = vsel %vm685_vm4, %v5724_v36, 0.0 }
 0xe5b   :  { %2285 = vadd.xlane.f32.xlu1 %v2284_v57  ;;  %v2281_v15 = vsel %vm675_vm3, %v5726_v25, 0.0 }
 0xe5c   :  { %2282 = vadd.xlane.f32.xlu0 %v2281_v15 }
 0xe89   :  { %2461 = vxpose.xlu0.b32.start [1/4] (short) (narrow) %v4481_v20, 32 }
 0xe8d   :  { %2462 = vxpose.xlu0.b32.cont [2/4] (short) (narrow) %v4482_v8, 32 }
 0xe91   :  { %2463 = vxpose.xlu0.b32.cont [3/4] (short) (narrow) %v4483_v3, 32 }
 0xe95   :  { %2464 = vxpose.xlu0.b32.end [4/4] (short) (narrow) %v4484_v10, 32 }
 0xee3   :  { %v2280_v29 = vpop.xlane.xlu1 %2279 }
 0xee4   :  { %5727 = vrcp.f32 %v2280_v29  ;;  %v2277_v23 = vpop.xlane.xlu0 %2276 }
 0xee5   :  { %5729 = vrcp.f32 %v2277_v23 }
 0xee8   :  { %v2286_v26 = vpop.xlane.xlu1 %2285 }
 0xee9   :  { %5731 = vrcp.f32 %v2286_v26  ;;  %v2283_v48 = vpop.xlane.xlu0 %2282 }
 0xeea   :  { %5733 = vrcp.f32 %v2283_v48 }
 0xeee   :  { %v5728_v56 = vpop.eup %5727 }
 0xeef   :  { %v5730_v53 = vpop.eup %5729  ;;  %v2290_v16 = vmul.f32 %v5728_v56, %v5720_v14 }
 0xef0   :  { %v2288_v11 = vmul.f32 %v5730_v53, %v5722_v61 }
 0xef2   :  { %5018 = vmatprep.mubr.msk.f32.mxu0 %vm675_vm3, %v2288_v11 }
 0xef3   :  { %v5732_v22 = vpop.eup %5731  ;;  %5019 = vmatmul.mubr.msk.f32.vlgmr.msra.gmra.mrb[28].mxu0 %vm675_vm3, %v2290_v16 }
 0xef4   :  { %v5734_v44 = vpop.eup %5733  ;;  %5373 = vmatpush3.bf16.msra.mxu0 %v5867_v4  ;;  %v2294_v57 = vmul.f32 %v5732_v22, %v5724_v36 }
 0xef5   :  { %v2292_v15 = vmul.f32 %v5734_v44, %v5726_v25  ;;  %5375 = vmatprep.subr.bf16.mxu0 %v5875_v7 }
 0xef7   :  { %5021 = vmatprep.mubr.msk.f32.mxu0 %vm675_vm3, %v2292_v15 }
 0xef8   :  { %5022 = vmatmul.mubr.msk.f32.gmra.mrb[30].mxu0 %vm675_vm3, %v2294_v57 }
 0xef9   :  { %5377 = vmatpush3.bf16.msra.mxu0 %v5875_v7 }
 0xefa   :  { %5391 = vmatprep.subr.bf16.mxu0 %v6059_v58 }
 0xf09   :  { %v2477_v14 = vpop.trf.xlu0 }
 0xf0a   :  { %5032 = vmatprep.mubr.msk.f32.mxu0 %vm54_vm0, %v2477_v14 }
 0xf0d   :  { %v2478_v61 = vpop.trf.xlu0 }
 0xf0e   :  { %5033 = vmatmul.mubr.msk.f32.vlgmr.msra.gmra.mrb[32].mxu0 %vm54_vm0, %v2478_v61 }
 0xf0f   :  { %5393 = vmatpush3.bf16.msra.mxu0 %v6059_v58 }
 0xf10   :  { %5396 = vmatprep.subr.msk.bf16.mxu0 %vm6063_vm7, %v6067_v0 }
 0xf11   :  { %v2479_v4 = vpop.trf.xlu0 }
 0xf12   :  { %5035 = vmatprep.mubr.msk.f32.mxu0 %vm54_vm0, %v2479_v4 }
 0xf13   :  { %5399 = vmatpush3.bf16.msk.msra.mxu0 %vm6063_vm7, %v6067_v0 }
 0xf15   :  { %v2480_v7 = vpop.trf.xlu0 }
 0xf16   :  { %5036 = vmatmul.mubr.msk.f32.gmra.mrb[34].mxu0 %vm54_vm0, %v2480_v7 }
 0xfc6   :  { %v6410_v36 = vpop.f32.mrb[28].mxu0 }
 0xfc7   :  { %6999 = vst [vmem:[#allocation13_spill] sm:$0xff] %v6410_v36  ;;  %v6412_v25 = vpop.f32.mrb[29].mxu0 }
 0xfc8   :  { %7000 = vst [vmem:[#allocation14_spill] sm:$0xff] %v6412_v25 }
 0xfcb   :  { %v6414_v20 = vpop.f32.mrb[30].mxu0 }
 0xfcc   :  { %7001 = vst [vmem:[#allocation15_spill] sm:$0xff] %v6414_v20  ;;  %v6416_v58 = vpop.f32.mrb[31].mxu0 }
 0xfcd   :  { %7002 = vst [vmem:[#allocation16_spill] sm:$0xff] %v6416_v58 }
 0xfe1   :  { %v6418_v8 = vpop.f32.mrb[32].mxu0 }
 0xfe2   :  { %v6420_v3 = vpop.f32.mrb[33].mxu0 }
 0xfe3   :  { %5046 = vmatprep.mubr.msk.f32.mxu1 %vm565_vm1, %v6420_v3  ;;  %v6426_v0 = vpack.i.bf16 %v6418_v8, %v6420_v3 }
 0xfe4   :  { %5047 = vmatmul.mubr.msk.f32.vlgmr.msra.gmra.mrb[32].mxu1 %vm565_vm1, %v6418_v8 }
 0xfe9   :  { %v6430_v10 = vpop.f32.mrb[34].mxu0 }
 0xfea   :  { %v6432_v29 = vpop.f32.mrb[35].mxu0 }
 0xfeb   :  { %5049 = vmatprep.mubr.msk.f32.mxu1 %vm565_vm1, %v6432_v29  ;;  %v6438_v23 = vpack.i.bf16 %v6430_v10, %v6432_v29 }
 0xfec   :  { %5050 = vmatmul.mubr.msk.f32.gmra.mrb[34].mxu1 %vm565_vm1, %v6430_v10 }
0x10b7   :  { %v5048_v26 = vpop.f32.mrb[32].mxu1 }
0x10b8   :  { %v2668_v48 = vpop.f32.mrb[33].mxu1  ;;  %v2688_v53 = vmul.f32 0.5, %v5048_v26 }
0x10b9   :  { %v2687_v56 = vmul.f32 0.5, %v2668_v48 }
0x10ba   :  { %v2694_v22 = vsel %vm675_vm3, %v2688_v53, -inf }
0x10bb   :  { %v2691_v11 = vsel %vm675_vm3, %v2687_v56, -inf }
0x10bc   :  { %2692 = vmax.xlane.f32.xlu1 %v2691_v11 }
0x10bf   :  { %v5051_v16 = vpop.f32.mrb[34].mxu1 }
0x10c0   :  { %2695 = vmax.xlane.f32.xlu1 %v2694_v22  ;;  %v2678_v44 = vpop.f32.mrb[35].mxu1  ;;  %v2690_v15 = vmul.f32 0.5, %v5051_v16 }
0x10c1   :  { %v2689_v57 = vmul.f32 0.5, %v2678_v44 }
0x10c2   :  { %v2700_v61 = vsel %vm685_vm4, %v2690_v15, -inf }
0x10c3   :  { %v2697_v14 = vsel %vm675_vm3, %v2689_v57, -inf }
0x10c4   :  { %2698 = vmax.xlane.f32.xlu1 %v2697_v14 }
0x10c8   :  { %2701 = vmax.xlane.f32.xlu1 %v2700_v61 }
0x10d9   :  { %5620 = vrot.lane.b32.xlu1 %v6426_v0, %s5831_s16 }
0x1149   :  { %v2693_v4 = vpop.xlane.xlu1 %2692 }
0x114a   :  { %v2703_v7 = vsub.f32 %v2687_v56, %v2693_v4 }
0x114c   :  { %v2707_v11 = vmul.f32 1.442695, %v2703_v7 }
0x114d   :  { %v2696_v26 = vpop.xlane.xlu1 %2695 }
0x114e   :  { %v2704_v48 = vsub.f32 %v2688_v53, %v2696_v26 }
0x1150   :  { %v2709_v18 = vmul.f32 1.442695, %v2704_v48 }
0x1151   :  { %v2699_v58 = vpop.xlane.xlu1 %2698 }
0x1152   :  { %5735 = vpow2.f32 %v2709_v18  ;;  %v2705_v22 = vsub.f32 %v2689_v57, %v2699_v58 }
0x1153   :  { %5737 = vpow2.f32 %v2707_v11 }
0x1154   :  { %v2711_v20 = vmul.f32 1.442695, %v2705_v22 }
0x1155   :  { %v2702_v16 = vpop.xlane.xlu1 %2701 }
0x1156   :  { %v2706_v44 = vsub.f32 %v2690_v15, %v2702_v16 }
0x1158   :  { %v2713_v14 = vmul.f32 1.442695, %v2706_v44 }
0x1159   :  { %v5621_v19 = vpop.permute.xlu1 %5620 }
0x115a   :  { %5739 = vpow2.f32 %v2713_v14  ;;  %v5623_v61 = vunpack.i.h.bf16 %v5621_v19  ;;  %v5622_v36 = vunpack.i.l.bf16 %v5621_v19 }
0x115b   :  { %5741 = vpow2.f32 %v2711_v20 }
0x115c   :  { %v5736_v25 = vpop.eup %5735  ;;  %v6448_v12 = vpack.c.bf16 %v5623_v61, %v5622_v36 }
0x115d   :  { %v2718_v56 = vsel %vm675_vm3, %v5736_v25, 0.0  ;;  %v5738_v53 = vpop.eup %5737 }
0x115e   :  { %2719 = vadd.xlane.f32.xlu1 %v2718_v56  ;;  %5402 = vmatprep.subr.msk.bf16.mxu0 %vm6001_vm2, %v6448_v12  ;;  %v2715_v18 = vsel %vm675_vm3, %v5738_v53, 0.0 }
0x1162   :  { %2716 = vadd.xlane.f32.xlu1 %v2715_v18 }
0x1164   :  { %v5740_v58 = vpop.eup %5739 }
0x1165   :  { %v2724_v57 = vsel %vm685_vm4, %v5740_v58, 0.0  ;;  %v5742_v15 = vpop.eup %5741 }
0x1166   :  { %2725 = vadd.xlane.f32.xlu1 %v2724_v57  ;;  %v2721_v19 = vsel %vm675_vm3, %v5742_v15, 0.0 }
0x116a   :  { %2722 = vadd.xlane.f32.xlu1 %v2721_v19 }
0x117b   :  { %5625 = vrot.lane.b32.xlu1 %v6438_v23, %s5831_s16 }
0x11eb   :  { %v2720_v36 = vpop.xlane.xlu1 %2719 }
0x11ec   :  { %5743 = vrcp.f32 %v2720_v36 }
0x11ef   :  { %v2717_v20 = vpop.xlane.xlu1 %2716 }
0x11f0   :  { %5745 = vrcp.f32 %v2717_v20 }
0x11f3   :  { %v2726_v4 = vpop.xlane.xlu1 %2725 }
0x11f4   :  { %5747 = vrcp.f32 %v2726_v4 }
0x11f6   :  { %v5744_v26 = vpop.eup %5743 }
0x11f7   :  { %v2723_v7 = vpop.xlane.xlu1 %2722  ;;  %v2730_v16 = vmul.f32 %v5744_v26, %v5736_v25 }
0x11f8   :  { %5749 = vrcp.f32 %v2723_v7 }
0x11fa   :  { %v5746_v48 = vpop.eup %5745 }
0x11fb   :  { %v5626_v11 = vpop.permute.xlu1 %5625  ;;  %v2728_v22 = vmul.f32 %v5746_v48, %v5738_v53 }
0x11fc   :  { %v5628_v44 = vunpack.i.h.bf16 %v5626_v11  ;;  %v5627_v14 = vunpack.i.l.bf16 %v5626_v11 }
0x11fd   :  { %5060 = vmatprep.mubr.msk.f32.mxu0 %vm675_vm3, %v2728_v22 }
0x11fe   :  { %v6460_v61 = vpack.c.bf16 %v5628_v44, %v5627_v14  ;;  %5061 = vmatmul.mubr.msk.f32.vlgmr.msra.gmra.mrb[36].mxu0 %vm675_vm3, %v2730_v16  ;;  %v5748_v56 = vpop.eup %5747 }
0x11ff   :  { %5405 = vmatpush3.bf16.xpose.msk.msra.mxu0 %vm6001_vm2, %v6448_v12  ;;  %v2734_v25 = vmul.f32 %v5748_v56, %v5740_v58 }
0x1200   :  { %5408 = vmatprep.subr.msk.bf16.mxu0 %vm6001_vm2, %v6460_v61 }
0x1202   :  { %v5750_v18 = vpop.eup %5749 }
0x1203   :  { %v2732_v53 = vmul.f32 %v5750_v18, %v5742_v15 }
0x1205   :  { %5063 = vmatprep.mubr.msk.f32.mxu0 %vm675_vm3, %v2732_v53 }
0x1206   :  { %5064 = vmatmul.mubr.msk.f32.gmra.mrb[38].mxu0 %vm675_vm3, %v2734_v25 }
0x1207   :  { %5411 = vmatpush3.bf16.xpose.msk.msra.mxu0 %vm6001_vm2, %v6460_v61  ;;  %5074 = vmatprep.mubr.msk.f32.mxu0 %vm565_vm1, %v5937_v31 }
0x1208   :  { %5435 = vmatprep.subr.bf16.mxu0 %v6202_v35 }
0x120e   :  { %5075 = vmatmul.mubr.msk.f32.vlgmr.msra.gmra.mrb[40].mxu0 %vm565_vm1, %v5935_v30 }
0x120f   :  { %5077 = vmatprep.mubr.msk.f32.mxu0 %vm565_vm1, %v5947_v34  ;;  %5437 = vmatpush3.bf16.msra.mxu0 %v6202_v35 }
0x1210   :  { %5440 = vmatprep.subr.msk.bf16.mxu0 %vm6063_vm7, %v6204_v9 }
0x1212   :  { %5078 = vmatmul.mubr.msk.f32.gmra.mrb[42].mxu0 %vm565_vm1, %v5945_v33 }
0x1213   :  { %5443 = vmatpush3.bf16.msk.msra.mxu0 %vm6063_vm7, %v6204_v9 }
0x1214   :  { %5446 = vmatprep.subr.msk.bf16.mxu0 %vm6001_vm2, %v6448_v12 }
0x12d1   :  { %v6493_v58 = vpop.f32.mrb[36].mxu0 }
0x12d2   :  { %7003 = vst [vmem:[#allocation17_spill] sm:$0xff] %v6493_v58  ;;  %v6495_v57 = vpop.f32.mrb[37].mxu0 }
0x12d9   :  { %v6497_v35 = vpop.f32.mrb[38].mxu0 }
0x12da   :  { %7004 = vst [vmem:[#allocation18_spill] sm:$0xff] %v6497_v35  ;;  %v6499_v15 = vpop.f32.mrb[39].mxu0 }
0x12e1   :  { %v5076_v19 = vpop.f32.mrb[40].mxu0 }
0x12e2   :  { %v2992_v36 = vmul.f32 0.5, %v5076_v19  ;;  %v2972_v20 = vpop.f32.mrb[41].mxu0 }
0x12e3   :  { %v2991_v4 = vmul.f32 0.5, %v2972_v20 }
0x12e4   :  { %v2998_v7 = vsel %vm675_vm3, %v2992_v36, -inf }
0x12e5   :  { %2999 = vmax.xlane.f32.xlu0 %v2998_v7  ;;  %v5079_v9 = vpop.f32.mrb[42].mxu0  ;;  %v2995_v26 = vsel %vm675_vm3, %v2991_v4, -inf }
0x12e6   :  { %2996 = vmax.xlane.f32.xlu1 %v2995_v26  ;;  %v2982_v48 = vpop.f32.mrb[43].mxu0  ;;  %v2994_v22 = vmul.f32 0.5, %v5079_v9 }
0x12e7   :  { %v2993_v11 = vmul.f32 0.5, %v2982_v48 }
0x12e8   :  { %v3004_v44 = vsel %vm685_vm4, %v2994_v22, -inf }
0x12e9   :  { %v3001_v16 = vsel %vm675_vm3, %v2993_v11, -inf }
0x12ea   :  { %3002 = vmax.xlane.f32.xlu1 %v3001_v16 }
0x12ee   :  { %3005 = vmax.xlane.f32.xlu1 %v3004_v44 }
0x1372   :  { %v3000_v14 = vpop.xlane.xlu0 %2999 }
0x1373   :  { %v3008_v56 = vsub.f32 %v2992_v36, %v3000_v14  ;;  %v2997_v18 = vpop.xlane.xlu1 %2996 }
0x1374   :  { %v3007_v53 = vsub.f32 %v2991_v4, %v2997_v18 }
0x1375   :  { %v3013_v25 = vmul.f32 1.442695, %v3008_v56 }
0x1376   :  { %v3011_v19 = vmul.f32 1.442695, %v3007_v53 }
0x1377   :  { %5751 = vpow2.f32 %v3013_v25  ;;  %v3003_v20 = vpop.xlane.xlu1 %3002 }
0x1378   :  { %5753 = vpow2.f32 %v3011_v19  ;;  %v3009_v7 = vsub.f32 %v2993_v11, %v3003_v20 }
0x137a   :  { %v3015_v26 = vmul.f32 1.442695, %v3009_v7 }
0x137b   :  { %v3006_v35 = vpop.xlane.xlu1 %3005 }
0x137c   :  { %5755 = vpow2.f32 %v3015_v26  ;;  %v3010_v9 = vsub.f32 %v2994_v22, %v3006_v35 }
0x137e   :  { %v3017_v48 = vmul.f32 1.442695, %v3010_v9 }
0x1380   :  { %5757 = vpow2.f32 %v3017_v48 }
0x1381   :  { %v5752_v16 = vpop.eup %5751 }
0x1382   :  { %v5754_v58 = vpop.eup %5753  ;;  %v3022_v44 = vsel %vm675_vm3, %v5752_v16, 0.0 }
0x1383   :  { %3023 = vadd.xlane.f32.xlu0 %v3022_v44  ;;  %v3019_v36 = vsel %vm675_vm3, %v5754_v58, 0.0 }
0x1384   :  { %3020 = vadd.xlane.f32.xlu1 %v3019_v36 }
0x1386   :  { %v5756_v4 = vpop.eup %5755 }
0x1387   :  { %v3025_v14 = vsel %vm675_vm3, %v5756_v4, 0.0 }
0x1388   :  { %3026 = vadd.xlane.f32.xlu1 %v3025_v14 }
0x138a   :  { %v5758_v56 = vpop.eup %5757 }
0x138b   :  { %v3028_v11 = vsel %vm685_vm4, %v5758_v56, 0.0 }
0x138c   :  { %3029 = vadd.xlane.f32.xlu0 %v3028_v11 }
0x1399   :  { %5630 = vrot.lane.b32.xlu1 %v6426_v0, %s5832_s0 }
0x13a2   :  { %5635 = vrot.lane.b32.xlu0 %v6438_v23, %s5832_s0 }
0x1410   :  { %v3024_v22 = vpop.xlane.xlu0 %3023 }
0x1411   :  { %v3021_v35 = vpop.xlane.xlu1 %3020 }
0x1412   :  { %5759 = vrcp.f32 %v3021_v35 }
0x1413   :  { %5761 = vrcp.f32 %v3024_v22 }
0x1415   :  { %v3027_v18 = vpop.xlane.xlu1 %3026 }
0x1416   :  { %5763 = vrcp.f32 %v3027_v18 }
0x1419   :  { %v3030_v53 = vpop.xlane.xlu0 %3029  ;;  %v5631_v25 = vpop.permute.xlu1 %5630 }
0x141a   :  { %v5633_v19 = vunpack.i.h.bf16 %v5631_v25  ;;  %v5632_v20 = vunpack.i.l.bf16 %v5631_v25  ;;  %5765 = vrcp.f32 %v3030_v53 }
0x141c   :  { %v5760_v7 = vpop.eup %5759  ;;  %v6513_v26 = vpack.c.bf16 %v5633_v19, %v5632_v20 }
0x141d   :  { %v5636_v9 = vpop.permute.xlu0 %5635  ;;  %v3032_v48 = vmul.f32 %v5760_v7, %v5754_v58  ;;  %v5762_v36 = vpop.eup %5761 }
0x141e   :  { %v5638_v0 = vunpack.i.h.bf16 %v5636_v9  ;;  %v5637_v44 = vunpack.i.l.bf16 %v5636_v9  ;;  %5413 = vmatprep.subr.bf16.mxu1 %v6513_v26  ;;  %v3034_v58 = vmul.f32 %v5762_v36, %v5752_v16 }
0x141f   :  { %5415 = vmatpush3.bf16.msra.mxu1 %v6513_v26  ;;  %5088 = vmatprep.mubr.msk.f32.mxu1 %vm675_vm3, %v3032_v48 }
0x1420   :  { %v6518_v23 = vpack.c.bf16 %v5638_v0, %v5637_v44  ;;  %v5764_v14 = vpop.eup %5763 }
0x1421   :  { %v3036_v35 = vmul.f32 %v5764_v14, %v5756_v4 }
0x1422   :  { %5418 = vmatprep.subr.msk.bf16.mxu1 %vm6063_vm7, %v6518_v23 }
0x1423   :  { %5421 = vmatpush3.bf16.msk.msra.mxu1 %vm6063_vm7, %v6518_v23 }
0x1424   :  { %5424 = vmatprep.subr.msk.bf16.mxu1 %vm6001_vm2, %v6146_v24  ;;  %v5766_v11 = vpop.eup %5765 }
0x1425   :  { %v3038_v22 = vmul.f32 %v5766_v11, %v5758_v56 }
0x1426   :  { %5089 = vmatmul.mubr.msk.f32.vlgmr.msra.gmra.mrb[36].mxu1 %vm675_vm3, %v3034_v58 }
0x1427   :  { %5091 = vmatprep.mubr.msk.f32.mxu1 %vm675_vm3, %v3036_v35 }
0x142a   :  { %5092 = vmatmul.mubr.msk.f32.gmra.mrb[38].mxu1 %vm675_vm3, %v3038_v22 }
0x142b   :  { %5102 = vmatprep.mubr.msk.f32.mxu1 %vm565_vm1, %v6420_v3 }
0x142c   :  { %5427 = vmatpush3.bf16.xpose.msk.msra.mxu1 %vm6001_vm2, %v6146_v24 }
0x142d   :  { %5430 = vmatprep.subr.msk.bf16.mxu1 %vm6001_vm2, %v6152_v51 }
0x1434   :  { %5433 = vmatpush3.bf16.xpose.msk.msra.mxu1 %vm6001_vm2, %v6152_v51 }
0x1435   :  { %5457 = vmatprep.subr.bf16.mxu1 %v6513_v26 }
0x143b   :  { %5103 = vmatmul.mubr.msk.f32.vlgmr.msra.gmra.mrb[40].mxu1 %vm565_vm1, %v6418_v8 }
0x143c   :  { %5105 = vmatprep.mubr.msk.f32.mxu1 %vm565_vm1, %v6432_v29  ;;  %5459 = vmatpush3.bf16.msra.mxu1 %v6513_v26 }
0x143d   :  { %5462 = vmatprep.subr.msk.bf16.mxu1 %vm6063_vm7, %v6518_v23 }
0x143f   :  { %5106 = vmatmul.mubr.msk.f32.gmra.mrb[42].mxu1 %vm565_vm1, %v6430_v10 }
0x1440   :  { %5465 = vmatpush3.bf16.msk.msra.mxu1 %vm6063_vm7, %v6518_v23 }
0x1441   :  { %5468 = vmatprep.subr.msk.bf16.mxu1 %vm6001_vm2, %v6258_v37 }
0x14f9   :  { %v6560_v24 = vpop.f32.mrb[36].mxu1 }
0x14fa   :  { %v6562_v51 = vpop.f32.mrb[37].mxu1 }
0x14fd   :  { %v6564_v16 = vpop.f32.mrb[38].mxu1 }
0x14fe   :  { %7005 = vst [vmem:[#allocation19_spill] sm:$0xff] %v6564_v16  ;;  %v6566_v4 = vpop.f32.mrb[39].mxu1 }
0x14ff   :  { %7006 = vst [vmem:[#allocation20_spill] sm:$0xff] %v6566_v4 }
0x150e   :  { %v5104_v56 = vpop.f32.mrb[40].mxu1 }
0x150f   :  { %v3293_v18 = vmul.f32 0.5, %v5104_v56  ;;  %v3273_v53 = vpop.f32.mrb[41].mxu1 }
0x1510   :  { %v3292_v25 = vmul.f32 0.5, %v3273_v53 }
0x1511   :  { %v3299_v19 = vsel %vm675_vm3, %v3293_v18, -inf }
0x1512   :  { %3300 = vmax.xlane.f32.xlu0 %v3299_v19  ;;  %v5107_v20 = vpop.f32.mrb[42].mxu1  ;;  %v3296_v7 = vsel %vm675_vm3, %v3292_v25, -inf }
0x1513   :  { %v3295_v9 = vmul.f32 0.5, %v5107_v20  ;;  %3297 = vmax.xlane.f32.xlu1 %v3296_v7  ;;  %v3283_v48 = vpop.f32.mrb[43].mxu1 }
0x1514   :  { %v3294_v0 = vmul.f32 0.5, %v3283_v48 }
0x1515   :  { %v3305_v44 = vsel %vm685_vm4, %v3295_v9, -inf }
0x1516   :  { %3306 = vmax.xlane.f32.xlu0 %v3305_v44  ;;  %v3302_v36 = vsel %vm675_vm3, %v3294_v0, -inf }
0x1517   :  { %3303 = vmax.xlane.f32.xlu1 %v3302_v36 }
0x159f   :  { %v3301_v14 = vpop.xlane.xlu0 %3300 }
0x15a0   :  { %v3309_v58 = vsub.f32 %v3293_v18, %v3301_v14  ;;  %v3298_v11 = vpop.xlane.xlu1 %3297 }
0x15a1   :  { %v3308_v35 = vsub.f32 %v3292_v25, %v3298_v11 }
0x15a2   :  { %v3314_v22 = vmul.f32 1.442695, %v3309_v58 }
0x15a3   :  { %v3312_v56 = vmul.f32 1.442695, %v3308_v35  ;;  %v3307_v53 = vpop.xlane.xlu0 %3306 }
0x15a4   :  { %5767 = vpow2.f32 %v3314_v22  ;;  %v3311_v19 = vsub.f32 %v3295_v9, %v3307_v53  ;;  %v3304_v4 = vpop.xlane.xlu1 %3303 }
0x15a5   :  { %5769 = vpow2.f32 %v3312_v56  ;;  %v3310_v20 = vsub.f32 %v3294_v0, %v3304_v4 }
0x15a6   :  { %v3318_v7 = vmul.f32 1.442695, %v3311_v19 }
0x15a7   :  { %v3316_v48 = vmul.f32 1.442695, %v3310_v20 }
0x15a8   :  { %5771 = vpow2.f32 %v3318_v7 }
0x15a9   :  { %5773 = vpow2.f32 %v3316_v48 }
0x15ae   :  { %v5768_v44 = vpop.eup %5767 }
0x15af   :  { %v5770_v16 = vpop.eup %5769  ;;  %v3323_v36 = vsel %vm675_vm3, %v5768_v44, 0.0 }
0x15b0   :  { %3324 = vadd.xlane.f32.xlu0 %v3323_v36  ;;  %v3320_v18 = vsel %vm675_vm3, %v5770_v16, 0.0 }
0x15b1   :  { %3321 = vadd.xlane.f32.xlu1 %v3320_v18 }
0x15b2   :  { %v5772_v25 = vpop.eup %5771 }
0x15b3   :  { %v5774_v14 = vpop.eup %5773  ;;  %v3329_v58 = vsel %vm685_vm4, %v5772_v25, 0.0 }
0x15b4   :  { %3330 = vadd.xlane.f32.xlu0 %v3329_v58  ;;  %v3326_v9 = vsel %vm675_vm3, %v5774_v14, 0.0 }
0x15b5   :  { %3327 = vadd.xlane.f32.xlu1 %v3326_v9 }
0x163d   :  { %v3325_v4 = vpop.xlane.xlu0 %3324 }
0x163e   :  { %5775 = vrcp.f32 %v3325_v4  ;;  %v3322_v0 = vpop.xlane.xlu1 %3321 }
0x163f   :  { %5777 = vrcp.f32 %v3322_v0 }
0x1641   :  { %v3331_v11 = vpop.xlane.xlu0 %3330 }
0x1642   :  { %5779 = vrcp.f32 %v3331_v11  ;;  %v3328_v35 = vpop.xlane.xlu1 %3327 }
0x1643   :  { %5781 = vrcp.f32 %v3328_v35 }
0x1648   :  { %v5776_v22 = vpop.eup %5775 }
0x1649   :  { %v5778_v56 = vpop.eup %5777  ;;  %v3335_v19 = vmul.f32 %v5776_v22, %v5768_v44 }
0x164a   :  { %v3333_v53 = vmul.f32 %v5778_v56, %v5770_v16 }
0x164c   :  { %v5780_v20 = vpop.eup %5779  ;;  %5116 = vmatprep.mubr.msk.f32.mxu0 %vm675_vm3, %v3333_v53 }
0x164d   :  { %v5782_v7 = vpop.eup %5781  ;;  %5117 = vmatmul.mubr.msk.f32.vlgmr.msra.gmra.mrb[44].mxu0 %vm675_vm3, %v3335_v19  ;;  %v3339_v36 = vmul.f32 %v5780_v20, %v5772_v25 }
0x164e   :  { %5449 = vmatpush3.bf16.xpose.msk.msra.mxu0 %vm6001_vm2, %v6448_v12  ;;  %v3337_v48 = vmul.f32 %v5782_v7, %v5774_v14 }
0x164f   :  { %5452 = vmatprep.subr.msk.bf16.mxu0 %vm6001_vm2, %v6460_v61 }
0x1650   :  { %5119 = vmatprep.mubr.msk.f32.mxu0 %vm675_vm3, %v3337_v48 }
0x1651   :  { %5120 = vmatmul.mubr.msk.f32.gmra.mrb[46].mxu0 %vm675_vm3, %v3339_v36 }
0x1652   :  { %5130 = vmatprep.mubr.msk.f32.mxu0 %vm565_vm1, %v5963_v39 }
0x1656   :  { %5455 = vmatpush3.bf16.xpose.msk.msra.mxu0 %vm6001_vm2, %v6460_v61 }
0x1657   :  { %5479 = vmatprep.subr.bf16.mxu0 %v6315_v27 }
0x165d   :  { %5131 = vmatmul.mubr.msk.f32.vlgmr.msra.gmra.mrb[48].mxu0 %vm565_vm1, %v5961_v38 }
0x165e   :  { %5133 = vmatprep.mubr.msk.f32.mxu0 %vm565_vm1, %v5973_v43  ;;  %5481 = vmatpush3.bf16.msra.mxu0 %v6315_v27 }
0x165f   :  { %5484 = vmatprep.subr.msk.bf16.mxu0 %vm6063_vm7, %v6317_v21 }
0x1661   :  { %5134 = vmatmul.mubr.msk.f32.gmra.mrb[50].mxu0 %vm565_vm1, %v5968_v41 }
0x1662   :  { %5487 = vmatpush3.bf16.msk.msra.mxu0 %vm6063_vm7, %v6317_v21 }
0x1663   :  { %5490 = vmatprep.subr.msk.bf16.mxu0 %vm6001_vm2, %v6448_v12 }
0x1720   :  { %v6608_v16 = vpop.f32.mrb[44].mxu0 }
0x1721   :  { %v6610_v44 = vpop.f32.mrb[45].mxu0 }
0x1724   :  { %v6612_v27 = vpop.f32.mrb[46].mxu0 }
0x1725   :  { %v6614_v18 = vpop.f32.mrb[47].mxu0 }
0x1730   :  { %v5132_v25 = vpop.f32.mrb[48].mxu0 }
0x1731   :  { %v3581_v14 = vmul.f32 0.5, %v5132_v25  ;;  %v3561_v58 = vpop.f32.mrb[49].mxu0 }
0x1732   :  { %v3580_v9 = vmul.f32 0.5, %v3561_v58 }
0x1733   :  { %v3587_v4 = vsel %vm675_vm3, %v3581_v14, -inf }
0x1734   :  { %3588 = vmax.xlane.f32.xlu0 %v3587_v4  ;;  %v5135_v21 = vpop.f32.mrb[50].mxu0  ;;  %v3584_v0 = vsel %vm675_vm3, %v3580_v9, -inf }
0x1735   :  { %v3583_v11 = vmul.f32 0.5, %v5135_v21  ;;  %3585 = vmax.xlane.f32.xlu1 %v3584_v0  ;;  %v3571_v35 = vpop.f32.mrb[51].mxu0 }
0x1736   :  { %v3582_v22 = vmul.f32 0.5, %v3571_v35 }
0x1737   :  { %v3593_v56 = vsel %vm685_vm4, %v3583_v11, -inf }
0x1738   :  { %3594 = vmax.xlane.f32.xlu0 %v3593_v56  ;;  %v3590_v53 = vsel %vm675_vm3, %v3582_v22, -inf }
0x1739   :  { %3591 = vmax.xlane.f32.xlu1 %v3590_v53 }
0x17c1   :  { %v3589_v19 = vpop.xlane.xlu0 %3588 }
0x17c2   :  { %v3597_v20 = vsub.f32 %v3581_v14, %v3589_v19  ;;  %v3586_v7 = vpop.xlane.xlu1 %3585 }
0x17c3   :  { %v3596_v48 = vsub.f32 %v3580_v9, %v3586_v7 }
0x17c4   :  { %v3602_v36 = vmul.f32 1.442695, %v3597_v20 }
0x17c5   :  { %v3600_v25 = vmul.f32 1.442695, %v3596_v48  ;;  %v3595_v58 = vpop.xlane.xlu0 %3594 }
0x17c6   :  { %5783 = vpow2.f32 %v3602_v36  ;;  %v3599_v4 = vsub.f32 %v3583_v11, %v3595_v58  ;;  %v3592_v41 = vpop.xlane.xlu1 %3591 }
0x17c7   :  { %5785 = vpow2.f32 %v3600_v25  ;;  %v3598_v21 = vsub.f32 %v3582_v22, %v3592_v41 }
0x17c8   :  { %v3606_v0 = vmul.f32 1.442695, %v3599_v4 }
0x17c9   :  { %v3604_v35 = vmul.f32 1.442695, %v3598_v21 }
0x17ca   :  { %5787 = vpow2.f32 %v3606_v0 }
0x17cb   :  { %5789 = vpow2.f32 %v3604_v35 }
0x17d0   :  { %v5784_v56 = vpop.eup %5783 }
0x17d1   :  { %v5786_v43 = vpop.eup %5785  ;;  %v3611_v53 = vsel %vm675_vm3, %v5784_v56, 0.0 }
0x17d2   :  { %3612 = vadd.xlane.f32.xlu0 %v3611_v53  ;;  %v3608_v14 = vsel %vm675_vm3, %v5786_v43, 0.0 }
0x17d3   :  { %3609 = vadd.xlane.f32.xlu1 %v3608_v14 }
0x17d4   :  { %v5788_v9 = vpop.eup %5787 }
0x17d5   :  { %v5790_v19 = vpop.eup %5789  ;;  %v3617_v20 = vsel %vm685_vm4, %v5788_v9, 0.0 }
0x17d6   :  { %3618 = vadd.xlane.f32.xlu0 %v3617_v20  ;;  %v3614_v11 = vsel %vm675_vm3, %v5790_v19, 0.0 }
0x17d7   :  { %3615 = vadd.xlane.f32.xlu1 %v3614_v11 }
0x185f   :  { %v3613_v41 = vpop.xlane.xlu0 %3612 }
0x1860   :  { %5791 = vrcp.f32 %v3613_v41  ;;  %v3610_v22 = vpop.xlane.xlu1 %3609 }
0x1861   :  { %5793 = vrcp.f32 %v3610_v22 }
0x1863   :  { %v3619_v7 = vpop.xlane.xlu0 %3618 }
0x1864   :  { %5795 = vrcp.f32 %v3619_v7  ;;  %v3616_v48 = vpop.xlane.xlu1 %3615 }
0x1865   :  { %5797 = vrcp.f32 %v3616_v48 }
0x186a   :  { %v5792_v36 = vpop.eup %5791 }
0x186b   :  { %v5794_v25 = vpop.eup %5793  ;;  %v3623_v4 = vmul.f32 %v5792_v36, %v5784_v56 }
0x186c   :  { %v3621_v58 = vmul.f32 %v5794_v25, %v5786_v43 }
0x186e   :  { %v5796_v21 = vpop.eup %5795  ;;  %5144 = vmatprep.mubr.msk.f32.mxu1 %vm675_vm3, %v3621_v58 }
0x186f   :  { %v5798_v0 = vpop.eup %5797  ;;  %5145 = vmatmul.mubr.msk.f32.vlgmr.msra.gmra.mrb[44].mxu1 %vm675_vm3, %v3623_v4  ;;  %v3627_v53 = vmul.f32 %v5796_v21, %v5788_v9 }
0x1870   :  { %5471 = vmatpush3.bf16.xpose.msk.msra.mxu1 %vm6001_vm2, %v6258_v37  ;;  %v3625_v35 = vmul.f32 %v5798_v0, %v5790_v19 }
0x1871   :  { %5474 = vmatprep.subr.msk.bf16.mxu1 %vm6001_vm2, %v6264_v47 }
0x1872   :  { %5147 = vmatprep.mubr.msk.f32.mxu1 %vm675_vm3, %v3625_v35 }
0x1873   :  { %5148 = vmatmul.mubr.msk.f32.gmra.mrb[46].mxu1 %vm675_vm3, %v3627_v53 }
0x1874   :  { %5158 = vmatprep.mubr.msk.f32.mxu1 %vm565_vm1, %v6420_v3 }
0x1878   :  { %5477 = vmatpush3.bf16.xpose.msk.msra.mxu1 %vm6001_vm2, %v6264_v47 }
0x1879   :  { %5501 = vmatprep.subr.bf16.mxu1 %v6513_v26 }
0x187f   :  { %5159 = vmatmul.mubr.msk.f32.vlgmr.msra.gmra.mrb[48].mxu1 %vm565_vm1, %v6418_v8 }
0x1880   :  { %5161 = vmatprep.mubr.msk.f32.mxu1 %vm565_vm1, %v6432_v29  ;;  %5503 = vmatpush3.bf16.msra.mxu1 %v6513_v26 }
0x1881   :  { %5506 = vmatprep.subr.msk.bf16.mxu1 %vm6063_vm7, %v6518_v23 }
0x1883   :  { %5162 = vmatmul.mubr.msk.f32.gmra.mrb[50].mxu1 %vm565_vm1, %v6430_v10 }
0x1884   :  { %5509 = vmatpush3.bf16.msk.msra.mxu1 %vm6063_vm7, %v6518_v23 }
0x1942   :  { %v6653_v43 = vpop.f32.mrb[44].mxu1 }
0x1943   :  { %v6655_v37 = vpop.f32.mrb[45].mxu1 }
0x1946   :  { %v6657_v47 = vpop.f32.mrb[46].mxu1 }
0x1947   :  { %v6659_v56 = vpop.f32.mrb[47].mxu1 }
0x1952   :  { %v5160_v26 = vpop.f32.mrb[48].mxu1 }
0x1953   :  { %v3869_v14 = vmul.f32 0.5, %v5160_v26  ;;  %v3849_v9 = vpop.f32.mrb[49].mxu1 }
0x1954   :  { %v3868_v19 = vmul.f32 0.5, %v3849_v9 }
0x1955   :  { %v3875_v20 = vsel %vm675_vm3, %v3869_v14, -inf }
0x1956   :  { %3876 = vmax.xlane.f32.xlu0 %v3875_v20  ;;  %v5163_v11 = vpop.f32.mrb[50].mxu1  ;;  %v3872_v41 = vsel %vm675_vm3, %v3868_v19, -inf }
0x1957   :  { %v3871_v63 = vmul.f32 0.5, %v5163_v11  ;;  %3873 = vmax.xlane.f32.xlu1 %v3872_v41  ;;  %v3859_v23 = vpop.f32.mrb[51].mxu1 }
0x1958   :  { %v3870_v22 = vmul.f32 0.5, %v3859_v23 }
0x1959   :  { %v3881_v7 = vsel %vm685_vm4, %v3871_v63, -inf }
0x195a   :  { %3882 = vmax.xlane.f32.xlu0 %v3881_v7  ;;  %v3878_v48 = vsel %vm675_vm3, %v3870_v22, -inf }
0x195b   :  { %3879 = vmax.xlane.f32.xlu1 %v3878_v48 }
0x19e3   :  { %v3877_v36 = vpop.xlane.xlu0 %3876 }
0x19e4   :  { %v3885_v25 = vsub.f32 %v3869_v14, %v3877_v36  ;;  %v3874_v58 = vpop.xlane.xlu1 %3873 }
0x19e5   :  { %v3884_v4 = vsub.f32 %v3868_v19, %v3874_v58 }
0x19e6   :  { %v3890_v21 = vmul.f32 1.442695, %v3885_v25 }
0x19e7   :  { %v3888_v0 = vmul.f32 1.442695, %v3884_v4  ;;  %v3883_v35 = vpop.xlane.xlu0 %3882 }
0x19e8   :  { %5799 = vpow2.f32 %v3890_v21  ;;  %v3887_v53 = vsub.f32 %v3871_v63, %v3883_v35  ;;  %v3880_v26 = vpop.xlane.xlu1 %3879 }
0x19e9   :  { %5801 = vpow2.f32 %v3888_v0  ;;  %v3886_v9 = vsub.f32 %v3870_v22, %v3880_v26 }
0x19ea   :  { %v3894_v20 = vmul.f32 1.442695, %v3887_v53 }
0x19eb   :  { %v3892_v11 = vmul.f32 1.442695, %v3886_v9 }
0x19ec   :  { %5803 = vpow2.f32 %v3894_v20 }
0x19ed   :  { %5805 = vpow2.f32 %v3892_v11 }
0x19f2   :  { %v5800_v41 = vpop.eup %5799 }
0x19f3   :  { %v5802_v23 = vpop.eup %5801  ;;  %v3899_v7 = vsel %vm675_vm3, %v5800_v41, 0.0 }
0x19f4   :  { %3900 = vadd.xlane.f32.xlu0 %v3899_v7  ;;  %v3896_v14 = vsel %vm675_vm3, %v5802_v23, 0.0 }
0x19f5   :  { %3897 = vadd.xlane.f32.xlu1 %v3896_v14 }
0x19f6   :  { %v5804_v19 = vpop.eup %5803 }
0x19f7   :  { %v5806_v48 = vpop.eup %5805  ;;  %v3905_v36 = vsel %vm685_vm4, %v5804_v19, 0.0 }
0x19f8   :  { %3906 = vadd.xlane.f32.xlu0 %v3905_v36  ;;  %v3902_v63 = vsel %vm675_vm3, %v5806_v48, 0.0 }
0x19f9   :  { %3903 = vadd.xlane.f32.xlu1 %v3902_v63 }
0x1a81   :  { %v3901_v22 = vpop.xlane.xlu0 %3900 }
0x1a82   :  { %5807 = vrcp.f32 %v3901_v22  ;;  %v3898_v25 = vpop.xlane.xlu1 %3897 }
0x1a83   :  { %5809 = vrcp.f32 %v3898_v25 }
0x1a85   :  { %v3907_v58 = vpop.xlane.xlu0 %3906 }
0x1a86   :  { %5811 = vrcp.f32 %v3907_v58  ;;  %v3904_v4 = vpop.xlane.xlu1 %3903 }
0x1a87   :  { %5813 = vrcp.f32 %v3904_v4 }
0x1a8c   :  { %v5808_v21 = vpop.eup %5807 }
0x1a8d   :  { %v5810_v0 = vpop.eup %5809  ;;  %v3911_v53 = vmul.f32 %v5808_v21, %v5800_v41 }
0x1a8e   :  { %v3909_v35 = vmul.f32 %v5810_v0, %v5802_v23 }
0x1a90   :  { %v5812_v26 = vpop.eup %5811  ;;  %5172 = vmatprep.mubr.msk.f32.mxu0 %vm675_vm3, %v3909_v35 }
0x1a91   :  { %v5814_v9 = vpop.eup %5813  ;;  %5173 = vmatmul.mubr.msk.f32.vlgmr.msra.gmra.mrb[52].mxu0 %vm675_vm3, %v3911_v53  ;;  %v3915_v11 = vmul.f32 %v5812_v26, %v5804_v19 }
0x1a92   :  { %5493 = vmatpush3.bf16.xpose.msk.msra.mxu0 %vm6001_vm2, %v6448_v12  ;;  %v3913_v20 = vmul.f32 %v5814_v9, %v5806_v48 }
0x1a93   :  { %5496 = vmatprep.subr.msk.bf16.mxu0 %vm6001_vm2, %v6460_v61 }
0x1a94   :  { %5175 = vmatprep.mubr.msk.f32.mxu0 %vm675_vm3, %v3913_v20 }
0x1a95   :  { %5176 = vmatmul.mubr.msk.f32.gmra.mrb[54].mxu0 %vm675_vm3, %v3915_v11 }
0x1a96   :  { %5186 = vmatprep.mubr.msk.f32.mxu0 %vm565_vm1, %v6035_v2 }
0x1a9a   :  { %5499 = vmatpush3.bf16.xpose.msk.msra.mxu0 %vm6001_vm2, %v6460_v61 }
0x1aa1   :  { %5187 = vmatmul.mubr.msk.f32.vlgmr.msra.gmra.mrb[56].mxu0 %vm565_vm1, %v6033_v1 }
0x1aa2   :  { %5189 = vmatprep.mubr.msk.f32.mxu0 %vm565_vm1, %v6043_v6 }
0x1aa5   :  { %5190 = vmatmul.mubr.msk.f32.gmra.mrb[58].mxu0 %vm565_vm1, %v6041_v5 }
0x1b64   :  { %v6690_v12 = vpop.f32.mrb[52].mxu0 }
0x1b65   :  { %v6692_v41 = vpop.f32.mrb[53].mxu0 }
0x1b68   :  { %v6694_v23 = vpop.f32.mrb[54].mxu0 }
0x1b69   :  { %v6696_v7 = vpop.f32.mrb[55].mxu0 }
0x1b74   :  { %v5188_v14 = vpop.f32.mrb[56].mxu0 }
0x1b75   :  { %v4157_v55 = vmul.f32 0.5, %v5188_v14  ;;  %v4137_v61 = vpop.f32.mrb[57].mxu0 }
0x1b76   :  { %v4156_v19 = vmul.f32 0.5, %v4137_v61 }
0x1b77   :  { %v4163_v48 = vsel %vm675_vm3, %v4157_v55, -inf }
0x1b78   :  { %4164 = vmax.xlane.f32.xlu0 %v4163_v48  ;;  %v5191_v36 = vpop.f32.mrb[58].mxu0  ;;  %v4160_v63 = vsel %vm675_vm3, %v4156_v19, -inf }
0x1b79   :  { %v4159_v22 = vmul.f32 0.5, %v5191_v36  ;;  %4161 = vmax.xlane.f32.xlu1 %v4160_v63  ;;  %v4147_v25 = vpop.f32.mrb[59].mxu0 }
0x1b7a   :  { %v4158_v58 = vmul.f32 0.5, %v4147_v25 }
0x1b7b   :  { %v4169_v4 = vsel %vm685_vm4, %v4159_v22, -inf }
0x1b7c   :  { %4170 = vmax.xlane.f32.xlu0 %v4169_v4  ;;  %v4166_v21 = vsel %vm675_vm3, %v4158_v58, -inf }
0x1b7d   :  { %4167 = vmax.xlane.f32.xlu1 %v4166_v21 }
0x1c05   :  { %v4165_v0 = vpop.xlane.xlu0 %4164 }
0x1c06   :  { %v4173_v35 = vsub.f32 %v4157_v55, %v4165_v0  ;;  %v4162_v53 = vpop.xlane.xlu1 %4161 }
0x1c07   :  { %v4172_v26 = vsub.f32 %v4156_v19, %v4162_v53 }
0x1c08   :  { %v4178_v9 = vmul.f32 1.442695, %v4173_v35 }
0x1c09   :  { %v4176_v20 = vmul.f32 1.442695, %v4172_v26  ;;  %v4171_v11 = vpop.xlane.xlu0 %4170 }
0x1c0a   :  { %5815 = vpow2.f32 %v4178_v9  ;;  %v4175_v14 = vsub.f32 %v4159_v22, %v4171_v11  ;;  %v4168_v61 = vpop.xlane.xlu1 %4167 }
0x1c0b   :  { %5817 = vpow2.f32 %v4176_v20  ;;  %v4174_v48 = vsub.f32 %v4158_v58, %v4168_v61 }
0x1c0c   :  { %v4182_v36 = vmul.f32 1.442695, %v4175_v14 }
0x1c0d   :  { %v4180_v63 = vmul.f32 1.442695, %v4174_v48 }
0x1c0e   :  { %5819 = vpow2.f32 %v4182_v36 }
0x1c0f   :  { %5821 = vpow2.f32 %v4180_v63 }
0x1c14   :  { %v5816_v25 = vpop.eup %5815 }
0x1c15   :  { %v5818_v4 = vpop.eup %5817  ;;  %v4187_v21 = vsel %vm675_vm3, %v5816_v25, 0.0 }
0x1c16   :  { %4188 = vadd.xlane.f32.xlu0 %v4187_v21  ;;  %v4184_v55 = vsel %vm675_vm3, %v5818_v4, 0.0 }
0x1c17   :  { %4185 = vadd.xlane.f32.xlu1 %v4184_v55 }
0x1c18   :  { %v5820_v19 = vpop.eup %5819 }
0x1c19   :  { %v5822_v0 = vpop.eup %5821  ;;  %v4193_v35 = vsel %vm685_vm4, %v5820_v19, 0.0 }
0x1c1a   :  { %4194 = vadd.xlane.f32.xlu0 %v4193_v35  ;;  %v4190_v22 = vsel %vm675_vm3, %v5822_v0, 0.0 }
0x1c1b   :  { %4191 = vadd.xlane.f32.xlu1 %v4190_v22 }
0x1c2c   :  { %836 = vrot.lane.b32.xlu1 %v6112_v42, %s5834_s1 }
0x1c30   :  { %838 = vrot.lane.b32.xlu0 %v6110_v40, %s5834_s1  ;;  %840 = vrot.lane.b32.xlu1 %v6116_v52, %s5834_s1 }
0x1c34   :  { %842 = vrot.lane.b32.xlu1 %v6114_v32, %s5834_s1 }
0x1ca3   :  { %v4189_v58 = vpop.xlane.xlu0 %4188 }
0x1ca4   :  { %5823 = vrcp.f32 %v4189_v58  ;;  %v4186_v53 = vpop.xlane.xlu1 %4185 }
0x1ca5   :  { %5825 = vrcp.f32 %v4186_v53 }
0x1ca7   :  { %v4195_v26 = vpop.xlane.xlu0 %4194 }
0x1ca8   :  { %5827 = vrcp.f32 %v4195_v26  ;;  %v4192_v9 = vpop.xlane.xlu1 %4191 }
0x1ca9   :  { %5829 = vrcp.f32 %v4192_v9 }
0x1cab   :  { %v839_v20 = vpop.permute.xlu0 %838 }
0x1cac   :  { %v849_v42 = vsub.f32 %v5979_v45, %v839_v20  ;;  %v837_v11 = vpop.permute.xlu1 %836 }
0x1cad   :  { %v848_v40 = vsub.f32 %v5981_v46, %v837_v11 }
0x1cae   :  { %v5824_v14 = vpop.eup %5823  ;;  %v853_v61 = vmul.f32 %v849_v42, %v849_v42 }
0x1caf   :  { %v5826_v52 = vpop.eup %5825  ;;  %v852_v48 = vmul.f32 %v848_v40, %v848_v40  ;;  %v4199_v63 = vmul.f32 %v5824_v14, %v5816_v25 }
0x1cb0   :  { %862 = vrot.lane.b32.xlu1 %v853_v61, %s5832_s0  ;;  %v841_v32 = vpop.permute.xlu1 %840  ;;  %v4197_v36 = vmul.f32 %v5826_v52, %v5818_v4 }
0x1cb1   :  { %v850_v21 = vsub.f32 %v5993_v50, %v841_v32  ;;  %860 = vrot.lane.b32.xlu0 %v852_v48, %s5832_s0 }
0x1cb2   :  { %v5828_v55 = vpop.eup %5827  ;;  %5200 = vmatprep.mubr.msk.f32.mxu1 %vm675_vm3, %v4197_v36 }
0x1cb3   :  { %v5830_v35 = vpop.eup %5829  ;;  %v854_v22 = vmul.f32 %v850_v21, %v850_v21  ;;  %5201 = vmatmul.mubr.msk.f32.vlgmr.msra.gmra.mrb[52].mxu1 %vm675_vm3, %v4199_v63  ;;  %v4203_v9 = vmul.f32 %v5828_v55, %v5820_v19 }
0x1cb4   :  { %v843_v58 = vpop.permute.xlu1 %842  ;;  %v4201_v53 = vmul.f32 %v5830_v35, %v5822_v0 }
0x1cb5   :  { %v851_v26 = vsub.f32 %v5991_v49, %v843_v58  ;;  %864 = vrot.lane.b32.xlu0 %v854_v22, %s5832_s0 }
0x1cb6   :  { %5203 = vmatprep.mubr.msk.f32.mxu1 %vm675_vm3, %v4201_v53  ;;  %v7007_v53 = vld [vmem:[#allocation5_spill] sm:$0xff] }
0x1cb7   :  { %v855_v25 = vmul.f32 %v851_v26, %v851_v26  ;;  %5204 = vmatmul.mubr.msk.f32.gmra.mrb[54].mxu1 %vm675_vm3, %v4203_v9 }
0x1cb9   :  { %866 = vrot.lane.b32.xlu1 %v855_v25, %s5832_s0 }
0x1cbd   :  { %1162 = vrot.lane.b32.xlu1 %v6184_v59, %s5834_s1 }
0x1cc1   :  { %1164 = vrot.lane.b32.xlu1 %v6182_v54, %s5834_s1 }
0x1cc5   :  { %1166 = vrot.lane.b32.xlu1 %v6188_v62, %s5834_s1 }
0x1cc9   :  { %1168 = vrot.lane.b32.xlu1 %v6186_v60, %s5834_s1 }
0x1d22   :  { %v863_v4 = vpop.permute.xlu1 %862 }
0x1d23   :  { %v861_v19 = vpop.permute.xlu0 %860  ;;  %v873_v0 = vsel %vm565_vm1, %v863_v4, 0.0 }
0x1d24   :  { %v872_v20 = vsel %vm565_vm1, %v861_v19, 0.0 }
0x1d25   :  { %v874_v40 = vadd.f32 %v873_v0, %v872_v20 }
0x1d27   :  { %v865_v42 = vpop.permute.xlu0 %864 }
0x1d28   :  { %v875_v11 = vsel %vm565_vm1, %v865_v42, 0.0 }
0x1d29   :  { %v876_v59 = vadd.f32 %v875_v11, %v874_v40 }
0x1d2b   :  { %v867_v14 = vpop.permute.xlu1 %866 }
0x1d2c   :  { %v878_v54 = vsel %vm877_vm8, %v867_v14, 0.0 }
0x1d2d   :  { %v879_v61 = vadd.f32 %v878_v54, %v876_v59 }
0x1d2f   :  { %880 = vadd.xlane.f32.xlu0 %v879_v61  ;;  %v1163_v62 = vpop.permute.xlu1 %1162 }
0x1d30   :  { %v1174_v60 = vsub.f32 %v5937_v31, %v1163_v62 }
0x1d32   :  { %v1178_v52 = vmul.f32 %v1174_v60, %v1174_v60 }
0x1d33   :  { %v1165_v48 = vpop.permute.xlu1 %1164 }
0x1d34   :  { %v1175_v32 = vsub.f32 %v5935_v30, %v1165_v48  ;;  %1186 = vrot.lane.b32.xlu1 %v1178_v52, %s5832_s0 }
0x1d36   :  { %v1179_v36 = vmul.f32 %v1175_v32, %v1175_v32 }
0x1d37   :  { %v1167_v63 = vpop.permute.xlu1 %1166 }
0x1d38   :  { %v1176_v21 = vsub.f32 %v5947_v34, %v1167_v63  ;;  %1188 = vrot.lane.b32.xlu1 %v1179_v36, %s5832_s0 }
0x1d3a   :  { %v1180_v55 = vmul.f32 %v1176_v21, %v1176_v21 }
0x1d3b   :  { %v1169_v35 = vpop.permute.xlu1 %1168 }
0x1d3c   :  { %v1177_v22 = vsub.f32 %v5945_v33, %v1169_v35  ;;  %1190 = vrot.lane.b32.xlu1 %v1180_v55, %s5832_s0  ;;  %v7008_v35 = vld [vmem:[#allocation4_spill] sm:$0xff] }
0x1d3e   :  { %v1181_v58 = vmul.f32 %v1177_v22, %v1177_v22 }
0x1d40   :  { %1192 = vrot.lane.b32.xlu1 %v1181_v58, %s5832_s0 }
0x1d44   :  { %1483 = vrot.lane.b32.xlu1 %v6240_v13, %s5834_s1 }
0x1d48   :  { %1487 = vrot.lane.b32.xlu1 %v6244_v17, %s5834_s1 }
0x1d4c   :  { %1489 = vrot.lane.b32.xlu1 %v7007_v53, %s5834_s1 }
0x1d86   :  { %v6752_v26 = vpop.f32.mrb[52].mxu1 }
0x1d87   :  { %v6754_v9 = vpop.f32.mrb[53].mxu1 }
0x1d8a   :  { %v6756_v25 = vpop.f32.mrb[54].mxu1 }
0x1d8b   :  { %v6758_v4 = vpop.f32.mrb[55].mxu1 }
0x1da6   :  { %v1187_v19 = vpop.permute.xlu1 %1186 }
0x1da7   :  { %v1198_v13 = vsel %vm565_vm1, %v1187_v19, 0.0 }
0x1daa   :  { %v1189_v0 = vpop.permute.xlu1 %1188 }
0x1dab   :  { %v1199_v20 = vsel %vm565_vm1, %v1189_v0, 0.0 }
0x1dac   :  { %v1200_v11 = vadd.f32 %v1199_v20, %v1198_v13 }
0x1dae   :  { %v1191_v42 = vpop.permute.xlu1 %1190 }
0x1daf   :  { %v1201_v17 = vsel %vm565_vm1, %v1191_v42, 0.0 }
0x1db0   :  { %v1202_v40 = vadd.f32 %v1201_v17, %v1200_v11 }
0x1db2   :  { %v1193_v59 = vpop.permute.xlu1 %1192 }
0x1db3   :  { %v1203_v14 = vsel %vm877_vm8, %v1193_v59, 0.0 }
0x1db4   :  { %v1204_v54 = vadd.f32 %v1203_v14, %v1202_v40 }
0x1db6   :  { %1205 = vadd.xlane.f32.xlu0 %v1204_v54  ;;  %v1484_v61 = vpop.permute.xlu1 %1483 }
0x1db7   :  { %v1495_v62 = vsub.f32 %v5981_v46, %v1484_v61 }
0x1db9   :  { %v1499_v60 = vmul.f32 %v1495_v62, %v1495_v62 }
0x1dba   :  { %v1488_v53 = vpop.permute.xlu1 %1487 }
0x1dbb   :  { %1507 = vrot.lane.b32.xlu1 %v1499_v60, %s5832_s0  ;;  %v1497_v13 = vsub.f32 %v5993_v50, %v1488_v53  ;;  %v7009_v60 = vld [vmem:[#allocation7_spill] sm:$0xff] }
0x1dbc   :  { %v881_v52 = vpop.xlane.xlu0 %880 }
0x1dbd   :  { %v882_v48 = vrot.slane %v881_v52, 4  ;;  %v1501_v14 = vmul.f32 %v1497_v13, %v1497_v13 }
0x1dbe   :  { %v1490_v40 = vpop.permute.xlu1 %1489 }
0x1dbf   :  { %v883_v32 = vadd.f32 %v882_v48, %v881_v52  ;;  %v1498_v54 = vsub.f32 %v5991_v49, %v1490_v40  ;;  %v7010_v52 = vld [vmem:[#allocation6_spill] sm:$0xff] }
0x1dc0   :  { %v7011_v48 = vld [vmem:[#allocation10_spill] sm:$0xff] }
0x1dc1   :  { %v884_v36 = vrot.slane %v883_v32, 2  ;;  %v1502_v62 = vmul.f32 %v1498_v54, %v1498_v54 }
0x1dc3   :  { %v885_v63 = vadd.f32 %v884_v36, %v883_v32  ;;  %v7012_v32 = vld [vmem:[#allocation14_spill] sm:$0xff]  ;;  %v7013_v36 = vld [vmem:[#allocation13_spill] sm:$0xff] }
0x1dc5   :  { %v886_v21 = vrot.slane %v885_v63, 1 }
0x1dc7   :  { %v887_v55 = vadd.f32 %v886_v21, %v885_v63 }
0x1dc9   :  { %5510 = vpush %v887_v55 }
0x1dcc   :  { %1485 = vrot.lane.b32.xlu0 %v7008_v35, %s5834_s1 }
0x1dfa   :  { %s5511_s5 = spop %5510 }
0x1e43   :  { %v1206_v22 = vpop.xlane.xlu0 %1205 }
0x1e44   :  { %v1207_v58 = vrot.slane %v1206_v22, 4 }
0x1e46   :  { %v1208_v19 = vadd.f32 %v1207_v58, %v1206_v22 }
0x1e47   :  { %v1486_v0 = vpop.permute.xlu0 %1485 }
0x1e48   :  { %v1209_v20 = vrot.slane %v1208_v19, 2  ;;  %v1496_v42 = vsub.f32 %v5979_v45, %v1486_v0 }
0x1e4a   :  { %v1500_v17 = vmul.f32 %v1496_v42, %v1496_v42  ;;  %v1210_v11 = vadd.f32 %v1209_v20, %v1208_v19 }
0x1e4c   :  { %1509 = vrot.lane.b32.xlu1 %v1500_v17, %s5832_s0  ;;  %v1211_v59 = vrot.slane %v1210_v11, 1  ;;  %v7018_v17 = vld [vmem:[#allocation17_spill] sm:$0xff] }
0x1e4e   :  { %v1212_v61 = vadd.f32 %v1211_v59, %v1210_v11 }
0x1e50   :  { %5512 = vpush %v1212_v61  ;;  %1511 = vrot.lane.b32.xlu1 %v1501_v14, %s5832_s0  ;;  %v7019_v14 = vld [vmem:[#allocation9_spill] sm:$0xff]  ;;  %v7020_v61 = vld [vmem:[#allocation16_spill] sm:$0xff] }
0x1e54   :  { %1513 = vrot.lane.b32.xlu1 %v1502_v62, %s5832_s0 }
0x1e58   :  { %1779 = vrot.lane.b32.xlu1 %v7009_v60, %s5834_s1  ;;  %v7021_v60 = vld [vmem:[#allocation20_spill] sm:$0xff] }
0x1e5c   :  { %1781 = vrot.lane.b32.xlu1 %v7010_v52, %s5834_s1  ;;  %v7022_v52 = vld [vmem:[#allocation11_spill] sm:$0xff] }
0x1e60   :  { %2100 = vrot.lane.b32.xlu1 %v6365_v28, %s5834_s1  ;;  %v7014_v28 = vld [vmem:[#allocation12_spill] sm:$0xff] }
0x1e64   :  { %2102 = vrot.lane.b32.xlu1 %v7011_v48, %s5834_s1  ;;  %v7023_v48 = vld [vmem:[#allocation18_spill] sm:$0xff] }
0x1e68   :  { %2396 = vrot.lane.b32.xlu1 %v7012_v32, %s5834_s1 }
0x1e6c   :  { %2398 = vrot.lane.b32.xlu1 %v7013_v36, %s5834_s1 }
0x1e70   :  { %2836 = vrot.lane.b32.xlu1 %v6495_v57, %s5834_s1  ;;  %v7015_v57 = vld [vmem:[#allocation8_spill] sm:$0xff] }
0x1e74   :  { %3153 = vrot.lane.b32.xlu1 %v6562_v51, %s5834_s1  ;;  %v7017_v51 = vld [vmem:[#allocation19_spill] sm:$0xff] }
0x1e78   :  { %3155 = vrot.lane.b32.xlu1 %v6560_v24, %s5834_s1  ;;  %v7016_v24 = vld [vmem:[#allocation15_spill] sm:$0xff] }
0x1e7c   :  { %3441 = vrot.lane.b32.xlu1 %v6610_v44, %s5834_s1 }
0x1e80   :  { %3443 = vrot.lane.b32.xlu1 %v6608_v16, %s5834_s1  ;;  %v1508_v16 = vpop.permute.xlu1 %1507 }
0x1e81   :  { %s6961_s6 = spop %5512 }
0x1e84   :  { %3729 = vrot.lane.b32.xlu1 %v6655_v37, %s5834_s1 }
0x1e88   :  { %3731 = vrot.lane.b32.xlu1 %v6653_v43, %s5834_s1  ;;  %v1519_v43 = vsel %vm565_vm1, %v1508_v16, 0.0 }
0x1e8c   :  { %4019 = vrot.lane.b32.xlu1 %v6690_v12, %s5834_s1 }
0x1e90   :  { %2104 = vrot.lane.b32.xlu1 %v7014_v28, %s5834_s1 }
0x1e94   :  { %2840 = vrot.lane.b32.xlu1 %v6499_v15, %s5834_s1 }
0x1e98   :  { %3445 = vrot.lane.b32.xlu1 %v6614_v18, %s5834_s1 }
0x1e9c   :  { %4021 = vrot.lane.b32.xlu1 %v6696_v7, %s5834_s1 }
0x1ea0   :  { %1785 = vrot.lane.b32.xlu1 %v7015_v57, %s5834_s1 }
0x1ea4   :  { %2402 = vrot.lane.b32.xlu1 %v7016_v24, %s5834_s1 }
0x1ea8   :  { %3159 = vrot.lane.b32.xlu1 %v7017_v51, %s5834_s1 }
0x1eac   :  { %3735 = vrot.lane.b32.xlu1 %v6657_v47, %s5834_s1 }
0x1ebe   :  { %v1510_v15 = vpop.permute.xlu1 %1509 }
0x1ebf   :  { %v1520_v44 = vsel %vm565_vm1, %v1510_v15, 0.0 }
0x1ec0   :  { %v1521_v12 = vadd.f32 %v1520_v44, %v1519_v43 }
0x1ec2   :  { %v1512_v18 = vpop.permute.xlu1 %1511 }
0x1ec3   :  { %v1522_v37 = vsel %vm565_vm1, %v1512_v18, 0.0 }
0x1ec4   :  { %v1523_v7 = vadd.f32 %v1522_v37, %v1521_v12 }
0x1ec6   :  { %v1514_v63 = vpop.permute.xlu1 %1513 }
0x1ec7   :  { %v1524_v21 = vsel %vm877_vm8, %v1514_v63, 0.0 }
0x1ec8   :  { %v1525_v55 = vadd.f32 %v1524_v21, %v1523_v7 }
0x1eca   :  { %1526 = vadd.xlane.f32.xlu0 %v1525_v55  ;;  %v1780_v35 = vpop.permute.xlu1 %1779 }
0x1ece   :  { %v1782_v22 = vpop.permute.xlu1 %1781 }
0x1ecf   :  { %v1792_v47 = vsub.f32 %v5961_v38, %v1782_v22 }
0x1ed1   :  { %v1796_v58 = vmul.f32 %v1792_v47, %v1792_v47 }
0x1ed2   :  { %v2101_v53 = vpop.permute.xlu1 %2100 }
0x1ed3   :  { %1805 = vrot.lane.b32.xlu1 %v1796_v58, %s5832_s0  ;;  %v2112_v36 = vsub.f32 %v5981_v46, %v2101_v53 }
0x1ed6   :  { %v2103_v19 = vpop.permute.xlu1 %2102 }
0x1ed7   :  { %v2113_v0 = vsub.f32 %v5979_v45, %v2103_v19 }
0x1ed9   :  { %v2117_v20 = vmul.f32 %v2113_v0, %v2113_v0 }
0x1eda   :  { %v2397_v42 = vpop.permute.xlu1 %2396 }
0x1edb   :  { %2126 = vrot.lane.b32.xlu1 %v2117_v20, %s5832_s0  ;;  %v2408_v28 = vsub.f32 %v6035_v2, %v2397_v42 }
0x1ede   :  { %v2399_v13 = vpop.permute.xlu1 %2398 }
0x1edf   :  { %4307 = vrot.lane.b32.xlu1 %v6752_v26, %s5834_s1  ;;  %v2409_v11 = vsub.f32 %v6033_v1, %v2399_v13 }
0x1ee0   :  { %2838 = vrot.lane.b32.xlu0 %v7018_v17, %s5834_s1  ;;  %v7024_v17 = vld [vmem:[#allocation3_spill] sm:$0xff] }
0x1ee1   :  { %v2413_v45 = vmul.f32 %v2409_v11, %v2409_v11 }
0x1ee2   :  { %v2837_v40 = vpop.permute.xlu1 %2836 }
0x1ee3   :  { %4311 = vrot.lane.b32.xlu1 %v6756_v25, %s5834_s1  ;;  %v2848_v57 = vsub.f32 %v6420_v3, %v2837_v40 }
0x1ee4   :  { %4017 = vrot.lane.b32.xlu0 %v6692_v41, %s5834_s1 }
0x1ee6   :  { %v3154_v59 = vpop.permute.xlu1 %3153 }
0x1ee7   :  { %2422 = vrot.lane.b32.xlu1 %v2413_v45, %s5832_s0  ;;  %v3165_v46 = vsub.f32 %v5937_v31, %v3154_v59 }
0x1ee8   :  { %1783 = vrot.lane.b32.xlu0 %v7019_v14, %s5834_s1 }
0x1ee9   :  { %v3169_v24 = vmul.f32 %v3165_v46, %v3165_v46 }
0x1eea   :  { %v3156_v26 = vpop.permute.xlu1 %3155 }
0x1eeb   :  { %v3166_v54 = vsub.f32 %v5935_v30, %v3156_v26  ;;  %v1791_v30 = vsub.f32 %v5963_v39, %v1780_v35 }
0x1eec   :  { %2400 = vrot.lane.b32.xlu0 %v7020_v61, %s5834_s1 }
0x1eed   :  { %v1795_v32 = vmul.f32 %v1791_v30, %v1791_v30  ;;  %v3170_v19 = vmul.f32 %v3166_v54, %v3166_v54 }
0x1eee   :  { %v3442_v62 = vpop.permute.xlu1 %3441 }
0x1eef   :  { %v3453_v51 = vsub.f32 %v6420_v3, %v3442_v62 }
0x1ef0   :  { %3157 = vrot.lane.b32.xlu0 %v7021_v60, %s5834_s1 }
0x1ef2   :  { %v3444_v25 = vpop.permute.xlu1 %3443 }
0x1ef3   :  { %v3454_v41 = vsub.f32 %v6418_v8, %v3444_v25 }
0x1ef4   :  { %3733 = vrot.lane.b32.xlu0 %v6659_v56, %s5834_s1  ;;  %v2116_v56 = vmul.f32 %v2112_v36, %v2112_v36 }
0x1ef5   :  { %v3458_v40 = vmul.f32 %v3454_v41, %v3454_v41 }
0x1ef6   :  { %v3730_v16 = vpop.permute.xlu1 %3729 }
0x1ef7   :  { %v3741_v15 = vsub.f32 %v5963_v39, %v3730_v16 }
0x1ef8   :  { %2106 = vrot.lane.b32.xlu0 %v7022_v52, %s5834_s1 }
0x1efa   :  { %v3732_v44 = vpop.permute.xlu1 %3731 }
0x1efb   :  { %v3742_v45 = vsub.f32 %v5961_v38, %v3732_v44 }
0x1efc   :  { %2842 = vrot.lane.b32.xlu0 %v7023_v48, %s5834_s1 }
0x1efd   :  { %v3746_v54 = vmul.f32 %v3742_v45, %v3742_v45 }
0x1efe   :  { %v4020_v18 = vpop.permute.xlu1 %4019 }
0x1eff   :  { %v4030_v61 = vsub.f32 %v6418_v8, %v4020_v18  ;;  %v7025_v18 = vld [vmem:[#allocation2_spill] sm:$0xff] }
0x1f00   :  { %3447 = vrot.lane.b32.xlu0 %v6612_v27, %s5834_s1  ;;  %v2412_v27 = vmul.f32 %v2408_v28, %v2408_v28 }
0x1f01   :  { %v4034_v38 = vmul.f32 %v4030_v61, %v4030_v61 }
0x1f02   :  { %v2105_v43 = vpop.permute.xlu1 %2104 }
0x1f03   :  { %v2114_v41 = vsub.f32 %v5993_v50, %v2105_v43 }
0x1f04   :  { %4023 = vrot.lane.b32.xlu0 %v6694_v23, %s5834_s1  ;;  %v2852_v23 = vmul.f32 %v2848_v57, %v2848_v57 }
0x1f06   :  { %v2841_v31 = vpop.permute.xlu1 %2840 }
0x1f07   :  { %v2850_v36 = vsub.f32 %v6432_v29, %v2841_v31 }
0x1f08   :  { %1803 = vrot.lane.b32.xlu0 %v1795_v32, %s5832_s0 }
0x1f0a   :  { %v3446_v35 = vpop.permute.xlu1 %3445 }
0x1f0b   :  { %v3455_v57 = vsub.f32 %v6432_v29, %v3446_v35 }
0x1f0c   :  { %2124 = vrot.lane.b32.xlu0 %v2116_v56, %s5832_s0 }
0x1f0e   :  { %v4022_v42 = vpop.permute.xlu1 %4021 }
0x1f0f   :  { %v4031_v16 = vsub.f32 %v6432_v29, %v4022_v42 }
0x1f10   :  { %4305 = vrot.lane.b32.xlu0 %v6754_v9, %s5834_s1  ;;  %v3457_v9 = vmul.f32 %v3453_v51, %v3453_v51  ;;  %v3459_v51 = vmul.f32 %v3455_v57, %v3455_v57 }
0x1f11   :  { %v4035_v44 = vmul.f32 %v4031_v16, %v4031_v16 }
0x1f12   :  { %v1786_v26 = vpop.permute.xlu1 %1785 }
0x1f13   :  { %v1794_v43 = vsub.f32 %v7025_v18, %v1786_v26 }
0x1f14   :  { %4309 = vrot.lane.b32.xlu0 %v6758_v4, %s5834_s1  ;;  %v3745_v4 = vmul.f32 %v3741_v15, %v3741_v15 }
0x1f15   :  { %v1798_v29 = vmul.f32 %v1794_v43, %v1794_v43 }
0x1f16   :  { %v2403_v48 = vpop.permute.xlu1 %2402 }
0x1f18   :  { %2420 = vrot.lane.b32.xlu0 %v2412_v27, %s5832_s0  ;;  %v2854_v27 = vmul.f32 %v2850_v36, %v2850_v36 }
0x1f1a   :  { %v3160_v50 = vpop.permute.xlu1 %3159 }
0x1f1c   :  { %2860 = vrot.lane.b32.xlu0 %v2852_v23, %s5832_s0 }
0x1f20   :  { %3177 = vrot.lane.b32.xlu0 %v3169_v24, %s5832_s0 }
0x1f24   :  { %3465 = vrot.lane.b32.xlu0 %v3457_v9, %s5832_s0  ;;  %v3736_v9 = vpop.permute.xlu1 %3735 }
0x1f28   :  { %3753 = vrot.lane.b32.xlu0 %v3745_v4, %s5832_s0 }
0x1f57   :  { %v1527_v37 = vpop.xlane.xlu0 %1526 }
0x1f58   :  { %v1528_v12 = vrot.slane %v1527_v37, 4 }
0x1f5a   :  { %v1529_v7 = vadd.f32 %v1528_v12, %v1527_v37  ;;  %v1806_v37 = vpop.permute.xlu1 %1805 }
0x1f5b   :  { %v2839_v63 = vpop.permute.xlu0 %2838 }
0x1f5c   :  { %v1530_v21 = vrot.slane %v1529_v7, 2  ;;  %v2849_v55 = vsub.f32 %v6418_v8, %v2839_v63  ;;  %v2118_v8 = vmul.f32 %v2114_v41, %v2114_v41 }
0x1f5e   :  { %v2853_v22 = vmul.f32 %v2849_v55, %v2849_v55  ;;  %v1531_v47 = vadd.f32 %v1530_v21, %v1529_v7  ;;  %v2411_v7 = vsub.f32 %v6041_v5, %v2403_v48  ;;  %v2127_v63 = vpop.permute.xlu1 %2126  ;;  %v1816_v55 = vsel %vm565_vm1, %v1806_v37, 0.0 }
0x1f5f   :  { %v4018_v39 = vpop.permute.xlu0 %4017 }
0x1f60   :  { %v4029_v58 = vsub.f32 %v6420_v3, %v4018_v39  ;;  %2862 = vrot.lane.b32.xlu1 %v2853_v22, %s5832_s0  ;;  %v1532_v53 = vrot.slane %v1531_v47, 1  ;;  %v3168_v39 = vsub.f32 %v5945_v33, %v3160_v50 }
0x1f62   :  { %v4033_v0 = vmul.f32 %v4029_v58, %v4029_v58  ;;  %v1533_v20 = vadd.f32 %v1532_v53, %v1531_v47  ;;  %v2415_v47 = vmul.f32 %v2411_v7, %v2411_v7  ;;  %v2137_v53 = vsel %vm565_vm1, %v2127_v63, 0.0 }
0x1f63   :  { %v1784_v13 = vpop.permute.xlu0 %1783  ;;  %v3172_v42 = vmul.f32 %v3168_v39, %v3168_v39 }
0x1f64   :  { %v1793_v11 = vsub.f32 %v7024_v17, %v1784_v13  ;;  %5514 = vpush %v1533_v20  ;;  %3179 = vrot.lane.b32.xlu1 %v3170_v19, %s5832_s0  ;;  %4041 = vrot.lane.b32.xlu0 %v4033_v0, %s5832_s0  ;;  %v4308_v0 = vpop.permute.xlu1 %4307  ;;  %v3744_v13 = vsub.f32 %v7025_v18, %v3736_v9 }
0x1f65   :  { %v4318_v33 = vsub.f32 %v6033_v1, %v4308_v0 }
0x1f66   :  { %v1797_v59 = vmul.f32 %v1793_v11, %v1793_v11 }
0x1f67   :  { %v2401_v3 = vpop.permute.xlu0 %2400  ;;  %v4322_v26 = vmul.f32 %v4318_v33, %v4318_v33 }
0x1f68   :  { %v2410_v14 = vsub.f32 %v6043_v6, %v2401_v3  ;;  %3467 = vrot.lane.b32.xlu1 %v3458_v40, %s5832_s0  ;;  %1807 = vrot.lane.b32.xlu0 %v1797_v59, %s5832_s0  ;;  %v3748_v40 = vmul.f32 %v3744_v13, %v3744_v13  ;;  %v4312_v59 = vpop.permute.xlu1 %4311 }
0x1f6a   :  { %v2414_v62 = vmul.f32 %v2410_v14, %v2410_v14 }
0x1f6b   :  { %v3158_v60 = vpop.permute.xlu0 %3157 }
0x1f6c   :  { %v3167_v25 = vsub.f32 %v5947_v34, %v3158_v60  ;;  %2424 = vrot.lane.b32.xlu0 %v2414_v62, %s5832_s0  ;;  %3755 = vrot.lane.b32.xlu1 %v3746_v54, %s5832_s0  ;;  %v4320_v54 = vsub.f32 %v6041_v5, %v4312_v59  ;;  %v2423_v41 = vpop.permute.xlu1 %2422 }
0x1f6d   :  { %v2433_v18 = vsel %vm565_vm1, %v2423_v41, 0.0 }
0x1f6e   :  { %v3171_v52 = vmul.f32 %v3167_v25, %v3167_v25  ;;  %v4324_v1 = vmul.f32 %v4320_v54, %v4320_v54 }
0x1f6f   :  { %v3734_v30 = vpop.permute.xlu0 %3733 }
0x1f70   :  { %v3743_v32 = vsub.f32 %v7024_v17, %v3734_v30  ;;  %3181 = vrot.lane.b32.xlu0 %v3171_v52, %s5832_s0  ;;  %4043 = vrot.lane.b32.xlu1 %v4034_v38, %s5832_s0 }
0x1f72   :  { %v3747_v34 = vmul.f32 %v3743_v32, %v3743_v32 }
0x1f73   :  { %v2107_v56 = vpop.permute.xlu0 %2106 }
0x1f74   :  { %v2115_v28 = vsub.f32 %v5991_v49, %v2107_v56  ;;  %3757 = vrot.lane.b32.xlu0 %v3747_v34, %s5832_s0  ;;  %2128 = vrot.lane.b32.xlu1 %v2118_v8, %s5832_s0 }
0x1f76   :  { %v2119_v23 = vmul.f32 %v2115_v28, %v2115_v28 }
0x1f77   :  { %v2843_v46 = vpop.permute.xlu0 %2842 }
0x1f78   :  { %v2851_v24 = vsub.f32 %v6430_v10, %v2843_v46  ;;  %2130 = vrot.lane.b32.xlu0 %v2119_v23, %s5832_s0  ;;  %2864 = vrot.lane.b32.xlu1 %v2854_v27, %s5832_s0 }
0x1f7a   :  { %v2855_v49 = vmul.f32 %v2851_v24, %v2851_v24 }
0x1f7b   :  { %v3448_v15 = vpop.permute.xlu0 %3447 }
0x1f7c   :  { %v3456_v4 = vsub.f32 %v6430_v10, %v3448_v15  ;;  %2866 = vrot.lane.b32.xlu0 %v2855_v49, %s5832_s0  ;;  %3469 = vrot.lane.b32.xlu1 %v3459_v51, %s5832_s0 }
0x1f7e   :  { %v3460_v31 = vmul.f32 %v3456_v4, %v3456_v4 }
0x1f7f   :  { %v4024_v12 = vpop.permute.xlu0 %4023 }
0x1f80   :  { %3471 = vrot.lane.b32.xlu0 %v3460_v31, %s5832_s0  ;;  %4045 = vrot.lane.b32.xlu1 %v4035_v44, %s5832_s0  ;;  %v4032_v61 = vsub.f32 %v6430_v10, %v4024_v12 }
0x1f82   :  { %v4036_v62 = vmul.f32 %v4032_v61, %v4032_v61 }
0x1f83   :  { %v1804_v21 = vpop.permute.xlu0 %1803 }
0x1f84   :  { %v1815_v35 = vsel %vm565_vm1, %v1804_v21, 0.0  ;;  %1809 = vrot.lane.b32.xlu1 %v1798_v29, %s5832_s0 }
0x1f85   :  { %v1817_v22 = vadd.f32 %v1816_v55, %v1815_v35 }
0x1f87   :  { %v2125_v58 = vpop.permute.xlu0 %2124 }
0x1f88   :  { %v2136_v19 = vsel %vm565_vm1, %v2125_v58, 0.0  ;;  %2426 = vrot.lane.b32.xlu1 %v2415_v47, %s5832_s0 }
0x1f89   :  { %v2138_v20 = vadd.f32 %v2137_v53, %v2136_v19 }
0x1f8b   :  { %v4306_v17 = vpop.permute.xlu0 %4305 }
0x1f8c   :  { %v4317_v11 = vsub.f32 %v6035_v2, %v4306_v17  ;;  %3183 = vrot.lane.b32.xlu1 %v3172_v42, %s5832_s0 }
0x1f8e   :  { %v4321_v45 = vmul.f32 %v4317_v11, %v4317_v11 }
0x1f8f   :  { %v4310_v3 = vpop.permute.xlu0 %4309 }
0x1f90   :  { %v4319_v14 = vsub.f32 %v6043_v6, %v4310_v3  ;;  %4329 = vrot.lane.b32.xlu0 %v4321_v45, %s5832_s0  ;;  %3759 = vrot.lane.b32.xlu1 %v3748_v40, %s5832_s0 }
0x1f92   :  { %v4323_v2 = vmul.f32 %v4319_v14, %v4319_v14 }
0x1f93   :  { %v2421_v6 = vpop.permute.xlu0 %2420 }
0x1f94   :  { %4333 = vrot.lane.b32.xlu0 %v4323_v2, %s5832_s0  ;;  %4331 = vrot.lane.b32.xlu1 %v4322_v26, %s5832_s0  ;;  %v2432_v15 = vsel %vm565_vm1, %v2421_v6, 0.0 }
0x1f95   :  { %v2434_v37 = vadd.f32 %v2433_v18, %v2432_v15  ;;  %s5515_s7 = spop %5514 }
0x1f97   :  { %v2861_v60 = vpop.permute.xlu0 %2860 }
0x1f98   :  { %4047 = vrot.lane.b32.xlu0 %v4036_v62, %s5832_s0  ;;  %4335 = vrot.lane.b32.xlu1 %v4324_v1, %s5832_s0  ;;  %v2872_v21 = vsel %vm565_vm1, %v2861_v60, 0.0 }
0x1f9b   :  { %v3178_v25 = vpop.permute.xlu0 %3177 }
0x1f9f   :  { %v3466_v38 = vpop.permute.xlu0 %3465 }
0x1fa0   :  { %v3477_v17 = vsel %vm565_vm1, %v3466_v38, 0.0 }
0x1fa3   :  { %v3754_v52 = vpop.permute.xlu0 %3753 }
0x1fa4   :  { %v3765_v59 = vsel %vm565_vm1, %v3754_v52, 0.0 }
0x1fd2   :  { %v2863_v5 = vpop.permute.xlu1 %2862 }
0x1fd3   :  { %v2873_v7 = vsel %vm565_vm1, %v2863_v5, 0.0 }
0x1fd4   :  { %v2874_v53 = vadd.f32 %v2873_v7, %v2872_v21 }
0x1fd6   :  { %v6926_v48 = vpop.permute.xlu0 %4041  ;;  %v3180_v10 = vpop.permute.xlu1 %3179 }
0x1fd7   :  { %v3190_v63 = vsel %vm565_vm1, %v3180_v10, 0.0 }
0x1fda   :  { %v1808_v30 = vpop.permute.xlu0 %1807  ;;  %v3468_v32 = vpop.permute.xlu1 %3467 }
0x1fdb   :  { %v1818_v9 = vsel %vm565_vm1, %v1808_v30, 0.0 }
0x1fdc   :  { %v1819_v4 = vadd.f32 %v1818_v9, %v1817_v22  ;;  %v3189_v22 = vsel %vm565_vm1, %v3178_v25, 0.0 }
0x1fdd   :  { %v3191_v19 = vadd.f32 %v3190_v63, %v3189_v22 }
0x1fde   :  { %v2425_v8 = vpop.permute.xlu0 %2424  ;;  %v3756_v36 = vpop.permute.xlu1 %3755 }
0x1fdf   :  { %v2435_v43 = vsel %vm565_vm1, %v2425_v8, 0.0  ;;  %v3766_v42 = vsel %vm565_vm1, %v3756_v36, 0.0  ;;  %v4053_v8 = vsel %vm565_vm1, %v6926_v48, 0.0 }
0x1fe0   :  { %v2436_v55 = vadd.f32 %v2435_v43, %v2434_v37  ;;  %v3767_v61 = vadd.f32 %v3766_v42, %v3765_v59 }
0x1fe2   :  { %v3182_v34 = vpop.permute.xlu0 %3181  ;;  %v4044_v56 = vpop.permute.xlu1 %4043 }
0x1fe3   :  { %v3192_v47 = vsel %vm565_vm1, %v3182_v34, 0.0  ;;  %v4054_v10 = vsel %vm565_vm1, %v4044_v56, 0.0 }
0x1fe4   :  { %v3193_v11 = vadd.f32 %v3192_v47, %v3191_v19 }
0x1fe6   :  { %v3758_v28 = vpop.permute.xlu0 %3757  ;;  %v2129_v50 = vpop.permute.xlu1 %2128 }
0x1fe7   :  { %v2139_v27 = vsel %vm565_vm1, %v2129_v50, 0.0  ;;  %v3768_v3 = vsel %vm565_vm1, %v3758_v28, 0.0  ;;  %v4055_v50 = vadd.f32 %v4054_v10, %v4053_v8 }
0x1fe8   :  { %v2140_v57 = vadd.f32 %v2139_v27, %v2138_v20  ;;  %v3478_v20 = vsel %vm565_vm1, %v3468_v32, 0.0  ;;  %v3769_v6 = vadd.f32 %v3768_v3, %v3767_v61 }
0x1fe9   :  { %v3479_v54 = vadd.f32 %v3478_v20, %v3477_v17 }
0x1fea   :  { %v2131_v23 = vpop.permute.xlu0 %2130  ;;  %v2865_v46 = vpop.permute.xlu1 %2864 }
0x1feb   :  { %v2141_v24 = vsel %vm877_vm8, %v2131_v23, 0.0  ;;  %v2875_v39 = vsel %vm565_vm1, %v2865_v46, 0.0 }
0x1fec   :  { %v2142_v51 = vadd.f32 %v2141_v24, %v2140_v57  ;;  %v2876_v40 = vadd.f32 %v2875_v39, %v2874_v53 }
0x1fee   :  { %2143 = vadd.xlane.f32.xlu1 %v2142_v51  ;;  %v3470_v16 = vpop.permute.xlu1 %3469  ;;  %v2867_v12 = vpop.permute.xlu0 %2866 }
0x1fef   :  { %v2877_v13 = vsel %vm877_vm8, %v2867_v12, 0.0  ;;  %v3480_v14 = vsel %vm565_vm1, %v3470_v16, 0.0 }
0x1ff0   :  { %v2878_v2 = vadd.f32 %v2877_v13, %v2876_v40  ;;  %v3481_v60 = vadd.f32 %v3480_v14, %v3479_v54 }
0x1ff2   :  { %v4046_v49 = vpop.permute.xlu1 %4045  ;;  %v3472_v33 = vpop.permute.xlu0 %3471 }
0x1ff3   :  { %v3482_v62 = vsel %vm877_vm8, %v3472_v33, 0.0  ;;  %v4056_v36 = vsel %vm565_vm1, %v4046_v49, 0.0 }
0x1ff4   :  { %v3483_v52 = vadd.f32 %v3482_v62, %v3481_v60  ;;  %v4057_v23 = vadd.f32 %v4056_v36, %v4055_v50 }
0x1ff6   :  { %v1810_v44 = vpop.permute.xlu1 %1809 }
0x1ff7   :  { %v1820_v31 = vsel %vm877_vm8, %v1810_v44, 0.0 }
0x1ff8   :  { %v1821_v29 = vadd.f32 %v1820_v31, %v1819_v4 }
0x1ffa   :  { %1822 = vadd.xlane.f32.xlu0 %v1821_v29  ;;  %v2427_v35 = vpop.permute.xlu1 %2426 }
0x1ffb   :  { %v2437_v58 = vsel %vm877_vm8, %v2427_v35, 0.0 }
0x1ffc   :  { %v2438_v0 = vadd.f32 %v2437_v58, %v2436_v55 }
0x1ffe   :  { %2439 = vadd.xlane.f32.xlu0 %v2438_v0  ;;  %v3184_v45 = vpop.permute.xlu1 %3183 }
0x1fff   :  { %v3194_v26 = vsel %vm877_vm8, %v3184_v45, 0.0 }
0x2000   :  { %v3195_v1 = vadd.f32 %v3194_v26, %v3193_v11 }
0x2002   :  { %v4330_v25 = vpop.permute.xlu0 %4329  ;;  %2879 = vadd.xlane.f32.xlu0 %v2878_v2  ;;  %3196 = vadd.xlane.f32.xlu1 %v3195_v1  ;;  %v3760_v38 = vpop.permute.xlu1 %3759 }
0x2003   :  { %v3770_v41 = vsel %vm877_vm8, %v3760_v38, 0.0  ;;  %v4341_v34 = vsel %vm565_vm1, %v4330_v25, 0.0 }
0x2004   :  { %v3771_v5 = vadd.f32 %v3770_v41, %v3769_v6 }
0x2006   :  { %v4334_v30 = vpop.permute.xlu0 %4333  ;;  %3484 = vadd.xlane.f32.xlu0 %v3483_v52  ;;  %3772 = vadd.xlane.f32.xlu1 %v3771_v5  ;;  %v4332_v32 = vpop.permute.xlu1 %4331 }
0x2007   :  { %v4342_v28 = vsel %vm565_vm1, %v4332_v32, 0.0  ;;  %v4344_v57 = vsel %vm565_vm1, %v4334_v30, 0.0 }
0x2008   :  { %v4343_v27 = vadd.f32 %v4342_v28, %v4341_v34 }
0x200a   :  { %v4048_v46 = vpop.permute.xlu0 %4047  ;;  %v4345_v56 = vadd.f32 %v4344_v57, %v4343_v27  ;;  %v4336_v24 = vpop.permute.xlu1 %4335 }
0x200b   :  { %v4058_v51 = vsel %vm877_vm8, %v4048_v46, 0.0  ;;  %v4346_v16 = vsel %vm877_vm8, %v4336_v24, 0.0 }
0x200c   :  { %v4059_v9 = vadd.f32 %v4058_v51, %v4057_v23  ;;  %v4347_v48 = vadd.f32 %v4346_v16, %v4345_v56 }
0x200e   :  { %4060 = vadd.xlane.f32.xlu0 %v4059_v9  ;;  %4348 = vadd.xlane.f32.xlu1 %v4347_v48  ;;  %v889_v48 = vstv %s5511_s5 }
0x207b   :  { %v2144_v49 = vpop.xlane.xlu1 %2143 }
0x207c   :  { %v2145_v15 = vrot.slane %v2144_v49, 4 }
0x207e   :  { %v2146_v4 = vadd.f32 %v2145_v15, %v2144_v49 }
0x2080   :  { %v2147_v44 = vrot.slane %v2146_v4, 2 }
0x2082   :  { %v2148_v12 = vadd.f32 %v2147_v44, %v2146_v4  ;;  %v1535_v4 = vstv %s5515_s7 }
0x2084   :  { %v2149_v22 = vrot.slane %v2148_v12, 1 }
0x2086   :  { %v2150_v11 = vadd.f32 %v2149_v22, %v2148_v12 }
0x2087   :  { %v1823_v18 = vpop.xlane.xlu0 %1822 }
0x2088   :  { %v1824_v43 = vrot.slane %v1823_v18, 4 }
0x208a   :  { %v1825_v31 = vadd.f32 %v1824_v43, %v1823_v18  ;;  %v890_v43 = vsub.f32 0.0, %v889_v48 }
0x208b   :  { %v2440_v37 = vpop.xlane.xlu0 %2439 }
0x208c   :  { %v1826_v29 = vrot.slane %v1825_v31, 2  ;;  %v2441_v7 = vrot.slane %v2440_v37, 4 }
0x208e   :  { %v2442_v63 = vadd.f32 %v2441_v7, %v2440_v37  ;;  %v1827_v21 = vadd.f32 %v1826_v29, %v1825_v31  ;;  %v1214_v29 = vstv %s6961_s6 }
0x208f   :  { %v2880_v55 = vpop.xlane.xlu0 %2879  ;;  %v3197_v35 = vpop.xlane.xlu1 %3196 }
0x2090   :  { %v2443_v47 = vrot.slane %v2442_v63, 2  ;;  %v2881_v39 = vrot.slane %v2880_v55, 4  ;;  %v3198_v58 = vrot.slane %v3197_v35, 4  ;;  %v1828_v53 = vrot.slane %v1827_v21, 1 }
0x2092   :  { %v2882_v19 = vadd.f32 %v2881_v39, %v2880_v55  ;;  %v3199_v0 = vadd.f32 %v3198_v58, %v3197_v35  ;;  %v1829_v20 = vadd.f32 %v1828_v53, %v1827_v21  ;;  %v2444_v42 = vadd.f32 %v2443_v47, %v2442_v63 }
0x2093   :  { %v3485_v13 = vpop.xlane.xlu0 %3484  ;;  %v3773_v17 = vpop.xlane.xlu1 %3772  ;;  %v1536_v21 = vsub.f32 0.0, %v1535_v4 }
0x2094   :  { %v2883_v40 = vrot.slane %v2882_v19, 2  ;;  %v3200_v33 = vrot.slane %v3199_v0, 2  ;;  %v3486_v45 = vrot.slane %v3485_v13, 4  ;;  %v3774_v59 = vrot.slane %v3773_v17, 4  ;;  %5516 = vpush %v1829_v20 }
0x2095   :  { %5518 = vpush %v2150_v11  ;;  %v2445_v3 = vrot.slane %v2444_v42, 1  ;;  %v2454_v11 = vsel %vm2450_vm9, %v890_v43, %v1536_v21 }
0x2096   :  { %v3487_v14 = vadd.f32 %v3486_v45, %v3485_v13  ;;  %v3775_v26 = vadd.f32 %v3774_v59, %v3773_v17  ;;  %v2884_v54 = vadd.f32 %v2883_v40, %v2882_v19  ;;  %v3201_v61 = vadd.f32 %v3200_v33, %v3199_v0 }
0x2097   :  { %v2446_v2 = vadd.f32 %v2445_v3, %v2444_v42  ;;  %v1215_v42 = vsub.f32 0.0, %v1214_v29 }
0x2098   :  { %v3488_v1 = vrot.slane %v3487_v14, 2  ;;  %v3776_v62 = vrot.slane %v3775_v26, 2  ;;  %v2885_v6 = vrot.slane %v2884_v54, 1  ;;  %v3202_v60 = vrot.slane %v3201_v61, 1 }
0x2099   :  { %5520 = vpush %v2446_v2 }
0x209a   :  { %v2886_v25 = vadd.f32 %v2885_v6, %v2884_v54  ;;  %v3203_v38 = vadd.f32 %v3202_v60, %v3201_v61  ;;  %v3489_v41 = vadd.f32 %v3488_v1, %v3487_v14  ;;  %v3777_v52 = vadd.f32 %v3776_v62, %v3775_v26 }
0x209b   :  { %v4061_v5 = vpop.xlane.xlu0 %4060  ;;  %v4349_v10 = vpop.xlane.xlu1 %4348 }
0x209c   :  { %v4062_v30 = vrot.slane %v4061_v5, 4  ;;  %v4350_v32 = vrot.slane %v4349_v10, 4  ;;  %5522 = vpush %v2886_v25  ;;  %v3490_v8 = vrot.slane %v3489_v41, 1  ;;  %v3778_v36 = vrot.slane %v3777_v52, 1 }
0x209d   :  { %5524 = vpush %v3203_v38 }
0x209e   :  { %v4063_v34 = vadd.f32 %v4062_v30, %v4061_v5  ;;  %v4351_v28 = vadd.f32 %v4350_v32, %v4349_v10  ;;  %v3491_v50 = vadd.f32 %v3490_v8, %v3489_v41  ;;  %v3779_v27 = vadd.f32 %v3778_v36, %v3777_v52 }
0x20a0   :  { %v4064_v57 = vrot.slane %v4063_v34, 2  ;;  %v4352_v23 = vrot.slane %v4351_v28, 2  ;;  %5526 = vpush %v3491_v50 }
0x20a1   :  { %5528 = vpush %v3779_v27 }
0x20a2   :  { %v4065_v46 = vadd.f32 %v4064_v57, %v4063_v34  ;;  %v4353_v56 = vadd.f32 %v4352_v23, %v4351_v28 }
0x20a4   :  { %v4066_v24 = vrot.slane %v4065_v46, 1  ;;  %v4354_v51 = vrot.slane %v4353_v56, 1 }
0x20a6   :  { %v4067_v16 = vadd.f32 %v4066_v24, %v4065_v46  ;;  %v4355_v9 = vadd.f32 %v4354_v51, %v4353_v56 }
0x20a8   :  { %5530 = vpush %v4067_v16 }
0x20a9   :  { %5532 = vpush %v4355_v9 }
0x20c5   :  { %s5517_s8 = spop %5516 }
0x20c6   :  { %s5519_s9 = spop %5518  ;;  %v1831_v44 = vstv %s5517_s8 }
0x20c7   :  { %v2152_v31 = vstv %s5519_s9  ;;  %v1832_v55 = vsub.f32 0.0, %v1831_v44 }
0x20c8   :  { %v2153_v47 = vsub.f32 0.0, %v2152_v31 }
0x20c9   :  { %v2451_v45 = vsel %vm2450_vm9, %v1215_v42, %v1832_v55 }
0x20ca   :  { %s5521_s10 = spop %5520  ;;  %v2455_v59 = vsel %vm2452_vm10, %v2454_v11, %v2153_v47 }
0x20cb   :  { %v2448_v7 = vstv %s5521_s10 }
0x20cc   :  { %v2449_v19 = vsub.f32 0.0, %v2448_v7 }
0x20cd   :  { %s5523_s11 = spop %5522 }
0x20ce   :  { %s5525_s12 = spop %5524  ;;  %v2888_v18 = vstv %s5523_s11  ;;  %v2453_v14 = vsel %vm2452_vm10, %v2451_v45, %v2449_v19 }
0x20cf   :  { %v3205_v37 = vstv %s5525_s12  ;;  %v2889_v35 = vsub.f32 0.0, %v2888_v18 }
0x20d0   :  { %v3206_v39 = vsub.f32 0.0, %v3205_v37 }
0x20d1   :  { %s5527_s13 = spop %5526 }
0x20d2   :  { %s5529_s14 = spop %5528  ;;  %v3493_v49 = vstv %s5527_s13 }
0x20d3   :  { %v3781_v15 = vstv %s5529_s14  ;;  %v3494_v12 = vsub.f32 0.0, %v3493_v49 }
0x20d4   :  { %v3782_v63 = vsub.f32 0.0, %v3781_v15 }
0x20d5   :  { %v4361_v0 = vsel %vm2450_vm9, %v2889_v35, %v3494_v12 }
0x20d6   :  { %v4359_v13 = vsel %vm2450_vm9, %v3206_v39, %v3782_v63 }
0x20d9   :  { %s5531_s15 = spop %5530 }
0x20da   :  { %v4069_v22 = vstv %s5531_s15  ;;  %s5533_s16 = spop %5532 }
0x20db   :  { %v4070_v58 = vsub.f32 0.0, %v4069_v22  ;;  %v4357_v53 = vstv %s5533_s16 }
0x20dc   :  { %v4358_v20 = vsub.f32 0.0, %v4357_v53 }
0x20dd   :  { %v4362_v17 = vsel %vm2452_vm10, %v4361_v0, %v4070_v58 }
0x20de   :  { %v4370_v40 = vrot.slane %v4362_v17, 7  ;;  %v4360_v33 = vsel %vm2452_vm10, %v4359_v13, %v4358_v20 }
0x20df   :  { %v4364_v3 = vrot.slane %v4360_v33, 7 }
0x20e0   :  { %v4372_v26 = vsel %vm744_vm5, %v2455_v59, %v4370_v40 }
0x20e1   :  { %4567 = vst.msk [vmem:[%s6979_s3 + $0x2] sm:$0x3] %vm4367_vm11, %v4372_v26  ;;  %v4366_v54 = vsel %vm744_vm5, %v2453_v14, %v4364_v3 }
0x20e2   :  { %4368 = vst.msk [vmem:[%s6979_s3] sm:$0x3] %vm4367_vm11, %v4366_v54 }

</bundles_post_ra>
